<compile_context>
chip_gen: v7x
topology: tpu7x:2x2x1
jax: 0.10.0
libtpu: 0.0.40
codegen_flags: <defaults>
</compile_context>

<pallas_src>
import functools
import math

import jax
import jax.numpy as jnp
from jax.experimental import pallas as pl
from jax.experimental.pallas import tpu as pltpu

_F32 = jnp.float32


def _round_up(x, m):
    return (x + m - 1) // m * m


# ---------------------------------------------------------------------------
# In-kernel helpers (operate on VMEM-resident values)
# ---------------------------------------------------------------------------

def _layer_norm(x, g, b, eps=1e-5):
    mu = jnp.mean(x, axis=-1, keepdims=True)
    var = jnp.mean(jnp.square(x - mu), axis=-1, keepdims=True)
    return (x - mu) * jax.lax.rsqrt(var + eps) * g + b


def _mha_core(q, k, v, *, batch, lq, lk, num_heads, scale):
    """q: (B*Lq, E), k/v: (B*Lk, E), already projected (+bias).

    Returns (B*Lq, E) = concatenated-head attention output (before out-projection).
    Batch and head loops are short static unrolls; everything stays in vregs.
    """
    e = q.shape[-1]
    dh = e // num_heads
    rows = []
    for b in range(batch):
        qb = q[b * lq:(b + 1) * lq, :]
        kb = k[b * lk:(b + 1) * lk, :]
        vb = v[b * lk:(b + 1) * lk, :]
        heads = []
        for h in range(num_heads):
            sl = slice(h * dh, (h + 1) * dh)
            qh = qb[:, sl] * scale
            kh = kb[:, sl]
            vh = vb[:, sl]
            # scores: contract the last dims directly (no materialized K transpose)
            s = jax.lax.dot_general(qh, kh, (((1,), (1,)), ((), ())),
                                    preferred_element_type=_F32)          # (Lq, Lk)
            s = s - jnp.max(s, axis=-1, keepdims=True)
            p = jnp.exp(s)
            p = p / jnp.sum(p, axis=-1, keepdims=True)                    # exact softmax
            heads.append(jnp.dot(p, vh, preferred_element_type=_F32))     # (Lq, Dh)
        rows.append(jnp.concatenate(heads, axis=-1))                      # (Lq, E)
    return jnp.concatenate(rows, axis=0)                                  # (B*Lq, E)


# ---------------------------------------------------------------------------
# Fused stack kernels (one pallas_call per stack, grid = layers)
# ---------------------------------------------------------------------------

def _encoder_stack_kernel(x_ref, w_in, b_in, w_out, w1, b1, w2, vecs, final_gb,
                          o_ref, *, num_heads, scale, batch, seq):
    l = pl.program_id(0)
    n_layers = pl.num_programs(0)

    @pl.when(l == 0)
    def _():
        o_ref[...] = x_ref[...]          # seed the VMEM-resident activation buffer

    e = o_ref.shape[-1]
    x = o_ref[...].reshape(batch * seq, e)            # fold batch for position-wise matmuls
    v = vecs[0]                                       # (6, E): [b_out, g1, b1, b_ff2, g2, b2]

    # --- self-attention (fused QKV, concat-heads out-projection) ---
    qkv = jnp.dot(x, w_in[0], preferred_element_type=_F32) + b_in[0]       # (B*L, 3E)
    attn = _mha_core(qkv[:, :e], qkv[:, e:2 * e], qkv[:, 2 * e:],
                     batch=batch, lq=seq, lk=seq, num_heads=num_heads, scale=scale)
    attn = jnp.dot(attn, w_out[0], preferred_element_type=_F32) + v[0:1, :]
    x1 = _layer_norm(x + attn, v[1:2, :], v[2:3, :])

    # --- feed-forward ---
    hid = jnp.maximum(jnp.dot(x1, w1[0], preferred_element_type=_F32) + b1[0], 0.0)
    ff = jnp.dot(hid, w2[0], preferred_element_type=_F32) + v[3:4, :]
    y = _layer_norm(x1 + ff, v[4:5, :], v[5:6, :])

    @pl.when(l < n_layers - 1)
    def _():
        o_ref[...] = y.reshape(batch, seq, e)

    @pl.when(l == n_layers - 1)
    def _():
        # final encoder LayerNorm fused into the last layer step
        fg = final_gb[...]
        o_ref[...] = _layer_norm(y, fg[0:1, :], fg[1:2, :]).reshape(batch, seq, e)


def _decoder_stack_kernel(x_ref, mem_ref,
                          sa_w_in, sa_b_in, sa_w_out,
                          ca_wq, ca_wkv, ca_bkv, ca_w_out,
                          w1, b1, w2, vecs, final_gb, lin_w, lin_b,
                          o_ref, logits_ref, *,
                          num_heads, scale, batch, tgt_len, src_len):
    l = pl.program_id(0)
    n_layers = pl.num_programs(0)

    @pl.when(l == 0)
    def _():
        o_ref[...] = x_ref[...]

    e = o_ref.shape[-1]
    x = o_ref[...].reshape(batch * tgt_len, e)
    mem = mem_ref[...].reshape(batch * src_len, e)
    v = vecs[0]   # (10, E): [sa_bo, g1, b1, ca_bq, ca_bo, g2, b2, b_ff2, g3, b3]

    # --- self-attention (unmasked: module calls nn.Transformer without tgt_mask) ---
    qkv = jnp.dot(x, sa_w_in[0], preferred_element_type=_F32) + sa_b_in[0]
    sa = _mha_core(qkv[:, :e], qkv[:, e:2 * e], qkv[:, 2 * e:],
                   batch=batch, lq=tgt_len, lk=tgt_len,
                   num_heads=num_heads, scale=scale)
    sa = jnp.dot(sa, sa_w_out[0], preferred_element_type=_F32) + v[0:1, :]
    x1 = _layer_norm(x + sa, v[1:2, :], v[2:3, :])

    # --- cross-attention (fused K/V projection on the memory) ---
    q = jnp.dot(x1, ca_wq[0], preferred_element_type=_F32) + v[3:4, :]
    kv = jnp.dot(mem, ca_wkv[0], preferred_element_type=_F32) + ca_bkv[0]   # (B*S, 2E)
    ca = _mha_core(q, kv[:, :e], kv[:, e:],
                   batch=batch, lq=tgt_len, lk=src_len,
                   num_heads=num_heads, scale=scale)
    ca = jnp.dot(ca, ca_w_out[0], preferred_element_type=_F32) + v[4:5, :]
    x2 = _layer_norm(x1 + ca, v[5:6, :], v[6:7, :])

    # --- feed-forward ---
    hid = jnp.maximum(jnp.dot(x2, w1[0], preferred_element_type=_F32) + b1[0], 0.0)
    ff = jnp.dot(hid, w2[0], preferred_element_type=_F32) + v[7:8, :]
    y = _layer_norm(x2 + ff, v[8:9, :], v[9:10, :])

    o_ref[...] = y.reshape(batch, tgt_len, e)

    @pl.when(l == n_layers - 1)
    def _():
        # final decoder LayerNorm + lane-dense (padded) vocab projection, fused here
        fg = final_gb[...]
        yn = _layer_norm(y, fg[0:1, :], fg[1:2, :])
        vp = lin_b.shape[-1]
        logits = jnp.dot(yn, lin_w[...], preferred_element_type=_F32) + lin_b[...]
        logits_ref[...] = logits.reshape(batch, tgt_len, vp)


# ---------------------------------------------------------------------------
# pallas_call wrappers
# ---------------------------------------------------------------------------

_ARBITRARY = pltpu.CompilerParams(dimension_semantics=("arbitrary",))


def _layer_spec(a):
    """Per-layer stacked array (n_layers, ...): select layer l, keep the rest whole."""
    n = a.ndim - 1
    return pl.BlockSpec((1,) + tuple(a.shape[1:]), lambda l: (l,) + (0,) * n)


def _const_spec(shape):
    """Whole-array block, index independent of the layer grid (fetched once)."""
    n = len(shape)
    return pl.BlockSpec(tuple(shape), lambda l: (0,) * n)


def encoder_stack(src, enc, enc_final, num_heads):
    B, S, E = src.shape
    n_layers = enc["w_in"].shape[0]
    scale = 1.0 / math.sqrt(E // num_heads)
    layer_args = [enc["w_in"], enc["b_in"], enc["w_out"],
                  enc["w1"], enc["b1"], enc["w2"], enc["vecs"]]
    kernel = functools.partial(_encoder_stack_kernel, num_heads=num_heads,
                               scale=scale, batch=B, seq=S)
    return pl.pallas_call(
        kernel,
        out_shape=jax.ShapeDtypeStruct((B, S, E), _F32),
        grid=(n_layers,),
        in_specs=([_const_spec(src.shape)]
                  + [_layer_spec(a) for a in layer_args]
                  + [_const_spec(enc_final.shape)]),
        out_specs=_const_spec((B, S, E)),
        compiler_params=_ARBITRARY,
    )(src, *layer_args, enc_final)


def decoder_stack(trg, mem, dec, dec_final, lin_w, lin_b, num_heads):
    B, T, E = trg.shape
    S = mem.shape[1]
    Vp = lin_w.shape[1]
    n_layers = dec["sa_w_in"].shape[0]
    scale = 1.0 / math.sqrt(E // num_heads)
    layer_args = [dec["sa_w_in"], dec["sa_b_in"], dec["sa_w_out"],
                  dec["ca_wq"], dec["ca_wkv"], dec["ca_bkv"], dec["ca_w_out"],
                  dec["w1"], dec["b1"], dec["w2"], dec["vecs"]]
    kernel = functools.partial(_decoder_stack_kernel, num_heads=num_heads,
                               scale=scale, batch=B, tgt_len=T, src_len=S)
    _, logits = pl.pallas_call(
        kernel,
        out_shape=(jax.ShapeDtypeStruct((B, T, E), _F32),
                   jax.ShapeDtypeStruct((B, T, Vp), _F32)),
        grid=(n_layers,),
        in_specs=([_const_spec(trg.shape), _const_spec(mem.shape)]
                  + [_layer_spec(a) for a in layer_args]
                  + [_const_spec(dec_final.shape), _const_spec(lin_w.shape),
                     _const_spec(lin_b.shape)]),
        out_specs=(_const_spec((B, T, E)), _const_spec((B, T, Vp))),
        compiler_params=_ARBITRARY,
    )(trg, mem, *layer_args, dec_final, lin_w, lin_b)
    return logits


# ---------------------------------------------------------------------------
# Transformer forward (embedding gather + argmax kept as JAX glue)
# ---------------------------------------------------------------------------

def automatic_transformer_forward(params, src_tokens, trg_tokens, *, num_heads, trg_vocab):
    S = src_tokens.shape[1]
    T = trg_tokens.shape[1]

    # token + learned positional embeddings (gather kept in JAX glue)
    src = params["src_pos"][:S][None, :, :] + params["src_emb"][src_tokens]
    trg = params["trg_pos"][:T][None, :, :] + params["trg_emb"][trg_tokens]

    mem = encoder_stack(src, params["enc"], params["enc_final"], num_heads)
    logits_full = decoder_stack(trg, mem, params["dec"], params["dec_final"],
                                params["lin_w"], params["lin_b"], num_heads)

    logits = logits_full[:, :, :trg_vocab]            # strip lane padding
    predictions = jnp.argmax(logits, axis=2)
    # TODO(synk): torch argmax returns int64 indices; jnp.argmax returns int32 here.
    return logits, predictions


# ---------------------------------------------------------------------------
# Deterministic parameter initialization, in kernel-friendly (stacked / fused /
# padded) layouts so no transposes or reshapes are needed inside jit.
# ---------------------------------------------------------------------------

def init_params(key, E, F, H, n_enc, n_dec, src_vocab, src_max, trg_vocab, trg_max):
    vp = _round_up(trg_vocab, 128)
    ks = iter(jax.random.split(key, 16))

    def nrm(k, shape):
        return 0.02 * jax.random.normal(k, shape, _F32)

    # packed per-layer vector slabs (rows are biases=0 / LN gammas=1 / LN betas=0)
    enc_vecs = (jnp.zeros((n_enc, 6, E), _F32)
                .at[:, 1, :].set(1.0)     # ln1 gamma
                .at[:, 4, :].set(1.0))    # ln2 gamma
    dec_vecs = (jnp.zeros((n_dec, 10, E), _F32)
                .at[:, 1, :].set(1.0)     # ln1 gamma
                .at[:, 5, :].set(1.0)     # ln2 gamma
                .at[:, 8, :].set(1.0))    # ln3 gamma

    lin_w = jnp.zeros((E, vp), _F32).at[:, :trg_vocab].set(nrm(next(ks), (E, trg_vocab)))

    return {
        "src_emb": nrm(next(ks), (src_vocab, E)),
        "src_pos": nrm(next(ks), (src_max, E)),
        "trg_emb": nrm(next(ks), (trg_vocab, E)),
        "trg_pos": nrm(next(ks), (trg_max, E)),
        "enc": {
            "w_in": nrm(next(ks), (n_enc, E, 3 * E)),     # fused QKV, (in, out) layout
            "b_in": jnp.zeros((n_enc, 1, 3 * E), _F32),
            "w_out": nrm(next(ks), (n_enc, E, E)),        # concat-heads out-projection
            "w1": nrm(next(ks), (n_enc, E, F)),
            "b1": jnp.zeros((n_enc, 1, F), _F32),
            "w2": nrm(next(ks), (n_enc, F, E)),
            "vecs": enc_vecs,
        },
        "enc_final": jnp.zeros((2, E), _F32).at[0, :].set(1.0),   # [gamma; beta]
        "dec": {
            "sa_w_in": nrm(next(ks), (n_dec, E, 3 * E)),
            "sa_b_in": jnp.zeros((n_dec, 1, 3 * E), _F32),
            "sa_w_out": nrm(next(ks), (n_dec, E, E)),
            "ca_wq": nrm(next(ks), (n_dec, E, E)),
            "ca_wkv": nrm(next(ks), (n_dec, E, 2 * E)),
            "ca_bkv": jnp.zeros((n_dec, 1, 2 * E), _F32),
            "ca_w_out": nrm(next(ks), (n_dec, E, E)),
            "w1": nrm(next(ks), (n_dec, E, F)),
            "b1": jnp.zeros((n_dec, 1, F), _F32),
            "w2": nrm(next(ks), (n_dec, F, E)),
            "vecs": dec_vecs,
        },
        "dec_final": jnp.zeros((2, E), _F32).at[0, :].set(1.0),
        "lin_w": lin_w,                               # (E, vocab padded to 128 lanes)
        "lin_b": jnp.zeros((1, vp), _F32),
    }


# ---------------------------------------------------------------------------
# Main
# ---------------------------------------------------------------------------

if __name__ == "__main__":
    # small, module-consistent shapes
    B, S, T = 2, 8, 8
    E, H, F = 32, 4, 64
    N_ENC, N_DEC = 2, 2
    SRC_VOCAB, SRC_MAX = 50, 16
    TRG_VOCAB, TRG_MAX = 40, 16

    key = jax.random.PRNGKey(0)
    kp, ks_, kt = jax.random.split(key, 3)
    params = init_params(kp, E, F, H, N_ENC, N_DEC,
                         SRC_VOCAB, SRC_MAX, TRG_VOCAB, TRG_MAX)

    src_tokens = jax.random.randint(ks_, (B, S), 0, SRC_VOCAB, dtype=jnp.int32)
    trg_tokens = jax.random.randint(kt, (B, T), 0, TRG_VOCAB, dtype=jnp.int32)

    fwd = jax.jit(functools.partial(automatic_transformer_forward,
                                    num_heads=H, trg_vocab=TRG_VOCAB))
    logits, preds = fwd(params, src_tokens, trg_tokens)
    jax.block_until_ready((logits, preds))

    assert logits.shape == (B, T, TRG_VOCAB)
    assert preds.shape == (B, T)
    print("KERNEL_OK")
</pallas_src>

<mosaic_0001>
module attributes {stable_mosaic.version = 11 : i64} {
  func.func @_encoder_stack_kernel(%arg0: i32, %arg1: memref<2x8x32xf32, #tpu.memory_space<vmem>>, %arg2: memref<1x32x96xf32, #tpu.memory_space<vmem>>, %arg3: memref<1x1x96xf32, #tpu.memory_space<vmem>>, %arg4: memref<1x32x32xf32, #tpu.memory_space<vmem>>, %arg5: memref<1x32x64xf32, #tpu.memory_space<vmem>>, %arg6: memref<1x1x64xf32, #tpu.memory_space<vmem>>, %arg7: memref<1x64x32xf32, #tpu.memory_space<vmem>>, %arg8: memref<1x6x32xf32, #tpu.memory_space<vmem>>, %arg9: memref<2x32xf32, #tpu.memory_space<vmem>>, %arg10: memref<2x8x32xf32, #tpu.memory_space<vmem>>) attributes {dimension_semantics = [#tpu.dimension_semantics<arbitrary>], iteration_bounds = array<i64: 2>, scalar_prefetch = 0 : i64, scratch_operands = 0 : i64, tpu.core_type = #tpu.core_type<tc>, window_params = [{pipeline_mode = #tpu.pipeline_mode<synchronous>, transform_indices = @transform_0, window_bounds = array<i64: 2, 8, 32>}, {transform_indices = @transform_1, window_bounds = array<i64: 1, 32, 96>}, {transform_indices = @transform_2, window_bounds = array<i64: 1, 1, 96>}, {transform_indices = @transform_3, window_bounds = array<i64: 1, 32, 32>}, {transform_indices = @transform_4, window_bounds = array<i64: 1, 32, 64>}, {transform_indices = @transform_5, window_bounds = array<i64: 1, 1, 64>}, {transform_indices = @transform_6, window_bounds = array<i64: 1, 64, 32>}, {transform_indices = @transform_7, window_bounds = array<i64: 1, 6, 32>}, {pipeline_mode = #tpu.pipeline_mode<synchronous>, transform_indices = @transform_8, window_bounds = array<i64: 2, 32>}, {pipeline_mode = #tpu.pipeline_mode<synchronous>, transform_indices = @transform_9, window_bounds = array<i64: 2, 8, 32>}]} {
    %c0_i32 = arith.constant 0 : i32
    %0 = arith.cmpi eq, %arg0, %c0_i32 : i32
    %1 = arith.extui %0 : i1 to i32
    %c0_i32_0 = arith.constant 0 : i32
    %2 = arith.cmpi ne, %1, %c0_i32_0 : i32
    scf.if %2 {
      %c0_81 = arith.constant 0 : index
      %c0_82 = arith.constant 0 : index
      %c0_83 = arith.constant 0 : index
      %231 = vector.load %arg1[%c0_81, %c0_82, %c0_83] : memref<2x8x32xf32, #tpu.memory_space<vmem>>, vector<2x8x32xf32>
      %c0_84 = arith.constant 0 : index
      %c0_85 = arith.constant 0 : index
      %c0_86 = arith.constant 0 : index
      %232 = vector.load %arg10[%c0_84, %c0_85, %c0_86] : memref<2x8x32xf32, #tpu.memory_space<vmem>>, vector<2x8x32xf32>
      tpu.vector_store %arg10[%c0_84, %c0_85, %c0_86], %231 {strides = array<i32>} : memref<2x8x32xf32, #tpu.memory_space<vmem>>, vector<2x8x32xf32>,
    } else {
    }
    %c0 = arith.constant 0 : index
    %c0_1 = arith.constant 0 : index
    %c0_2 = arith.constant 0 : index
    %3 = vector.load %arg10[%c0, %c0_1, %c0_2] : memref<2x8x32xf32, #tpu.memory_space<vmem>>, vector<2x8x32xf32>
    %4 = vector.shape_cast %3 : vector<2x8x32xf32> to vector<16x32xf32>
    %c0_3 = arith.constant 0 : index
    %c0_4 = arith.constant 0 : index
    %c0_5 = arith.constant 0 : index
    %5 = vector.load %arg8[%c0_3, %c0_4, %c0_5] : memref<1x6x32xf32, #tpu.memory_space<vmem>>, vector<1x6x32xf32>
    %6 = vector.shape_cast %5 : vector<1x6x32xf32> to vector<6x32xf32>
    %c0_6 = arith.constant 0 : index
    %c0_7 = arith.constant 0 : index
    %c0_8 = arith.constant 0 : index
    %7 = vector.load %arg2[%c0_6, %c0_7, %c0_8] : memref<1x32x96xf32, #tpu.memory_space<vmem>>, vector<1x32x96xf32>
    %8 = vector.shape_cast %7 : vector<1x32x96xf32> to vector<32x96xf32>
    %cst = arith.constant dense<0.000000e+00> : vector<16x96xf32>
    %9 = tpu.matmul %4, %8, %cst {dimension_numbers = #tpu.dot_dimension_numbers<[1], [0], [0], [1], [0, 0, 1, 1], [], []>} : vector<16x32xf32>, vector<32x96xf32>, vector<16x96xf32> -> vector<16x96xf32>
    %c0_9 = arith.constant 0 : index
    %c0_10 = arith.constant 0 : index
    %c0_11 = arith.constant 0 : index
    %10 = vector.load %arg3[%c0_9, %c0_10, %c0_11] : memref<1x1x96xf32, #tpu.memory_space<vmem>>, vector<1x1x96xf32>
    %11 = vector.shape_cast %10 : vector<1x1x96xf32> to vector<1x96xf32>
    %12 = vector.broadcast %11 : vector<1x96xf32> to vector<16x96xf32>
    %13 = arith.addf %9, %12 : vector<16x96xf32>
    %14 = vector.extract_strided_slice %13 {offsets = [0, 0], sizes = [16, 32], strides = [1, 1]} : vector<16x96xf32> to vector<16x32xf32>
    %15 = vector.extract_strided_slice %13 {offsets = [0, 32], sizes = [16, 32], strides = [1, 1]} : vector<16x96xf32> to vector<16x32xf32>
    %16 = vector.extract_strided_slice %13 {offsets = [0, 64], sizes = [16, 32], strides = [1, 1]} : vector<16x96xf32> to vector<16x32xf32>
    %17 = vector.extract_strided_slice %14 {offsets = [0, 0], sizes = [8, 32], strides = [1, 1]} : vector<16x32xf32> to vector<8x32xf32>
    %18 = vector.extract_strided_slice %15 {offsets = [0, 0], sizes = [8, 32], strides = [1, 1]} : vector<16x32xf32> to vector<8x32xf32>
    %19 = vector.extract_strided_slice %16 {offsets = [0, 0], sizes = [8, 32], strides = [1, 1]} : vector<16x32xf32> to vector<8x32xf32>
    %20 = vector.extract_strided_slice %17 {offsets = [0, 0], sizes = [8, 8], strides = [1, 1]} : vector<8x32xf32> to vector<8x8xf32>
    %cst_12 = arith.constant 0.353553385 : f32
    %21 = vector.broadcast %cst_12 : f32 to vector<8x8xf32>
    %22 = arith.mulf %20, %21 : vector<8x8xf32>
    %23 = vector.extract_strided_slice %18 {offsets = [0, 0], sizes = [8, 8], strides = [1, 1]} : vector<8x32xf32> to vector<8x8xf32>
    %24 = vector.extract_strided_slice %19 {offsets = [0, 0], sizes = [8, 8], strides = [1, 1]} : vector<8x32xf32> to vector<8x8xf32>
    %cst_13 = arith.constant dense<0.000000e+00> : vector<8x8xf32>
    %25 = tpu.matmul %22, %23, %cst_13 {dimension_numbers = #tpu.dot_dimension_numbers<[1], [1], [0], [0], [0, 0, 1, 0], [], []>} : vector<8x8xf32>, vector<8x8xf32>, vector<8x8xf32> -> vector<8x8xf32>
    %cst_14 = arith.constant dense<0xFF800000> : vector<8xf32>
    %26 = vector.multi_reduction <maximumf>, %25, %cst_14 [1] : vector<8x8xf32> to vector<8xf32>
    %27 = vector.shape_cast %26 : vector<8xf32> to vector<8x1xf32>
    %28 = vector.broadcast %27 : vector<8x1xf32> to vector<8x8xf32>
    %29 = arith.subf %25, %28 : vector<8x8xf32>
    %30 = math.exp %29 : vector<8x8xf32>
    %cst_15 = arith.constant dense<0.000000e+00> : vector<8xf32>
    %31 = vector.multi_reduction <add>, %30, %cst_15 [1] : vector<8x8xf32> to vector<8xf32>
    %32 = vector.shape_cast %31 : vector<8xf32> to vector<8x1xf32>
    %33 = vector.broadcast %32 : vector<8x1xf32> to vector<8x8xf32>
    %34 = arith.divf %30, %33 : vector<8x8xf32>
    %cst_16 = arith.constant dense<0.000000e+00> : vector<8x8xf32>
    %35 = tpu.matmul %34, %24, %cst_16 {dimension_numbers = #tpu.dot_dimension_numbers<[1], [0], [0], [1], [0, 0, 1, 1], [], []>} : vector<8x8xf32>, vector<8x8xf32>, vector<8x8xf32> -> vector<8x8xf32>
    %36 = vector.extract_strided_slice %17 {offsets = [0, 8], sizes = [8, 8], strides = [1, 1]} : vector<8x32xf32> to vector<8x8xf32>
    %cst_17 = arith.constant 0.353553385 : f32
    %37 = vector.broadcast %cst_17 : f32 to vector<8x8xf32>
    %38 = arith.mulf %36, %37 : vector<8x8xf32>
    %39 = vector.extract_strided_slice %18 {offsets = [0, 8], sizes = [8, 8], strides = [1, 1]} : vector<8x32xf32> to vector<8x8xf32>
    %40 = vector.extract_strided_slice %19 {offsets = [0, 8], sizes = [8, 8], strides = [1, 1]} : vector<8x32xf32> to vector<8x8xf32>
    %cst_18 = arith.constant dense<0.000000e+00> : vector<8x8xf32>
    %41 = tpu.matmul %38, %39, %cst_18 {dimension_numbers = #tpu.dot_dimension_numbers<[1], [1], [0], [0], [0, 0, 1, 0], [], []>} : vector<8x8xf32>, vector<8x8xf32>, vector<8x8xf32> -> vector<8x8xf32>
    %cst_19 = arith.constant dense<0xFF800000> : vector<8xf32>
    %42 = vector.multi_reduction <maximumf>, %41, %cst_19 [1] : vector<8x8xf32> to vector<8xf32>
    %43 = vector.shape_cast %42 : vector<8xf32> to vector<8x1xf32>
    %44 = vector.broadcast %43 : vector<8x1xf32> to vector<8x8xf32>
    %45 = arith.subf %41, %44 : vector<8x8xf32>
    %46 = math.exp %45 : vector<8x8xf32>
    %cst_20 = arith.constant dense<0.000000e+00> : vector<8xf32>
    %47 = vector.multi_reduction <add>, %46, %cst_20 [1] : vector<8x8xf32> to vector<8xf32>
    %48 = vector.shape_cast %47 : vector<8xf32> to vector<8x1xf32>
    %49 = vector.broadcast %48 : vector<8x1xf32> to vector<8x8xf32>
    %50 = arith.divf %46, %49 : vector<8x8xf32>
    %cst_21 = arith.constant dense<0.000000e+00> : vector<8x8xf32>
    %51 = tpu.matmul %50, %40, %cst_21 {dimension_numbers = #tpu.dot_dimension_numbers<[1], [0], [0], [1], [0, 0, 1, 1], [], []>} : vector<8x8xf32>, vector<8x8xf32>, vector<8x8xf32> -> vector<8x8xf32>
    %52 = vector.extract_strided_slice %17 {offsets = [0, 16], sizes = [8, 8], strides = [1, 1]} : vector<8x32xf32> to vector<8x8xf32>
    %cst_22 = arith.constant 0.353553385 : f32
    %53 = vector.broadcast %cst_22 : f32 to vector<8x8xf32>
    %54 = arith.mulf %52, %53 : vector<8x8xf32>
    %55 = vector.extract_strided_slice %18 {offsets = [0, 16], sizes = [8, 8], strides = [1, 1]} : vector<8x32xf32> to vector<8x8xf32>
    %56 = vector.extract_strided_slice %19 {offsets = [0, 16], sizes = [8, 8], strides = [1, 1]} : vector<8x32xf32> to vector<8x8xf32>
    %cst_23 = arith.constant dense<0.000000e+00> : vector<8x8xf32>
    %57 = tpu.matmul %54, %55, %cst_23 {dimension_numbers = #tpu.dot_dimension_numbers<[1], [1], [0], [0], [0, 0, 1, 0], [], []>} : vector<8x8xf32>, vector<8x8xf32>, vector<8x8xf32> -> vector<8x8xf32>
    %cst_24 = arith.constant dense<0xFF800000> : vector<8xf32>
    %58 = vector.multi_reduction <maximumf>, %57, %cst_24 [1] : vector<8x8xf32> to vector<8xf32>
    %59 = vector.shape_cast %58 : vector<8xf32> to vector<8x1xf32>
    %60 = vector.broadcast %59 : vector<8x1xf32> to vector<8x8xf32>
    %61 = arith.subf %57, %60 : vector<8x8xf32>
    %62 = math.exp %61 : vector<8x8xf32>
    %cst_25 = arith.constant dense<0.000000e+00> : vector<8xf32>
    %63 = vector.multi_reduction <add>, %62, %cst_25 [1] : vector<8x8xf32> to vector<8xf32>
    %64 = vector.shape_cast %63 : vector<8xf32> to vector<8x1xf32>
    %65 = vector.broadcast %64 : vector<8x1xf32> to vector<8x8xf32>
    %66 = arith.divf %62, %65 : vector<8x8xf32>
    %cst_26 = arith.constant dense<0.000000e+00> : vector<8x8xf32>
    %67 = tpu.matmul %66, %56, %cst_26 {dimension_numbers = #tpu.dot_dimension_numbers<[1], [0], [0], [1], [0, 0, 1, 1], [], []>} : vector<8x8xf32>, vector<8x8xf32>, vector<8x8xf32> -> vector<8x8xf32>
    %68 = vector.extract_strided_slice %17 {offsets = [0, 24], sizes = [8, 8], strides = [1, 1]} : vector<8x32xf32> to vector<8x8xf32>
    %cst_27 = arith.constant 0.353553385 : f32
    %69 = vector.broadcast %cst_27 : f32 to vector<8x8xf32>
    %70 = arith.mulf %68, %69 : vector<8x8xf32>
    %71 = vector.extract_strided_slice %18 {offsets = [0, 24], sizes = [8, 8], strides = [1, 1]} : vector<8x32xf32> to vector<8x8xf32>
    %72 = vector.extract_strided_slice %19 {offsets = [0, 24], sizes = [8, 8], strides = [1, 1]} : vector<8x32xf32> to vector<8x8xf32>
    %cst_28 = arith.constant dense<0.000000e+00> : vector<8x8xf32>
    %73 = tpu.matmul %70, %71, %cst_28 {dimension_numbers = #tpu.dot_dimension_numbers<[1], [1], [0], [0], [0, 0, 1, 0], [], []>} : vector<8x8xf32>, vector<8x8xf32>, vector<8x8xf32> -> vector<8x8xf32>
    %cst_29 = arith.constant dense<0xFF800000> : vector<8xf32>
    %74 = vector.multi_reduction <maximumf>, %73, %cst_29 [1] : vector<8x8xf32> to vector<8xf32>
    %75 = vector.shape_cast %74 : vector<8xf32> to vector<8x1xf32>
    %76 = vector.broadcast %75 : vector<8x1xf32> to vector<8x8xf32>
    %77 = arith.subf %73, %76 : vector<8x8xf32>
    %78 = math.exp %77 : vector<8x8xf32>
    %cst_30 = arith.constant dense<0.000000e+00> : vector<8xf32>
    %79 = vector.multi_reduction <add>, %78, %cst_30 [1] : vector<8x8xf32> to vector<8xf32>
    %80 = vector.shape_cast %79 : vector<8xf32> to vector<8x1xf32>
    %81 = vector.broadcast %80 : vector<8x1xf32> to vector<8x8xf32>
    %82 = arith.divf %78, %81 : vector<8x8xf32>
    %cst_31 = arith.constant dense<0.000000e+00> : vector<8x8xf32>
    %83 = tpu.matmul %82, %72, %cst_31 {dimension_numbers = #tpu.dot_dimension_numbers<[1], [0], [0], [1], [0, 0, 1, 1], [], []>} : vector<8x8xf32>, vector<8x8xf32>, vector<8x8xf32> -> vector<8x8xf32>
    %84 = tpu.concatenate %35, %51, %67, %83 in 1 : vector<8x8xf32>, vector<8x8xf32>, vector<8x8xf32>, vector<8x8xf32> -> vector<8x32xf32>
    %85 = vector.extract_strided_slice %14 {offsets = [8, 0], sizes = [8, 32], strides = [1, 1]} : vector<16x32xf32> to vector<8x32xf32>
    %86 = vector.extract_strided_slice %15 {offsets = [8, 0], sizes = [8, 32], strides = [1, 1]} : vector<16x32xf32> to vector<8x32xf32>
    %87 = vector.extract_strided_slice %16 {offsets = [8, 0], sizes = [8, 32], strides = [1, 1]} : vector<16x32xf32> to vector<8x32xf32>
    %88 = vector.extract_strided_slice %85 {offsets = [0, 0], sizes = [8, 8], strides = [1, 1]} : vector<8x32xf32> to vector<8x8xf32>
    %cst_32 = arith.constant 0.353553385 : f32
    %89 = vector.broadcast %cst_32 : f32 to vector<8x8xf32>
    %90 = arith.mulf %88, %89 : vector<8x8xf32>
    %91 = vector.extract_strided_slice %86 {offsets = [0, 0], sizes = [8, 8], strides = [1, 1]} : vector<8x32xf32> to vector<8x8xf32>
    %92 = vector.extract_strided_slice %87 {offsets = [0, 0], sizes = [8, 8], strides = [1, 1]} : vector<8x32xf32> to vector<8x8xf32>
    %cst_33 = arith.constant dense<0.000000e+00> : vector<8x8xf32>
    %93 = tpu.matmul %90, %91, %cst_33 {dimension_numbers = #tpu.dot_dimension_numbers<[1], [1], [0], [0], [0, 0, 1, 0], [], []>} : vector<8x8xf32>, vector<8x8xf32>, vector<8x8xf32> -> vector<8x8xf32>
    %cst_34 = arith.constant dense<0xFF800000> : vector<8xf32>
    %94 = vector.multi_reduction <maximumf>, %93, %cst_34 [1] : vector<8x8xf32> to vector<8xf32>
    %95 = vector.shape_cast %94 : vector<8xf32> to vector<8x1xf32>
    %96 = vector.broadcast %95 : vector<8x1xf32> to vector<8x8xf32>
    %97 = arith.subf %93, %96 : vector<8x8xf32>
    %98 = math.exp %97 : vector<8x8xf32>
    %cst_35 = arith.constant dense<0.000000e+00> : vector<8xf32>
    %99 = vector.multi_reduction <add>, %98, %cst_35 [1] : vector<8x8xf32> to vector<8xf32>
    %100 = vector.shape_cast %99 : vector<8xf32> to vector<8x1xf32>
    %101 = vector.broadcast %100 : vector<8x1xf32> to vector<8x8xf32>
    %102 = arith.divf %98, %101 : vector<8x8xf32>
    %cst_36 = arith.constant dense<0.000000e+00> : vector<8x8xf32>
    %103 = tpu.matmul %102, %92, %cst_36 {dimension_numbers = #tpu.dot_dimension_numbers<[1], [0], [0], [1], [0, 0, 1, 1], [], []>} : vector<8x8xf32>, vector<8x8xf32>, vector<8x8xf32> -> vector<8x8xf32>
    %104 = vector.extract_strided_slice %85 {offsets = [0, 8], sizes = [8, 8], strides = [1, 1]} : vector<8x32xf32> to vector<8x8xf32>
    %cst_37 = arith.constant 0.353553385 : f32
    %105 = vector.broadcast %cst_37 : f32 to vector<8x8xf32>
    %106 = arith.mulf %104, %105 : vector<8x8xf32>
    %107 = vector.extract_strided_slice %86 {offsets = [0, 8], sizes = [8, 8], strides = [1, 1]} : vector<8x32xf32> to vector<8x8xf32>
    %108 = vector.extract_strided_slice %87 {offsets = [0, 8], sizes = [8, 8], strides = [1, 1]} : vector<8x32xf32> to vector<8x8xf32>
    %cst_38 = arith.constant dense<0.000000e+00> : vector<8x8xf32>
    %109 = tpu.matmul %106, %107, %cst_38 {dimension_numbers = #tpu.dot_dimension_numbers<[1], [1], [0], [0], [0, 0, 1, 0], [], []>} : vector<8x8xf32>, vector<8x8xf32>, vector<8x8xf32> -> vector<8x8xf32>
    %cst_39 = arith.constant dense<0xFF800000> : vector<8xf32>
    %110 = vector.multi_reduction <maximumf>, %109, %cst_39 [1] : vector<8x8xf32> to vector<8xf32>
    %111 = vector.shape_cast %110 : vector<8xf32> to vector<8x1xf32>
    %112 = vector.broadcast %111 : vector<8x1xf32> to vector<8x8xf32>
    %113 = arith.subf %109, %112 : vector<8x8xf32>
    %114 = math.exp %113 : vector<8x8xf32>
    %cst_40 = arith.constant dense<0.000000e+00> : vector<8xf32>
    %115 = vector.multi_reduction <add>, %114, %cst_40 [1] : vector<8x8xf32> to vector<8xf32>
    %116 = vector.shape_cast %115 : vector<8xf32> to vector<8x1xf32>
    %117 = vector.broadcast %116 : vector<8x1xf32> to vector<8x8xf32>
    %118 = arith.divf %114, %117 : vector<8x8xf32>
    %cst_41 = arith.constant dense<0.000000e+00> : vector<8x8xf32>
    %119 = tpu.matmul %118, %108, %cst_41 {dimension_numbers = #tpu.dot_dimension_numbers<[1], [0], [0], [1], [0, 0, 1, 1], [], []>} : vector<8x8xf32>, vector<8x8xf32>, vector<8x8xf32> -> vector<8x8xf32>
    %120 = vector.extract_strided_slice %85 {offsets = [0, 16], sizes = [8, 8], strides = [1, 1]} : vector<8x32xf32> to vector<8x8xf32>
    %cst_42 = arith.constant 0.353553385 : f32
    %121 = vector.broadcast %cst_42 : f32 to vector<8x8xf32>
    %122 = arith.mulf %120, %121 : vector<8x8xf32>
    %123 = vector.extract_strided_slice %86 {offsets = [0, 16], sizes = [8, 8], strides = [1, 1]} : vector<8x32xf32> to vector<8x8xf32>
    %124 = vector.extract_strided_slice %87 {offsets = [0, 16], sizes = [8, 8], strides = [1, 1]} : vector<8x32xf32> to vector<8x8xf32>
    %cst_43 = arith.constant dense<0.000000e+00> : vector<8x8xf32>
    %125 = tpu.matmul %122, %123, %cst_43 {dimension_numbers = #tpu.dot_dimension_numbers<[1], [1], [0], [0], [0, 0, 1, 0], [], []>} : vector<8x8xf32>, vector<8x8xf32>, vector<8x8xf32> -> vector<8x8xf32>
    %cst_44 = arith.constant dense<0xFF800000> : vector<8xf32>
    %126 = vector.multi_reduction <maximumf>, %125, %cst_44 [1] : vector<8x8xf32> to vector<8xf32>
    %127 = vector.shape_cast %126 : vector<8xf32> to vector<8x1xf32>
    %128 = vector.broadcast %127 : vector<8x1xf32> to vector<8x8xf32>
    %129 = arith.subf %125, %128 : vector<8x8xf32>
    %130 = math.exp %129 : vector<8x8xf32>
    %cst_45 = arith.constant dense<0.000000e+00> : vector<8xf32>
    %131 = vector.multi_reduction <add>, %130, %cst_45 [1] : vector<8x8xf32> to vector<8xf32>
    %132 = vector.shape_cast %131 : vector<8xf32> to vector<8x1xf32>
    %133 = vector.broadcast %132 : vector<8x1xf32> to vector<8x8xf32>
    %134 = arith.divf %130, %133 : vector<8x8xf32>
    %cst_46 = arith.constant dense<0.000000e+00> : vector<8x8xf32>
    %135 = tpu.matmul %134, %124, %cst_46 {dimension_numbers = #tpu.dot_dimension_numbers<[1], [0], [0], [1], [0, 0, 1, 1], [], []>} : vector<8x8xf32>, vector<8x8xf32>, vector<8x8xf32> -> vector<8x8xf32>
    %136 = vector.extract_strided_slice %85 {offsets = [0, 24], sizes = [8, 8], strides = [1, 1]} : vector<8x32xf32> to vector<8x8xf32>
    %cst_47 = arith.constant 0.353553385 : f32
    %137 = vector.broadcast %cst_47 : f32 to vector<8x8xf32>
    %138 = arith.mulf %136, %137 : vector<8x8xf32>
    %139 = vector.extract_strided_slice %86 {offsets = [0, 24], sizes = [8, 8], strides = [1, 1]} : vector<8x32xf32> to vector<8x8xf32>
    %140 = vector.extract_strided_slice %87 {offsets = [0, 24], sizes = [8, 8], strides = [1, 1]} : vector<8x32xf32> to vector<8x8xf32>
    %cst_48 = arith.constant dense<0.000000e+00> : vector<8x8xf32>
    %141 = tpu.matmul %138, %139, %cst_48 {dimension_numbers = #tpu.dot_dimension_numbers<[1], [1], [0], [0], [0, 0, 1, 0], [], []>} : vector<8x8xf32>, vector<8x8xf32>, vector<8x8xf32> -> vector<8x8xf32>
    %cst_49 = arith.constant dense<0xFF800000> : vector<8xf32>
    %142 = vector.multi_reduction <maximumf>, %141, %cst_49 [1] : vector<8x8xf32> to vector<8xf32>
    %143 = vector.shape_cast %142 : vector<8xf32> to vector<8x1xf32>
    %144 = vector.broadcast %143 : vector<8x1xf32> to vector<8x8xf32>
    %145 = arith.subf %141, %144 : vector<8x8xf32>
    %146 = math.exp %145 : vector<8x8xf32>
    %cst_50 = arith.constant dense<0.000000e+00> : vector<8xf32>
    %147 = vector.multi_reduction <add>, %146, %cst_50 [1] : vector<8x8xf32> to vector<8xf32>
    %148 = vector.shape_cast %147 : vector<8xf32> to vector<8x1xf32>
    %149 = vector.broadcast %148 : vector<8x1xf32> to vector<8x8xf32>
    %150 = arith.divf %146, %149 : vector<8x8xf32>
    %cst_51 = arith.constant dense<0.000000e+00> : vector<8x8xf32>
    %151 = tpu.matmul %150, %140, %cst_51 {dimension_numbers = #tpu.dot_dimension_numbers<[1], [0], [0], [1], [0, 0, 1, 1], [], []>} : vector<8x8xf32>, vector<8x8xf32>, vector<8x8xf32> -> vector<8x8xf32>
    %152 = tpu.concatenate %103, %119, %135, %151 in 1 : vector<8x8xf32>, vector<8x8xf32>, vector<8x8xf32>, vector<8x8xf32> -> vector<8x32xf32>
    %153 = tpu.concatenate %84, %152 in 0 : vector<8x32xf32>, vector<8x32xf32> -> vector<16x32xf32>
    %c0_52 = arith.constant 0 : index
    %c0_53 = arith.constant 0 : index
    %c0_54 = arith.constant 0 : index
    %154 = vector.load %arg4[%c0_52, %c0_53, %c0_54] : memref<1x32x32xf32, #tpu.memory_space<vmem>>, vector<1x32x32xf32>
    %155 = vector.shape_cast %154 : vector<1x32x32xf32> to vector<32x32xf32>
    %cst_55 = arith.constant dense<0.000000e+00> : vector<16x32xf32>
    %156 = tpu.matmul %153, %155, %cst_55 {dimension_numbers = #tpu.dot_dimension_numbers<[1], [0], [0], [1], [0, 0, 1, 1], [], []>} : vector<16x32xf32>, vector<32x32xf32>, vector<16x32xf32> -> vector<16x32xf32>
    %157 = vector.extract_strided_slice %6 {offsets = [0, 0], sizes = [1, 32], strides = [1, 1]} : vector<6x32xf32> to vector<1x32xf32>
    %158 = vector.broadcast %157 : vector<1x32xf32> to vector<16x32xf32>
    %159 = arith.addf %156, %158 : vector<16x32xf32>
    %160 = arith.addf %4, %159 : vector<16x32xf32>
    %161 = vector.extract_strided_slice %6 {offsets = [1, 0], sizes = [1, 32], strides = [1, 1]} : vector<6x32xf32> to vector<1x32xf32>
    %162 = vector.extract_strided_slice %6 {offsets = [2, 0], sizes = [1, 32], strides = [1, 1]} : vector<6x32xf32> to vector<1x32xf32>
    %cst_56 = arith.constant dense<0.000000e+00> : vector<16xf32>
    %163 = vector.multi_reduction <add>, %160, %cst_56 [1] : vector<16x32xf32> to vector<16xf32>
    %164 = vector.shape_cast %163 : vector<16xf32> to vector<16x1xf32>
    %cst_57 = arith.constant 3.200000e+01 : f32
    %165 = vector.broadcast %cst_57 : f32 to vector<16x1xf32>
    %166 = arith.divf %164, %165 : vector<16x1xf32>
    %167 = vector.broadcast %166 : vector<16x1xf32> to vector<16x32xf32>
    %168 = arith.subf %160, %167 : vector<16x32xf32>
    %169 = arith.mulf %168, %168 : vector<16x32xf32>
    %cst_58 = arith.constant dense<0.000000e+00> : vector<16xf32>
    %170 = vector.multi_reduction <add>, %169, %cst_58 [1] : vector<16x32xf32> to vector<16xf32>
    %171 = vector.shape_cast %170 : vector<16xf32> to vector<16x1xf32>
    %cst_59 = arith.constant 3.200000e+01 : f32
    %172 = vector.broadcast %cst_59 : f32 to vector<16x1xf32>
    %173 = arith.divf %171, %172 : vector<16x1xf32>
    %174 = vector.broadcast %166 : vector<16x1xf32> to vector<16x32xf32>
    %175 = arith.subf %160, %174 : vector<16x32xf32>
    %cst_60 = arith.constant 9.99999974E-6 : f32
    %176 = vector.broadcast %cst_60 : f32 to vector<16x1xf32>
    %177 = arith.addf %173, %176 : vector<16x1xf32>
    %178 = math.rsqrt %177 : vector<16x1xf32>
    %179 = vector.broadcast %178 : vector<16x1xf32> to vector<16x32xf32>
    %180 = arith.mulf %175, %179 : vector<16x32xf32>
    %181 = vector.broadcast %161 : vector<1x32xf32> to vector<16x32xf32>
    %182 = arith.mulf %180, %181 : vector<16x32xf32>
    %183 = vector.broadcast %162 : vector<1x32xf32> to vector<16x32xf32>
    %184 = arith.addf %182, %183 : vector<16x32xf32>
    %c0_61 = arith.constant 0 : index
    %c0_62 = arith.constant 0 : index
    %c0_63 = arith.constant 0 : index
    %185 = vector.load %arg5[%c0_61, %c0_62, %c0_63] : memref<1x32x64xf32, #tpu.memory_space<vmem>>, vector<1x32x64xf32>
    %186 = vector.shape_cast %185 : vector<1x32x64xf32> to vector<32x64xf32>
    %cst_64 = arith.constant dense<0.000000e+00> : vector<16x64xf32>
    %187 = tpu.matmul %184, %186, %cst_64 {dimension_numbers = #tpu.dot_dimension_numbers<[1], [0], [0], [1], [0, 0, 1, 1], [], []>} : vector<16x32xf32>, vector<32x64xf32>, vector<16x64xf32> -> vector<16x64xf32>
    %c0_65 = arith.constant 0 : index
    %c0_66 = arith.constant 0 : index
    %c0_67 = arith.constant 0 : index
    %188 = vector.load %arg6[%c0_65, %c0_66, %c0_67] : memref<1x1x64xf32, #tpu.memory_space<vmem>>, vector<1x1x64xf32>
    %189 = vector.shape_cast %188 : vector<1x1x64xf32> to vector<1x64xf32>
    %190 = vector.broadcast %189 : vector<1x64xf32> to vector<16x64xf32>
    %191 = arith.addf %187, %190 : vector<16x64xf32>
    %cst_68 = arith.constant 0.000000e+00 : f32
    %192 = vector.broadcast %cst_68 : f32 to vector<16x64xf32>
    %193 = arith.maximumf %191, %192 : vector<16x64xf32>
    %c0_69 = arith.constant 0 : index
    %c0_70 = arith.constant 0 : index
    %c0_71 = arith.constant 0 : index
    %194 = vector.load %arg7[%c0_69, %c0_70, %c0_71] : memref<1x64x32xf32, #tpu.memory_space<vmem>>, vector<1x64x32xf32>
    %195 = vector.shape_cast %194 : vector<1x64x32xf32> to vector<64x32xf32>
    %cst_72 = arith.constant dense<0.000000e+00> : vector<16x32xf32>
    %196 = tpu.matmul %193, %195, %cst_72 {dimension_numbers = #tpu.dot_dimension_numbers<[1], [0], [0], [1], [0, 0, 1, 1], [], []>} : vector<16x64xf32>, vector<64x32xf32>, vector<16x32xf32> -> vector<16x32xf32>
    %197 = vector.extract_strided_slice %6 {offsets = [3, 0], sizes = [1, 32], strides = [1, 1]} : vector<6x32xf32> to vector<1x32xf32>
    %198 = vector.broadcast %197 : vector<1x32xf32> to vector<16x32xf32>
    %199 = arith.addf %196, %198 : vector<16x32xf32>
    %200 = arith.addf %184, %199 : vector<16x32xf32>
    %201 = vector.extract_strided_slice %6 {offsets = [4, 0], sizes = [1, 32], strides = [1, 1]} : vector<6x32xf32> to vector<1x32xf32>
    %202 = vector.extract_strided_slice %6 {offsets = [5, 0], sizes = [1, 32], strides = [1, 1]} : vector<6x32xf32> to vector<1x32xf32>
    %cst_73 = arith.constant dense<0.000000e+00> : vector<16xf32>
    %203 = vector.multi_reduction <add>, %200, %cst_73 [1] : vector<16x32xf32> to vector<16xf32>
    %204 = vector.shape_cast %203 : vector<16xf32> to vector<16x1xf32>
    %cst_74 = arith.constant 3.200000e+01 : f32
    %205 = vector.broadcast %cst_74 : f32 to vector<16x1xf32>
    %206 = arith.divf %204, %205 : vector<16x1xf32>
    %207 = vector.broadcast %206 : vector<16x1xf32> to vector<16x32xf32>
    %208 = arith.subf %200, %207 : vector<16x32xf32>
    %209 = arith.mulf %208, %208 : vector<16x32xf32>
    %cst_75 = arith.constant dense<0.000000e+00> : vector<16xf32>
    %210 = vector.multi_reduction <add>, %209, %cst_75 [1] : vector<16x32xf32> to vector<16xf32>
    %211 = vector.shape_cast %210 : vector<16xf32> to vector<16x1xf32>
    %cst_76 = arith.constant 3.200000e+01 : f32
    %212 = vector.broadcast %cst_76 : f32 to vector<16x1xf32>
    %213 = arith.divf %211, %212 : vector<16x1xf32>
    %214 = vector.broadcast %206 : vector<16x1xf32> to vector<16x32xf32>
    %215 = arith.subf %200, %214 : vector<16x32xf32>
    %cst_77 = arith.constant 9.99999974E-6 : f32
    %216 = vector.broadcast %cst_77 : f32 to vector<16x1xf32>
    %217 = arith.addf %213, %216 : vector<16x1xf32>
    %218 = math.rsqrt %217 : vector<16x1xf32>
    %219 = vector.broadcast %218 : vector<16x1xf32> to vector<16x32xf32>
    %220 = arith.mulf %215, %219 : vector<16x32xf32>
    %221 = vector.broadcast %201 : vector<1x32xf32> to vector<16x32xf32>
    %222 = arith.mulf %220, %221 : vector<16x32xf32>
    %223 = vector.broadcast %202 : vector<1x32xf32> to vector<16x32xf32>
    %224 = arith.addf %222, %223 : vector<16x32xf32>
    %c1_i32 = arith.constant 1 : i32
    %225 = arith.cmpi slt, %arg0, %c1_i32 : i32
    %226 = arith.extui %225 : i1 to i32
    %c0_i32_78 = arith.constant 0 : i32
    %227 = arith.cmpi ne, %226, %c0_i32_78 : i32
    scf.if %227 {
      %231 = vector.shape_cast %224 : vector<16x32xf32> to vector<2x8x32xf32>
      %c0_81 = arith.constant 0 : index
      %c0_82 = arith.constant 0 : index
      %c0_83 = arith.constant 0 : index
      %232 = vector.load %arg10[%c0_81, %c0_82, %c0_83] : memref<2x8x32xf32, #tpu.memory_space<vmem>>, vector<2x8x32xf32>
      tpu.vector_store %arg10[%c0_81, %c0_82, %c0_83], %231 {strides = array<i32>} : memref<2x8x32xf32, #tpu.memory_space<vmem>>, vector<2x8x32xf32>,
    } else {
    }
    %c1_i32_79 = arith.constant 1 : i32
    %228 = arith.cmpi eq, %arg0, %c1_i32_79 : i32
    %229 = arith.extui %228 : i1 to i32
    %c0_i32_80 = arith.constant 0 : i32
    %230 = arith.cmpi ne, %229, %c0_i32_80 : i32
    scf.if %230 {
      %c0_81 = arith.constant 0 : index
      %c0_82 = arith.constant 0 : index
      %231 = vector.load %arg9[%c0_81, %c0_82] : memref<2x32xf32, #tpu.memory_space<vmem>>, vector<2x32xf32>
      %232 = vector.extract_strided_slice %231 {offsets = [0, 0], sizes = [1, 32], strides = [1, 1]} : vector<2x32xf32> to vector<1x32xf32>
      %233 = vector.extract_strided_slice %231 {offsets = [1, 0], sizes = [1, 32], strides = [1, 1]} : vector<2x32xf32> to vector<1x32xf32>
      %cst_83 = arith.constant dense<0.000000e+00> : vector<16xf32>
      %234 = vector.multi_reduction <add>, %224, %cst_83 [1] : vector<16x32xf32> to vector<16xf32>
      %235 = vector.shape_cast %234 : vector<16xf32> to vector<16x1xf32>
      %cst_84 = arith.constant 3.200000e+01 : f32
      %236 = vector.broadcast %cst_84 : f32 to vector<16x1xf32>
      %237 = arith.divf %235, %236 : vector<16x1xf32>
      %238 = vector.broadcast %237 : vector<16x1xf32> to vector<16x32xf32>
      %239 = arith.subf %224, %238 : vector<16x32xf32>
      %240 = arith.mulf %239, %239 : vector<16x32xf32>
      %cst_85 = arith.constant dense<0.000000e+00> : vector<16xf32>
      %241 = vector.multi_reduction <add>, %240, %cst_85 [1] : vector<16x32xf32> to vector<16xf32>
      %242 = vector.shape_cast %241 : vector<16xf32> to vector<16x1xf32>
      %cst_86 = arith.constant 3.200000e+01 : f32
      %243 = vector.broadcast %cst_86 : f32 to vector<16x1xf32>
      %244 = arith.divf %242, %243 : vector<16x1xf32>
      %245 = vector.broadcast %237 : vector<16x1xf32> to vector<16x32xf32>
      %246 = arith.subf %224, %245 : vector<16x32xf32>
      %cst_87 = arith.constant 9.99999974E-6 : f32
      %247 = vector.broadcast %cst_87 : f32 to vector<16x1xf32>
      %248 = arith.addf %244, %247 : vector<16x1xf32>
      %249 = math.rsqrt %248 : vector<16x1xf32>
      %250 = vector.broadcast %249 : vector<16x1xf32> to vector<16x32xf32>
      %251 = arith.mulf %246, %250 : vector<16x32xf32>
      %252 = vector.broadcast %232 : vector<1x32xf32> to vector<16x32xf32>
      %253 = arith.mulf %251, %252 : vector<16x32xf32>
      %254 = vector.broadcast %233 : vector<1x32xf32> to vector<16x32xf32>
      %255 = arith.addf %253, %254 : vector<16x32xf32>
      %256 = vector.shape_cast %255 : vector<16x32xf32> to vector<2x8x32xf32>
      %c0_88 = arith.constant 0 : index
      %c0_89 = arith.constant 0 : index
      %c0_90 = arith.constant 0 : index
      %257 = vector.load %arg10[%c0_88, %c0_89, %c0_90] : memref<2x8x32xf32, #tpu.memory_space<vmem>>, vector<2x8x32xf32>
      tpu.vector_store %arg10[%c0_88, %c0_89, %c0_90], %256 {strides = array<i32>} : memref<2x8x32xf32, #tpu.memory_space<vmem>>, vector<2x8x32xf32>,
    } else {
    }
    return
  }
  func.func @transform_0(%arg0: i32) -> (i32, i32, i32) {
    %c0_i32 = arith.constant 0 : i32
    %c0_i32_0 = arith.constant 0 : i32
    %c0_i32_1 = arith.constant 0 : i32
    %c0_i32_2 = arith.constant 0 : i32
    return %c0_i32, %c0_i32_0, %c0_i32_1 : i32, i32, i32
  }
  func.func @transform_1(%arg0: i32) -> (i32, i32, i32) {
    %c0_i32 = arith.constant 0 : i32
    %c0_i32_0 = arith.constant 0 : i32
    %c0_i32_1 = arith.constant 0 : i32
    return %arg0, %c0_i32, %c0_i32_0 : i32, i32, i32
  }
  func.func @transform_2(%arg0: i32) -> (i32, i32, i32) {
    %c0_i32 = arith.constant 0 : i32
    %c0_i32_0 = arith.constant 0 : i32
    %c0_i32_1 = arith.constant 0 : i32
    return %arg0, %c0_i32, %c0_i32_0 : i32, i32, i32
  }
  func.func @transform_3(%arg0: i32) -> (i32, i32, i32) {
    %c0_i32 = arith.constant 0 : i32
    %c0_i32_0 = arith.constant 0 : i32
    %c0_i32_1 = arith.constant 0 : i32
    return %arg0, %c0_i32, %c0_i32_0 : i32, i32, i32
  }
  func.func @transform_4(%arg0: i32) -> (i32, i32, i32) {
    %c0_i32 = arith.constant 0 : i32
    %c0_i32_0 = arith.constant 0 : i32
    %c0_i32_1 = arith.constant 0 : i32
    return %arg0, %c0_i32, %c0_i32_0 : i32, i32, i32
  }
  func.func @transform_5(%arg0: i32) -> (i32, i32, i32) {
    %c0_i32 = arith.constant 0 : i32
    %c0_i32_0 = arith.constant 0 : i32
    %c0_i32_1 = arith.constant 0 : i32
    return %arg0, %c0_i32, %c0_i32_0 : i32, i32, i32
  }
  func.func @transform_6(%arg0: i32) -> (i32, i32, i32) {
    %c0_i32 = arith.constant 0 : i32
    %c0_i32_0 = arith.constant 0 : i32
    %c0_i32_1 = arith.constant 0 : i32
    return %arg0, %c0_i32, %c0_i32_0 : i32, i32, i32
  }
  func.func @transform_7(%arg0: i32) -> (i32, i32, i32) {
    %c0_i32 = arith.constant 0 : i32
    %c0_i32_0 = arith.constant 0 : i32
    %c0_i32_1 = arith.constant 0 : i32
    return %arg0, %c0_i32, %c0_i32_0 : i32, i32, i32
  }
  func.func @transform_8(%arg0: i32) -> (i32, i32) {
    %c0_i32 = arith.constant 0 : i32
    %c0_i32_0 = arith.constant 0 : i32
    %c0_i32_1 = arith.constant 0 : i32
    return %c0_i32, %c0_i32_0 : i32, i32
  }
  func.func @transform_9(%arg0: i32) -> (i32, i32, i32) {
    %c0_i32 = arith.constant 0 : i32
    %c0_i32_0 = arith.constant 0 : i32
    %c0_i32_1 = arith.constant 0 : i32
    %c0_i32_2 = arith.constant 0 : i32
    return %c0_i32, %c0_i32_0, %c0_i32_1 : i32, i32, i32
  }
}

module attributes {stable_mosaic.version = 11 : i64} {
  func.func @_decoder_stack_kernel(%arg0: i32, %arg1: memref<2x8x32xf32, #tpu.memory_space<vmem>>, %arg2: memref<2x8x32xf32, #tpu.memory_space<vmem>>, %arg3: memref<1x32x96xf32, #tpu.memory_space<vmem>>, %arg4: memref<1x1x96xf32, #tpu.memory_space<vmem>>, %arg5: memref<1x32x32xf32, #tpu.memory_space<vmem>>, %arg6: memref<1x32x32xf32, #tpu.memory_space<vmem>>, %arg7: memref<1x32x64xf32, #tpu.memory_space<vmem>>, %arg8: memref<1x1x64xf32, #tpu.memory_space<vmem>>, %arg9: memref<1x32x32xf32, #tpu.memory_space<vmem>>, %arg10: memref<1x32x64xf32, #tpu.memory_space<vmem>>, %arg11: memref<1x1x64xf32, #tpu.memory_space<vmem>>, %arg12: memref<1x64x32xf32, #tpu.memory_space<vmem>>, %arg13: memref<1x10x32xf32, #tpu.memory_space<vmem>>, %arg14: memref<2x32xf32, #tpu.memory_space<vmem>>, %arg15: memref<32x128xf32, #tpu.memory_space<vmem>>, %arg16: memref<1x128xf32, #tpu.memory_space<vmem>>, %arg17: memref<2x8x32xf32, #tpu.memory_space<vmem>>, %arg18: memref<2x8x128xf32, #tpu.memory_space<vmem>>) attributes {dimension_semantics = [#tpu.dimension_semantics<arbitrary>], iteration_bounds = array<i64: 2>, scalar_prefetch = 0 : i64, scratch_operands = 0 : i64, tpu.core_type = #tpu.core_type<tc>, window_params = [{pipeline_mode = #tpu.pipeline_mode<synchronous>, transform_indices = @transform_0, window_bounds = array<i64: 2, 8, 32>}, {pipeline_mode = #tpu.pipeline_mode<synchronous>, transform_indices = @transform_1, window_bounds = array<i64: 2, 8, 32>}, {transform_indices = @transform_2, window_bounds = array<i64: 1, 32, 96>}, {transform_indices = @transform_3, window_bounds = array<i64: 1, 1, 96>}, {transform_indices = @transform_4, window_bounds = array<i64: 1, 32, 32>}, {transform_indices = @transform_5, window_bounds = array<i64: 1, 32, 32>}, {transform_indices = @transform_6, window_bounds = array<i64: 1, 32, 64>}, {transform_indices = @transform_7, window_bounds = array<i64: 1, 1, 64>}, {transform_indices = @transform_8, window_bounds = array<i64: 1, 32, 32>}, {transform_indices = @transform_9, window_bounds = array<i64: 1, 32, 64>}, {transform_indices = @transform_10, window_bounds = array<i64: 1, 1, 64>}, {transform_indices = @transform_11, window_bounds = array<i64: 1, 64, 32>}, {transform_indices = @transform_12, window_bounds = array<i64: 1, 10, 32>}, {pipeline_mode = #tpu.pipeline_mode<synchronous>, transform_indices = @transform_13, window_bounds = array<i64: 2, 32>}, {pipeline_mode = #tpu.pipeline_mode<synchronous>, transform_indices = @transform_14, window_bounds = array<i64: 32, 128>}, {pipeline_mode = #tpu.pipeline_mode<synchronous>, transform_indices = @transform_15, window_bounds = array<i64: 1, 128>}, {pipeline_mode = #tpu.pipeline_mode<synchronous>, transform_indices = @transform_16, window_bounds = array<i64: 2, 8, 32>}, {pipeline_mode = #tpu.pipeline_mode<synchronous>, transform_indices = @transform_17, window_bounds = array<i64: 2, 8, 128>}]} {
    %c0_i32 = arith.constant 0 : i32
    %0 = arith.cmpi eq, %arg0, %c0_i32 : i32
    %1 = arith.extui %0 : i1 to i32
    %c0_i32_0 = arith.constant 0 : i32
    %2 = arith.cmpi ne, %1, %c0_i32_0 : i32
    scf.if %2 {
      %c0_145 = arith.constant 0 : index
      %c0_146 = arith.constant 0 : index
      %c0_147 = arith.constant 0 : index
      %415 = vector.load %arg1[%c0_145, %c0_146, %c0_147] : memref<2x8x32xf32, #tpu.memory_space<vmem>>, vector<2x8x32xf32>
      %c0_148 = arith.constant 0 : index
      %c0_149 = arith.constant 0 : index
      %c0_150 = arith.constant 0 : index
      %416 = vector.load %arg17[%c0_148, %c0_149, %c0_150] : memref<2x8x32xf32, #tpu.memory_space<vmem>>, vector<2x8x32xf32>
      tpu.vector_store %arg17[%c0_148, %c0_149, %c0_150], %415 {strides = array<i32>} : memref<2x8x32xf32, #tpu.memory_space<vmem>>, vector<2x8x32xf32>,
    } else {
    }
    %c0 = arith.constant 0 : index
    %c0_1 = arith.constant 0 : index
    %c0_2 = arith.constant 0 : index
    %3 = vector.load %arg17[%c0, %c0_1, %c0_2] : memref<2x8x32xf32, #tpu.memory_space<vmem>>, vector<2x8x32xf32>
    %4 = vector.shape_cast %3 : vector<2x8x32xf32> to vector<16x32xf32>
    %c0_3 = arith.constant 0 : index
    %c0_4 = arith.constant 0 : index
    %c0_5 = arith.constant 0 : index
    %5 = vector.load %arg2[%c0_3, %c0_4, %c0_5] : memref<2x8x32xf32, #tpu.memory_space<vmem>>, vector<2x8x32xf32>
    %6 = vector.shape_cast %5 : vector<2x8x32xf32> to vector<16x32xf32>
    %c0_6 = arith.constant 0 : index
    %c0_7 = arith.constant 0 : index
    %c0_8 = arith.constant 0 : index
    %7 = vector.load %arg13[%c0_6, %c0_7, %c0_8] : memref<1x10x32xf32, #tpu.memory_space<vmem>>, vector<1x10x32xf32>
    %8 = vector.shape_cast %7 : vector<1x10x32xf32> to vector<10x32xf32>
    %c0_9 = arith.constant 0 : index
    %c0_10 = arith.constant 0 : index
    %c0_11 = arith.constant 0 : index
    %9 = vector.load %arg3[%c0_9, %c0_10, %c0_11] : memref<1x32x96xf32, #tpu.memory_space<vmem>>, vector<1x32x96xf32>
    %10 = vector.shape_cast %9 : vector<1x32x96xf32> to vector<32x96xf32>
    %cst = arith.constant dense<0.000000e+00> : vector<16x96xf32>
    %11 = tpu.matmul %4, %10, %cst {dimension_numbers = #tpu.dot_dimension_numbers<[1], [0], [0], [1], [0, 0, 1, 1], [], []>} : vector<16x32xf32>, vector<32x96xf32>, vector<16x96xf32> -> vector<16x96xf32>
    %c0_12 = arith.constant 0 : index
    %c0_13 = arith.constant 0 : index
    %c0_14 = arith.constant 0 : index
    %12 = vector.load %arg4[%c0_12, %c0_13, %c0_14] : memref<1x1x96xf32, #tpu.memory_space<vmem>>, vector<1x1x96xf32>
    %13 = vector.shape_cast %12 : vector<1x1x96xf32> to vector<1x96xf32>
    %14 = vector.broadcast %13 : vector<1x96xf32> to vector<16x96xf32>
    %15 = arith.addf %11, %14 : vector<16x96xf32>
    %16 = vector.extract_strided_slice %15 {offsets = [0, 0], sizes = [16, 32], strides = [1, 1]} : vector<16x96xf32> to vector<16x32xf32>
    %17 = vector.extract_strided_slice %15 {offsets = [0, 32], sizes = [16, 32], strides = [1, 1]} : vector<16x96xf32> to vector<16x32xf32>
    %18 = vector.extract_strided_slice %15 {offsets = [0, 64], sizes = [16, 32], strides = [1, 1]} : vector<16x96xf32> to vector<16x32xf32>
    %19 = vector.extract_strided_slice %16 {offsets = [0, 0], sizes = [8, 32], strides = [1, 1]} : vector<16x32xf32> to vector<8x32xf32>
    %20 = vector.extract_strided_slice %17 {offsets = [0, 0], sizes = [8, 32], strides = [1, 1]} : vector<16x32xf32> to vector<8x32xf32>
    %21 = vector.extract_strided_slice %18 {offsets = [0, 0], sizes = [8, 32], strides = [1, 1]} : vector<16x32xf32> to vector<8x32xf32>
    %22 = vector.extract_strided_slice %19 {offsets = [0, 0], sizes = [8, 8], strides = [1, 1]} : vector<8x32xf32> to vector<8x8xf32>
    %cst_15 = arith.constant 0.353553385 : f32
    %23 = vector.broadcast %cst_15 : f32 to vector<8x8xf32>
    %24 = arith.mulf %22, %23 : vector<8x8xf32>
    %25 = vector.extract_strided_slice %20 {offsets = [0, 0], sizes = [8, 8], strides = [1, 1]} : vector<8x32xf32> to vector<8x8xf32>
    %26 = vector.extract_strided_slice %21 {offsets = [0, 0], sizes = [8, 8], strides = [1, 1]} : vector<8x32xf32> to vector<8x8xf32>
    %cst_16 = arith.constant dense<0.000000e+00> : vector<8x8xf32>
    %27 = tpu.matmul %24, %25, %cst_16 {dimension_numbers = #tpu.dot_dimension_numbers<[1], [1], [0], [0], [0, 0, 1, 0], [], []>} : vector<8x8xf32>, vector<8x8xf32>, vector<8x8xf32> -> vector<8x8xf32>
    %cst_17 = arith.constant dense<0xFF800000> : vector<8xf32>
    %28 = vector.multi_reduction <maximumf>, %27, %cst_17 [1] : vector<8x8xf32> to vector<8xf32>
    %29 = vector.shape_cast %28 : vector<8xf32> to vector<8x1xf32>
    %30 = vector.broadcast %29 : vector<8x1xf32> to vector<8x8xf32>
    %31 = arith.subf %27, %30 : vector<8x8xf32>
    %32 = math.exp %31 : vector<8x8xf32>
    %cst_18 = arith.constant dense<0.000000e+00> : vector<8xf32>
    %33 = vector.multi_reduction <add>, %32, %cst_18 [1] : vector<8x8xf32> to vector<8xf32>
    %34 = vector.shape_cast %33 : vector<8xf32> to vector<8x1xf32>
    %35 = vector.broadcast %34 : vector<8x1xf32> to vector<8x8xf32>
    %36 = arith.divf %32, %35 : vector<8x8xf32>
    %cst_19 = arith.constant dense<0.000000e+00> : vector<8x8xf32>
    %37 = tpu.matmul %36, %26, %cst_19 {dimension_numbers = #tpu.dot_dimension_numbers<[1], [0], [0], [1], [0, 0, 1, 1], [], []>} : vector<8x8xf32>, vector<8x8xf32>, vector<8x8xf32> -> vector<8x8xf32>
    %38 = vector.extract_strided_slice %19 {offsets = [0, 8], sizes = [8, 8], strides = [1, 1]} : vector<8x32xf32> to vector<8x8xf32>
    %cst_20 = arith.constant 0.353553385 : f32
    %39 = vector.broadcast %cst_20 : f32 to vector<8x8xf32>
    %40 = arith.mulf %38, %39 : vector<8x8xf32>
    %41 = vector.extract_strided_slice %20 {offsets = [0, 8], sizes = [8, 8], strides = [1, 1]} : vector<8x32xf32> to vector<8x8xf32>
    %42 = vector.extract_strided_slice %21 {offsets = [0, 8], sizes = [8, 8], strides = [1, 1]} : vector<8x32xf32> to vector<8x8xf32>
    %cst_21 = arith.constant dense<0.000000e+00> : vector<8x8xf32>
    %43 = tpu.matmul %40, %41, %cst_21 {dimension_numbers = #tpu.dot_dimension_numbers<[1], [1], [0], [0], [0, 0, 1, 0], [], []>} : vector<8x8xf32>, vector<8x8xf32>, vector<8x8xf32> -> vector<8x8xf32>
    %cst_22 = arith.constant dense<0xFF800000> : vector<8xf32>
    %44 = vector.multi_reduction <maximumf>, %43, %cst_22 [1] : vector<8x8xf32> to vector<8xf32>
    %45 = vector.shape_cast %44 : vector<8xf32> to vector<8x1xf32>
    %46 = vector.broadcast %45 : vector<8x1xf32> to vector<8x8xf32>
    %47 = arith.subf %43, %46 : vector<8x8xf32>
    %48 = math.exp %47 : vector<8x8xf32>
    %cst_23 = arith.constant dense<0.000000e+00> : vector<8xf32>
    %49 = vector.multi_reduction <add>, %48, %cst_23 [1] : vector<8x8xf32> to vector<8xf32>
    %50 = vector.shape_cast %49 : vector<8xf32> to vector<8x1xf32>
    %51 = vector.broadcast %50 : vector<8x1xf32> to vector<8x8xf32>
    %52 = arith.divf %48, %51 : vector<8x8xf32>
    %cst_24 = arith.constant dense<0.000000e+00> : vector<8x8xf32>
    %53 = tpu.matmul %52, %42, %cst_24 {dimension_numbers = #tpu.dot_dimension_numbers<[1], [0], [0], [1], [0, 0, 1, 1], [], []>} : vector<8x8xf32>, vector<8x8xf32>, vector<8x8xf32> -> vector<8x8xf32>
    %54 = vector.extract_strided_slice %19 {offsets = [0, 16], sizes = [8, 8], strides = [1, 1]} : vector<8x32xf32> to vector<8x8xf32>
    %cst_25 = arith.constant 0.353553385 : f32
    %55 = vector.broadcast %cst_25 : f32 to vector<8x8xf32>
    %56 = arith.mulf %54, %55 : vector<8x8xf32>
    %57 = vector.extract_strided_slice %20 {offsets = [0, 16], sizes = [8, 8], strides = [1, 1]} : vector<8x32xf32> to vector<8x8xf32>
    %58 = vector.extract_strided_slice %21 {offsets = [0, 16], sizes = [8, 8], strides = [1, 1]} : vector<8x32xf32> to vector<8x8xf32>
    %cst_26 = arith.constant dense<0.000000e+00> : vector<8x8xf32>
    %59 = tpu.matmul %56, %57, %cst_26 {dimension_numbers = #tpu.dot_dimension_numbers<[1], [1], [0], [0], [0, 0, 1, 0], [], []>} : vector<8x8xf32>, vector<8x8xf32>, vector<8x8xf32> -> vector<8x8xf32>
    %cst_27 = arith.constant dense<0xFF800000> : vector<8xf32>
    %60 = vector.multi_reduction <maximumf>, %59, %cst_27 [1] : vector<8x8xf32> to vector<8xf32>
    %61 = vector.shape_cast %60 : vector<8xf32> to vector<8x1xf32>
    %62 = vector.broadcast %61 : vector<8x1xf32> to vector<8x8xf32>
    %63 = arith.subf %59, %62 : vector<8x8xf32>
    %64 = math.exp %63 : vector<8x8xf32>
    %cst_28 = arith.constant dense<0.000000e+00> : vector<8xf32>
    %65 = vector.multi_reduction <add>, %64, %cst_28 [1] : vector<8x8xf32> to vector<8xf32>
    %66 = vector.shape_cast %65 : vector<8xf32> to vector<8x1xf32>
    %67 = vector.broadcast %66 : vector<8x1xf32> to vector<8x8xf32>
    %68 = arith.divf %64, %67 : vector<8x8xf32>
    %cst_29 = arith.constant dense<0.000000e+00> : vector<8x8xf32>
    %69 = tpu.matmul %68, %58, %cst_29 {dimension_numbers = #tpu.dot_dimension_numbers<[1], [0], [0], [1], [0, 0, 1, 1], [], []>} : vector<8x8xf32>, vector<8x8xf32>, vector<8x8xf32> -> vector<8x8xf32>
    %70 = vector.extract_strided_slice %19 {offsets = [0, 24], sizes = [8, 8], strides = [1, 1]} : vector<8x32xf32> to vector<8x8xf32>
    %cst_30 = arith.constant 0.353553385 : f32
    %71 = vector.broadcast %cst_30 : f32 to vector<8x8xf32>
    %72 = arith.mulf %70, %71 : vector<8x8xf32>
    %73 = vector.extract_strided_slice %20 {offsets = [0, 24], sizes = [8, 8], strides = [1, 1]} : vector<8x32xf32> to vector<8x8xf32>
    %74 = vector.extract_strided_slice %21 {offsets = [0, 24], sizes = [8, 8], strides = [1, 1]} : vector<8x32xf32> to vector<8x8xf32>
    %cst_31 = arith.constant dense<0.000000e+00> : vector<8x8xf32>
    %75 = tpu.matmul %72, %73, %cst_31 {dimension_numbers = #tpu.dot_dimension_numbers<[1], [1], [0], [0], [0, 0, 1, 0], [], []>} : vector<8x8xf32>, vector<8x8xf32>, vector<8x8xf32> -> vector<8x8xf32>
    %cst_32 = arith.constant dense<0xFF800000> : vector<8xf32>
    %76 = vector.multi_reduction <maximumf>, %75, %cst_32 [1] : vector<8x8xf32> to vector<8xf32>
    %77 = vector.shape_cast %76 : vector<8xf32> to vector<8x1xf32>
    %78 = vector.broadcast %77 : vector<8x1xf32> to vector<8x8xf32>
    %79 = arith.subf %75, %78 : vector<8x8xf32>
    %80 = math.exp %79 : vector<8x8xf32>
    %cst_33 = arith.constant dense<0.000000e+00> : vector<8xf32>
    %81 = vector.multi_reduction <add>, %80, %cst_33 [1] : vector<8x8xf32> to vector<8xf32>
    %82 = vector.shape_cast %81 : vector<8xf32> to vector<8x1xf32>
    %83 = vector.broadcast %82 : vector<8x1xf32> to vector<8x8xf32>
    %84 = arith.divf %80, %83 : vector<8x8xf32>
    %cst_34 = arith.constant dense<0.000000e+00> : vector<8x8xf32>
    %85 = tpu.matmul %84, %74, %cst_34 {dimension_numbers = #tpu.dot_dimension_numbers<[1], [0], [0], [1], [0, 0, 1, 1], [], []>} : vector<8x8xf32>, vector<8x8xf32>, vector<8x8xf32> -> vector<8x8xf32>
    %86 = tpu.concatenate %37, %53, %69, %85 in 1 : vector<8x8xf32>, vector<8x8xf32>, vector<8x8xf32>, vector<8x8xf32> -> vector<8x32xf32>
    %87 = vector.extract_strided_slice %16 {offsets = [8, 0], sizes = [8, 32], strides = [1, 1]} : vector<16x32xf32> to vector<8x32xf32>
    %88 = vector.extract_strided_slice %17 {offsets = [8, 0], sizes = [8, 32], strides = [1, 1]} : vector<16x32xf32> to vector<8x32xf32>
    %89 = vector.extract_strided_slice %18 {offsets = [8, 0], sizes = [8, 32], strides = [1, 1]} : vector<16x32xf32> to vector<8x32xf32>
    %90 = vector.extract_strided_slice %87 {offsets = [0, 0], sizes = [8, 8], strides = [1, 1]} : vector<8x32xf32> to vector<8x8xf32>
    %cst_35 = arith.constant 0.353553385 : f32
    %91 = vector.broadcast %cst_35 : f32 to vector<8x8xf32>
    %92 = arith.mulf %90, %91 : vector<8x8xf32>
    %93 = vector.extract_strided_slice %88 {offsets = [0, 0], sizes = [8, 8], strides = [1, 1]} : vector<8x32xf32> to vector<8x8xf32>
    %94 = vector.extract_strided_slice %89 {offsets = [0, 0], sizes = [8, 8], strides = [1, 1]} : vector<8x32xf32> to vector<8x8xf32>
    %cst_36 = arith.constant dense<0.000000e+00> : vector<8x8xf32>
    %95 = tpu.matmul %92, %93, %cst_36 {dimension_numbers = #tpu.dot_dimension_numbers<[1], [1], [0], [0], [0, 0, 1, 0], [], []>} : vector<8x8xf32>, vector<8x8xf32>, vector<8x8xf32> -> vector<8x8xf32>
    %cst_37 = arith.constant dense<0xFF800000> : vector<8xf32>
    %96 = vector.multi_reduction <maximumf>, %95, %cst_37 [1] : vector<8x8xf32> to vector<8xf32>
    %97 = vector.shape_cast %96 : vector<8xf32> to vector<8x1xf32>
    %98 = vector.broadcast %97 : vector<8x1xf32> to vector<8x8xf32>
    %99 = arith.subf %95, %98 : vector<8x8xf32>
    %100 = math.exp %99 : vector<8x8xf32>
    %cst_38 = arith.constant dense<0.000000e+00> : vector<8xf32>
    %101 = vector.multi_reduction <add>, %100, %cst_38 [1] : vector<8x8xf32> to vector<8xf32>
    %102 = vector.shape_cast %101 : vector<8xf32> to vector<8x1xf32>
    %103 = vector.broadcast %102 : vector<8x1xf32> to vector<8x8xf32>
    %104 = arith.divf %100, %103 : vector<8x8xf32>
    %cst_39 = arith.constant dense<0.000000e+00> : vector<8x8xf32>
    %105 = tpu.matmul %104, %94, %cst_39 {dimension_numbers = #tpu.dot_dimension_numbers<[1], [0], [0], [1], [0, 0, 1, 1], [], []>} : vector<8x8xf32>, vector<8x8xf32>, vector<8x8xf32> -> vector<8x8xf32>
    %106 = vector.extract_strided_slice %87 {offsets = [0, 8], sizes = [8, 8], strides = [1, 1]} : vector<8x32xf32> to vector<8x8xf32>
    %cst_40 = arith.constant 0.353553385 : f32
    %107 = vector.broadcast %cst_40 : f32 to vector<8x8xf32>
    %108 = arith.mulf %106, %107 : vector<8x8xf32>
    %109 = vector.extract_strided_slice %88 {offsets = [0, 8], sizes = [8, 8], strides = [1, 1]} : vector<8x32xf32> to vector<8x8xf32>
    %110 = vector.extract_strided_slice %89 {offsets = [0, 8], sizes = [8, 8], strides = [1, 1]} : vector<8x32xf32> to vector<8x8xf32>
    %cst_41 = arith.constant dense<0.000000e+00> : vector<8x8xf32>
    %111 = tpu.matmul %108, %109, %cst_41 {dimension_numbers = #tpu.dot_dimension_numbers<[1], [1], [0], [0], [0, 0, 1, 0], [], []>} : vector<8x8xf32>, vector<8x8xf32>, vector<8x8xf32> -> vector<8x8xf32>
    %cst_42 = arith.constant dense<0xFF800000> : vector<8xf32>
    %112 = vector.multi_reduction <maximumf>, %111, %cst_42 [1] : vector<8x8xf32> to vector<8xf32>
    %113 = vector.shape_cast %112 : vector<8xf32> to vector<8x1xf32>
    %114 = vector.broadcast %113 : vector<8x1xf32> to vector<8x8xf32>
    %115 = arith.subf %111, %114 : vector<8x8xf32>
    %116 = math.exp %115 : vector<8x8xf32>
    %cst_43 = arith.constant dense<0.000000e+00> : vector<8xf32>
    %117 = vector.multi_reduction <add>, %116, %cst_43 [1] : vector<8x8xf32> to vector<8xf32>
    %118 = vector.shape_cast %117 : vector<8xf32> to vector<8x1xf32>
    %119 = vector.broadcast %118 : vector<8x1xf32> to vector<8x8xf32>
    %120 = arith.divf %116, %119 : vector<8x8xf32>
    %cst_44 = arith.constant dense<0.000000e+00> : vector<8x8xf32>
    %121 = tpu.matmul %120, %110, %cst_44 {dimension_numbers = #tpu.dot_dimension_numbers<[1], [0], [0], [1], [0, 0, 1, 1], [], []>} : vector<8x8xf32>, vector<8x8xf32>, vector<8x8xf32> -> vector<8x8xf32>
    %122 = vector.extract_strided_slice %87 {offsets = [0, 16], sizes = [8, 8], strides = [1, 1]} : vector<8x32xf32> to vector<8x8xf32>
    %cst_45 = arith.constant 0.353553385 : f32
    %123 = vector.broadcast %cst_45 : f32 to vector<8x8xf32>
    %124 = arith.mulf %122, %123 : vector<8x8xf32>
    %125 = vector.extract_strided_slice %88 {offsets = [0, 16], sizes = [8, 8], strides = [1, 1]} : vector<8x32xf32> to vector<8x8xf32>
    %126 = vector.extract_strided_slice %89 {offsets = [0, 16], sizes = [8, 8], strides = [1, 1]} : vector<8x32xf32> to vector<8x8xf32>
    %cst_46 = arith.constant dense<0.000000e+00> : vector<8x8xf32>
    %127 = tpu.matmul %124, %125, %cst_46 {dimension_numbers = #tpu.dot_dimension_numbers<[1], [1], [0], [0], [0, 0, 1, 0], [], []>} : vector<8x8xf32>, vector<8x8xf32>, vector<8x8xf32> -> vector<8x8xf32>
    %cst_47 = arith.constant dense<0xFF800000> : vector<8xf32>
    %128 = vector.multi_reduction <maximumf>, %127, %cst_47 [1] : vector<8x8xf32> to vector<8xf32>
    %129 = vector.shape_cast %128 : vector<8xf32> to vector<8x1xf32>
    %130 = vector.broadcast %129 : vector<8x1xf32> to vector<8x8xf32>
    %131 = arith.subf %127, %130 : vector<8x8xf32>
    %132 = math.exp %131 : vector<8x8xf32>
    %cst_48 = arith.constant dense<0.000000e+00> : vector<8xf32>
    %133 = vector.multi_reduction <add>, %132, %cst_48 [1] : vector<8x8xf32> to vector<8xf32>
    %134 = vector.shape_cast %133 : vector<8xf32> to vector<8x1xf32>
    %135 = vector.broadcast %134 : vector<8x1xf32> to vector<8x8xf32>
    %136 = arith.divf %132, %135 : vector<8x8xf32>
    %cst_49 = arith.constant dense<0.000000e+00> : vector<8x8xf32>
    %137 = tpu.matmul %136, %126, %cst_49 {dimension_numbers = #tpu.dot_dimension_numbers<[1], [0], [0], [1], [0, 0, 1, 1], [], []>} : vector<8x8xf32>, vector<8x8xf32>, vector<8x8xf32> -> vector<8x8xf32>
    %138 = vector.extract_strided_slice %87 {offsets = [0, 24], sizes = [8, 8], strides = [1, 1]} : vector<8x32xf32> to vector<8x8xf32>
    %cst_50 = arith.constant 0.353553385 : f32
    %139 = vector.broadcast %cst_50 : f32 to vector<8x8xf32>
    %140 = arith.mulf %138, %139 : vector<8x8xf32>
    %141 = vector.extract_strided_slice %88 {offsets = [0, 24], sizes = [8, 8], strides = [1, 1]} : vector<8x32xf32> to vector<8x8xf32>
    %142 = vector.extract_strided_slice %89 {offsets = [0, 24], sizes = [8, 8], strides = [1, 1]} : vector<8x32xf32> to vector<8x8xf32>
    %cst_51 = arith.constant dense<0.000000e+00> : vector<8x8xf32>
    %143 = tpu.matmul %140, %141, %cst_51 {dimension_numbers = #tpu.dot_dimension_numbers<[1], [1], [0], [0], [0, 0, 1, 0], [], []>} : vector<8x8xf32>, vector<8x8xf32>, vector<8x8xf32> -> vector<8x8xf32>
    %cst_52 = arith.constant dense<0xFF800000> : vector<8xf32>
    %144 = vector.multi_reduction <maximumf>, %143, %cst_52 [1] : vector<8x8xf32> to vector<8xf32>
    %145 = vector.shape_cast %144 : vector<8xf32> to vector<8x1xf32>
    %146 = vector.broadcast %145 : vector<8x1xf32> to vector<8x8xf32>
    %147 = arith.subf %143, %146 : vector<8x8xf32>
    %148 = math.exp %147 : vector<8x8xf32>
    %cst_53 = arith.constant dense<0.000000e+00> : vector<8xf32>
    %149 = vector.multi_reduction <add>, %148, %cst_53 [1] : vector<8x8xf32> to vector<8xf32>
    %150 = vector.shape_cast %149 : vector<8xf32> to vector<8x1xf32>
    %151 = vector.broadcast %150 : vector<8x1xf32> to vector<8x8xf32>
    %152 = arith.divf %148, %151 : vector<8x8xf32>
    %cst_54 = arith.constant dense<0.000000e+00> : vector<8x8xf32>
    %153 = tpu.matmul %152, %142, %cst_54 {dimension_numbers = #tpu.dot_dimension_numbers<[1], [0], [0], [1], [0, 0, 1, 1], [], []>} : vector<8x8xf32>, vector<8x8xf32>, vector<8x8xf32> -> vector<8x8xf32>
    %154 = tpu.concatenate %105, %121, %137, %153 in 1 : vector<8x8xf32>, vector<8x8xf32>, vector<8x8xf32>, vector<8x8xf32> -> vector<8x32xf32>
    %155 = tpu.concatenate %86, %154 in 0 : vector<8x32xf32>, vector<8x32xf32> -> vector<16x32xf32>
    %c0_55 = arith.constant 0 : index
    %c0_56 = arith.constant 0 : index
    %c0_57 = arith.constant 0 : index
    %156 = vector.load %arg5[%c0_55, %c0_56, %c0_57] : memref<1x32x32xf32, #tpu.memory_space<vmem>>, vector<1x32x32xf32>
    %157 = vector.shape_cast %156 : vector<1x32x32xf32> to vector<32x32xf32>
    %cst_58 = arith.constant dense<0.000000e+00> : vector<16x32xf32>
    %158 = tpu.matmul %155, %157, %cst_58 {dimension_numbers = #tpu.dot_dimension_numbers<[1], [0], [0], [1], [0, 0, 1, 1], [], []>} : vector<16x32xf32>, vector<32x32xf32>, vector<16x32xf32> -> vector<16x32xf32>
    %159 = vector.extract_strided_slice %8 {offsets = [0, 0], sizes = [1, 32], strides = [1, 1]} : vector<10x32xf32> to vector<1x32xf32>
    %160 = vector.broadcast %159 : vector<1x32xf32> to vector<16x32xf32>
    %161 = arith.addf %158, %160 : vector<16x32xf32>
    %162 = arith.addf %4, %161 : vector<16x32xf32>
    %163 = vector.extract_strided_slice %8 {offsets = [1, 0], sizes = [1, 32], strides = [1, 1]} : vector<10x32xf32> to vector<1x32xf32>
    %164 = vector.extract_strided_slice %8 {offsets = [2, 0], sizes = [1, 32], strides = [1, 1]} : vector<10x32xf32> to vector<1x32xf32>
    %cst_59 = arith.constant dense<0.000000e+00> : vector<16xf32>
    %165 = vector.multi_reduction <add>, %162, %cst_59 [1] : vector<16x32xf32> to vector<16xf32>
    %166 = vector.shape_cast %165 : vector<16xf32> to vector<16x1xf32>
    %cst_60 = arith.constant 3.200000e+01 : f32
    %167 = vector.broadcast %cst_60 : f32 to vector<16x1xf32>
    %168 = arith.divf %166, %167 : vector<16x1xf32>
    %169 = vector.broadcast %168 : vector<16x1xf32> to vector<16x32xf32>
    %170 = arith.subf %162, %169 : vector<16x32xf32>
    %171 = arith.mulf %170, %170 : vector<16x32xf32>
    %cst_61 = arith.constant dense<0.000000e+00> : vector<16xf32>
    %172 = vector.multi_reduction <add>, %171, %cst_61 [1] : vector<16x32xf32> to vector<16xf32>
    %173 = vector.shape_cast %172 : vector<16xf32> to vector<16x1xf32>
    %cst_62 = arith.constant 3.200000e+01 : f32
    %174 = vector.broadcast %cst_62 : f32 to vector<16x1xf32>
    %175 = arith.divf %173, %174 : vector<16x1xf32>
    %176 = vector.broadcast %168 : vector<16x1xf32> to vector<16x32xf32>
    %177 = arith.subf %162, %176 : vector<16x32xf32>
    %cst_63 = arith.constant 9.99999974E-6 : f32
    %178 = vector.broadcast %cst_63 : f32 to vector<16x1xf32>
    %179 = arith.addf %175, %178 : vector<16x1xf32>
    %180 = math.rsqrt %179 : vector<16x1xf32>
    %181 = vector.broadcast %180 : vector<16x1xf32> to vector<16x32xf32>
    %182 = arith.mulf %177, %181 : vector<16x32xf32>
    %183 = vector.broadcast %163 : vector<1x32xf32> to vector<16x32xf32>
    %184 = arith.mulf %182, %183 : vector<16x32xf32>
    %185 = vector.broadcast %164 : vector<1x32xf32> to vector<16x32xf32>
    %186 = arith.addf %184, %185 : vector<16x32xf32>
    %c0_64 = arith.constant 0 : index
    %c0_65 = arith.constant 0 : index
    %c0_66 = arith.constant 0 : index
    %187 = vector.load %arg6[%c0_64, %c0_65, %c0_66] : memref<1x32x32xf32, #tpu.memory_space<vmem>>, vector<1x32x32xf32>
    %188 = vector.shape_cast %187 : vector<1x32x32xf32> to vector<32x32xf32>
    %cst_67 = arith.constant dense<0.000000e+00> : vector<16x32xf32>
    %189 = tpu.matmul %186, %188, %cst_67 {dimension_numbers = #tpu.dot_dimension_numbers<[1], [0], [0], [1], [0, 0, 1, 1], [], []>} : vector<16x32xf32>, vector<32x32xf32>, vector<16x32xf32> -> vector<16x32xf32>
    %190 = vector.extract_strided_slice %8 {offsets = [3, 0], sizes = [1, 32], strides = [1, 1]} : vector<10x32xf32> to vector<1x32xf32>
    %191 = vector.broadcast %190 : vector<1x32xf32> to vector<16x32xf32>
    %192 = arith.addf %189, %191 : vector<16x32xf32>
    %c0_68 = arith.constant 0 : index
    %c0_69 = arith.constant 0 : index
    %c0_70 = arith.constant 0 : index
    %193 = vector.load %arg7[%c0_68, %c0_69, %c0_70] : memref<1x32x64xf32, #tpu.memory_space<vmem>>, vector<1x32x64xf32>
    %194 = vector.shape_cast %193 : vector<1x32x64xf32> to vector<32x64xf32>
    %cst_71 = arith.constant dense<0.000000e+00> : vector<16x64xf32>
    %195 = tpu.matmul %6, %194, %cst_71 {dimension_numbers = #tpu.dot_dimension_numbers<[1], [0], [0], [1], [0, 0, 1, 1], [], []>} : vector<16x32xf32>, vector<32x64xf32>, vector<16x64xf32> -> vector<16x64xf32>
    %c0_72 = arith.constant 0 : index
    %c0_73 = arith.constant 0 : index
    %c0_74 = arith.constant 0 : index
    %196 = vector.load %arg8[%c0_72, %c0_73, %c0_74] : memref<1x1x64xf32, #tpu.memory_space<vmem>>, vector<1x1x64xf32>
    %197 = vector.shape_cast %196 : vector<1x1x64xf32> to vector<1x64xf32>
    %198 = vector.broadcast %197 : vector<1x64xf32> to vector<16x64xf32>
    %199 = arith.addf %195, %198 : vector<16x64xf32>
    %200 = vector.extract_strided_slice %199 {offsets = [0, 0], sizes = [16, 32], strides = [1, 1]} : vector<16x64xf32> to vector<16x32xf32>
    %201 = vector.extract_strided_slice %199 {offsets = [0, 32], sizes = [16, 32], strides = [1, 1]} : vector<16x64xf32> to vector<16x32xf32>
    %202 = vector.extract_strided_slice %192 {offsets = [0, 0], sizes = [8, 32], strides = [1, 1]} : vector<16x32xf32> to vector<8x32xf32>
    %203 = vector.extract_strided_slice %200 {offsets = [0, 0], sizes = [8, 32], strides = [1, 1]} : vector<16x32xf32> to vector<8x32xf32>
    %204 = vector.extract_strided_slice %201 {offsets = [0, 0], sizes = [8, 32], strides = [1, 1]} : vector<16x32xf32> to vector<8x32xf32>
    %205 = vector.extract_strided_slice %202 {offsets = [0, 0], sizes = [8, 8], strides = [1, 1]} : vector<8x32xf32> to vector<8x8xf32>
    %cst_75 = arith.constant 0.353553385 : f32
    %206 = vector.broadcast %cst_75 : f32 to vector<8x8xf32>
    %207 = arith.mulf %205, %206 : vector<8x8xf32>
    %208 = vector.extract_strided_slice %203 {offsets = [0, 0], sizes = [8, 8], strides = [1, 1]} : vector<8x32xf32> to vector<8x8xf32>
    %209 = vector.extract_strided_slice %204 {offsets = [0, 0], sizes = [8, 8], strides = [1, 1]} : vector<8x32xf32> to vector<8x8xf32>
    %cst_76 = arith.constant dense<0.000000e+00> : vector<8x8xf32>
    %210 = tpu.matmul %207, %208, %cst_76 {dimension_numbers = #tpu.dot_dimension_numbers<[1], [1], [0], [0], [0, 0, 1, 0], [], []>} : vector<8x8xf32>, vector<8x8xf32>, vector<8x8xf32> -> vector<8x8xf32>
    %cst_77 = arith.constant dense<0xFF800000> : vector<8xf32>
    %211 = vector.multi_reduction <maximumf>, %210, %cst_77 [1] : vector<8x8xf32> to vector<8xf32>
    %212 = vector.shape_cast %211 : vector<8xf32> to vector<8x1xf32>
    %213 = vector.broadcast %212 : vector<8x1xf32> to vector<8x8xf32>
    %214 = arith.subf %210, %213 : vector<8x8xf32>
    %215 = math.exp %214 : vector<8x8xf32>
    %cst_78 = arith.constant dense<0.000000e+00> : vector<8xf32>
    %216 = vector.multi_reduction <add>, %215, %cst_78 [1] : vector<8x8xf32> to vector<8xf32>
    %217 = vector.shape_cast %216 : vector<8xf32> to vector<8x1xf32>
    %218 = vector.broadcast %217 : vector<8x1xf32> to vector<8x8xf32>
    %219 = arith.divf %215, %218 : vector<8x8xf32>
    %cst_79 = arith.constant dense<0.000000e+00> : vector<8x8xf32>
    %220 = tpu.matmul %219, %209, %cst_79 {dimension_numbers = #tpu.dot_dimension_numbers<[1], [0], [0], [1], [0, 0, 1, 1], [], []>} : vector<8x8xf32>, vector<8x8xf32>, vector<8x8xf32> -> vector<8x8xf32>
    %221 = vector.extract_strided_slice %202 {offsets = [0, 8], sizes = [8, 8], strides = [1, 1]} : vector<8x32xf32> to vector<8x8xf32>
    %cst_80 = arith.constant 0.353553385 : f32
    %222 = vector.broadcast %cst_80 : f32 to vector<8x8xf32>
    %223 = arith.mulf %221, %222 : vector<8x8xf32>
    %224 = vector.extract_strided_slice %203 {offsets = [0, 8], sizes = [8, 8], strides = [1, 1]} : vector<8x32xf32> to vector<8x8xf32>
    %225 = vector.extract_strided_slice %204 {offsets = [0, 8], sizes = [8, 8], strides = [1, 1]} : vector<8x32xf32> to vector<8x8xf32>
    %cst_81 = arith.constant dense<0.000000e+00> : vector<8x8xf32>
    %226 = tpu.matmul %223, %224, %cst_81 {dimension_numbers = #tpu.dot_dimension_numbers<[1], [1], [0], [0], [0, 0, 1, 0], [], []>} : vector<8x8xf32>, vector<8x8xf32>, vector<8x8xf32> -> vector<8x8xf32>
    %cst_82 = arith.constant dense<0xFF800000> : vector<8xf32>
    %227 = vector.multi_reduction <maximumf>, %226, %cst_82 [1] : vector<8x8xf32> to vector<8xf32>
    %228 = vector.shape_cast %227 : vector<8xf32> to vector<8x1xf32>
    %229 = vector.broadcast %228 : vector<8x1xf32> to vector<8x8xf32>
    %230 = arith.subf %226, %229 : vector<8x8xf32>
    %231 = math.exp %230 : vector<8x8xf32>
    %cst_83 = arith.constant dense<0.000000e+00> : vector<8xf32>
    %232 = vector.multi_reduction <add>, %231, %cst_83 [1] : vector<8x8xf32> to vector<8xf32>
    %233 = vector.shape_cast %232 : vector<8xf32> to vector<8x1xf32>
    %234 = vector.broadcast %233 : vector<8x1xf32> to vector<8x8xf32>
    %235 = arith.divf %231, %234 : vector<8x8xf32>
    %cst_84 = arith.constant dense<0.000000e+00> : vector<8x8xf32>
    %236 = tpu.matmul %235, %225, %cst_84 {dimension_numbers = #tpu.dot_dimension_numbers<[1], [0], [0], [1], [0, 0, 1, 1], [], []>} : vector<8x8xf32>, vector<8x8xf32>, vector<8x8xf32> -> vector<8x8xf32>
    %237 = vector.extract_strided_slice %202 {offsets = [0, 16], sizes = [8, 8], strides = [1, 1]} : vector<8x32xf32> to vector<8x8xf32>
    %cst_85 = arith.constant 0.353553385 : f32
    %238 = vector.broadcast %cst_85 : f32 to vector<8x8xf32>
    %239 = arith.mulf %237, %238 : vector<8x8xf32>
    %240 = vector.extract_strided_slice %203 {offsets = [0, 16], sizes = [8, 8], strides = [1, 1]} : vector<8x32xf32> to vector<8x8xf32>
    %241 = vector.extract_strided_slice %204 {offsets = [0, 16], sizes = [8, 8], strides = [1, 1]} : vector<8x32xf32> to vector<8x8xf32>
    %cst_86 = arith.constant dense<0.000000e+00> : vector<8x8xf32>
    %242 = tpu.matmul %239, %240, %cst_86 {dimension_numbers = #tpu.dot_dimension_numbers<[1], [1], [0], [0], [0, 0, 1, 0], [], []>} : vector<8x8xf32>, vector<8x8xf32>, vector<8x8xf32> -> vector<8x8xf32>
    %cst_87 = arith.constant dense<0xFF800000> : vector<8xf32>
    %243 = vector.multi_reduction <maximumf>, %242, %cst_87 [1] : vector<8x8xf32> to vector<8xf32>
    %244 = vector.shape_cast %243 : vector<8xf32> to vector<8x1xf32>
    %245 = vector.broadcast %244 : vector<8x1xf32> to vector<8x8xf32>
    %246 = arith.subf %242, %245 : vector<8x8xf32>
    %247 = math.exp %246 : vector<8x8xf32>
    %cst_88 = arith.constant dense<0.000000e+00> : vector<8xf32>
    %248 = vector.multi_reduction <add>, %247, %cst_88 [1] : vector<8x8xf32> to vector<8xf32>
    %249 = vector.shape_cast %248 : vector<8xf32> to vector<8x1xf32>
    %250 = vector.broadcast %249 : vector<8x1xf32> to vector<8x8xf32>
    %251 = arith.divf %247, %250 : vector<8x8xf32>
    %cst_89 = arith.constant dense<0.000000e+00> : vector<8x8xf32>
    %252 = tpu.matmul %251, %241, %cst_89 {dimension_numbers = #tpu.dot_dimension_numbers<[1], [0], [0], [1], [0, 0, 1, 1], [], []>} : vector<8x8xf32>, vector<8x8xf32>, vector<8x8xf32> -> vector<8x8xf32>
    %253 = vector.extract_strided_slice %202 {offsets = [0, 24], sizes = [8, 8], strides = [1, 1]} : vector<8x32xf32> to vector<8x8xf32>
    %cst_90 = arith.constant 0.353553385 : f32
    %254 = vector.broadcast %cst_90 : f32 to vector<8x8xf32>
    %255 = arith.mulf %253, %254 : vector<8x8xf32>
    %256 = vector.extract_strided_slice %203 {offsets = [0, 24], sizes = [8, 8], strides = [1, 1]} : vector<8x32xf32> to vector<8x8xf32>
    %257 = vector.extract_strided_slice %204 {offsets = [0, 24], sizes = [8, 8], strides = [1, 1]} : vector<8x32xf32> to vector<8x8xf32>
    %cst_91 = arith.constant dense<0.000000e+00> : vector<8x8xf32>
    %258 = tpu.matmul %255, %256, %cst_91 {dimension_numbers = #tpu.dot_dimension_numbers<[1], [1], [0], [0], [0, 0, 1, 0], [], []>} : vector<8x8xf32>, vector<8x8xf32>, vector<8x8xf32> -> vector<8x8xf32>
    %cst_92 = arith.constant dense<0xFF800000> : vector<8xf32>
    %259 = vector.multi_reduction <maximumf>, %258, %cst_92 [1] : vector<8x8xf32> to vector<8xf32>
    %260 = vector.shape_cast %259 : vector<8xf32> to vector<8x1xf32>
    %261 = vector.broadcast %260 : vector<8x1xf32> to vector<8x8xf32>
    %262 = arith.subf %258, %261 : vector<8x8xf32>
    %263 = math.exp %262 : vector<8x8xf32>
    %cst_93 = arith.constant dense<0.000000e+00> : vector<8xf32>
    %264 = vector.multi_reduction <add>, %263, %cst_93 [1] : vector<8x8xf32> to vector<8xf32>
    %265 = vector.shape_cast %264 : vector<8xf32> to vector<8x1xf32>
    %266 = vector.broadcast %265 : vector<8x1xf32> to vector<8x8xf32>
    %267 = arith.divf %263, %266 : vector<8x8xf32>
    %cst_94 = arith.constant dense<0.000000e+00> : vector<8x8xf32>
    %268 = tpu.matmul %267, %257, %cst_94 {dimension_numbers = #tpu.dot_dimension_numbers<[1], [0], [0], [1], [0, 0, 1, 1], [], []>} : vector<8x8xf32>, vector<8x8xf32>, vector<8x8xf32> -> vector<8x8xf32>
    %269 = tpu.concatenate %220, %236, %252, %268 in 1 : vector<8x8xf32>, vector<8x8xf32>, vector<8x8xf32>, vector<8x8xf32> -> vector<8x32xf32>
    %270 = vector.extract_strided_slice %192 {offsets = [8, 0], sizes = [8, 32], strides = [1, 1]} : vector<16x32xf32> to vector<8x32xf32>
    %271 = vector.extract_strided_slice %200 {offsets = [8, 0], sizes = [8, 32], strides = [1, 1]} : vector<16x32xf32> to vector<8x32xf32>
    %272 = vector.extract_strided_slice %201 {offsets = [8, 0], sizes = [8, 32], strides = [1, 1]} : vector<16x32xf32> to vector<8x32xf32>
    %273 = vector.extract_strided_slice %270 {offsets = [0, 0], sizes = [8, 8], strides = [1, 1]} : vector<8x32xf32> to vector<8x8xf32>
    %cst_95 = arith.constant 0.353553385 : f32
    %274 = vector.broadcast %cst_95 : f32 to vector<8x8xf32>
    %275 = arith.mulf %273, %274 : vector<8x8xf32>
    %276 = vector.extract_strided_slice %271 {offsets = [0, 0], sizes = [8, 8], strides = [1, 1]} : vector<8x32xf32> to vector<8x8xf32>
    %277 = vector.extract_strided_slice %272 {offsets = [0, 0], sizes = [8, 8], strides = [1, 1]} : vector<8x32xf32> to vector<8x8xf32>
    %cst_96 = arith.constant dense<0.000000e+00> : vector<8x8xf32>
    %278 = tpu.matmul %275, %276, %cst_96 {dimension_numbers = #tpu.dot_dimension_numbers<[1], [1], [0], [0], [0, 0, 1, 0], [], []>} : vector<8x8xf32>, vector<8x8xf32>, vector<8x8xf32> -> vector<8x8xf32>
    %cst_97 = arith.constant dense<0xFF800000> : vector<8xf32>
    %279 = vector.multi_reduction <maximumf>, %278, %cst_97 [1] : vector<8x8xf32> to vector<8xf32>
    %280 = vector.shape_cast %279 : vector<8xf32> to vector<8x1xf32>
    %281 = vector.broadcast %280 : vector<8x1xf32> to vector<8x8xf32>
    %282 = arith.subf %278, %281 : vector<8x8xf32>
    %283 = math.exp %282 : vector<8x8xf32>
    %cst_98 = arith.constant dense<0.000000e+00> : vector<8xf32>
    %284 = vector.multi_reduction <add>, %283, %cst_98 [1] : vector<8x8xf32> to vector<8xf32>
    %285 = vector.shape_cast %284 : vector<8xf32> to vector<8x1xf32>
    %286 = vector.broadcast %285 : vector<8x1xf32> to vector<8x8xf32>
    %287 = arith.divf %283, %286 : vector<8x8xf32>
    %cst_99 = arith.constant dense<0.000000e+00> : vector<8x8xf32>
    %288 = tpu.matmul %287, %277, %cst_99 {dimension_numbers = #tpu.dot_dimension_numbers<[1], [0], [0], [1], [0, 0, 1, 1], [], []>} : vector<8x8xf32>, vector<8x8xf32>, vector<8x8xf32> -> vector<8x8xf32>
    %289 = vector.extract_strided_slice %270 {offsets = [0, 8], sizes = [8, 8], strides = [1, 1]} : vector<8x32xf32> to vector<8x8xf32>
    %cst_100 = arith.constant 0.353553385 : f32
    %290 = vector.broadcast %cst_100 : f32 to vector<8x8xf32>
    %291 = arith.mulf %289, %290 : vector<8x8xf32>
    %292 = vector.extract_strided_slice %271 {offsets = [0, 8], sizes = [8, 8], strides = [1, 1]} : vector<8x32xf32> to vector<8x8xf32>
    %293 = vector.extract_strided_slice %272 {offsets = [0, 8], sizes = [8, 8], strides = [1, 1]} : vector<8x32xf32> to vector<8x8xf32>
    %cst_101 = arith.constant dense<0.000000e+00> : vector<8x8xf32>
    %294 = tpu.matmul %291, %292, %cst_101 {dimension_numbers = #tpu.dot_dimension_numbers<[1], [1], [0], [0], [0, 0, 1, 0], [], []>} : vector<8x8xf32>, vector<8x8xf32>, vector<8x8xf32> -> vector<8x8xf32>
    %cst_102 = arith.constant dense<0xFF800000> : vector<8xf32>
    %295 = vector.multi_reduction <maximumf>, %294, %cst_102 [1] : vector<8x8xf32> to vector<8xf32>
    %296 = vector.shape_cast %295 : vector<8xf32> to vector<8x1xf32>
    %297 = vector.broadcast %296 : vector<8x1xf32> to vector<8x8xf32>
    %298 = arith.subf %294, %297 : vector<8x8xf32>
    %299 = math.exp %298 : vector<8x8xf32>
    %cst_103 = arith.constant dense<0.000000e+00> : vector<8xf32>
    %300 = vector.multi_reduction <add>, %299, %cst_103 [1] : vector<8x8xf32> to vector<8xf32>
    %301 = vector.shape_cast %300 : vector<8xf32> to vector<8x1xf32>
    %302 = vector.broadcast %301 : vector<8x1xf32> to vector<8x8xf32>
    %303 = arith.divf %299, %302 : vector<8x8xf32>
    %cst_104 = arith.constant dense<0.000000e+00> : vector<8x8xf32>
    %304 = tpu.matmul %303, %293, %cst_104 {dimension_numbers = #tpu.dot_dimension_numbers<[1], [0], [0], [1], [0, 0, 1, 1], [], []>} : vector<8x8xf32>, vector<8x8xf32>, vector<8x8xf32> -> vector<8x8xf32>
    %305 = vector.extract_strided_slice %270 {offsets = [0, 16], sizes = [8, 8], strides = [1, 1]} : vector<8x32xf32> to vector<8x8xf32>
    %cst_105 = arith.constant 0.353553385 : f32
    %306 = vector.broadcast %cst_105 : f32 to vector<8x8xf32>
    %307 = arith.mulf %305, %306 : vector<8x8xf32>
    %308 = vector.extract_strided_slice %271 {offsets = [0, 16], sizes = [8, 8], strides = [1, 1]} : vector<8x32xf32> to vector<8x8xf32>
    %309 = vector.extract_strided_slice %272 {offsets = [0, 16], sizes = [8, 8], strides = [1, 1]} : vector<8x32xf32> to vector<8x8xf32>
    %cst_106 = arith.constant dense<0.000000e+00> : vector<8x8xf32>
    %310 = tpu.matmul %307, %308, %cst_106 {dimension_numbers = #tpu.dot_dimension_numbers<[1], [1], [0], [0], [0, 0, 1, 0], [], []>} : vector<8x8xf32>, vector<8x8xf32>, vector<8x8xf32> -> vector<8x8xf32>
    %cst_107 = arith.constant dense<0xFF800000> : vector<8xf32>
    %311 = vector.multi_reduction <maximumf>, %310, %cst_107 [1] : vector<8x8xf32> to vector<8xf32>
    %312 = vector.shape_cast %311 : vector<8xf32> to vector<8x1xf32>
    %313 = vector.broadcast %312 : vector<8x1xf32> to vector<8x8xf32>
    %314 = arith.subf %310, %313 : vector<8x8xf32>
    %315 = math.exp %314 : vector<8x8xf32>
    %cst_108 = arith.constant dense<0.000000e+00> : vector<8xf32>
    %316 = vector.multi_reduction <add>, %315, %cst_108 [1] : vector<8x8xf32> to vector<8xf32>
    %317 = vector.shape_cast %316 : vector<8xf32> to vector<8x1xf32>
    %318 = vector.broadcast %317 : vector<8x1xf32> to vector<8x8xf32>
    %319 = arith.divf %315, %318 : vector<8x8xf32>
    %cst_109 = arith.constant dense<0.000000e+00> : vector<8x8xf32>
    %320 = tpu.matmul %319, %309, %cst_109 {dimension_numbers = #tpu.dot_dimension_numbers<[1], [0], [0], [1], [0, 0, 1, 1], [], []>} : vector<8x8xf32>, vector<8x8xf32>, vector<8x8xf32> -> vector<8x8xf32>
    %321 = vector.extract_strided_slice %270 {offsets = [0, 24], sizes = [8, 8], strides = [1, 1]} : vector<8x32xf32> to vector<8x8xf32>
    %cst_110 = arith.constant 0.353553385 : f32
    %322 = vector.broadcast %cst_110 : f32 to vector<8x8xf32>
    %323 = arith.mulf %321, %322 : vector<8x8xf32>
    %324 = vector.extract_strided_slice %271 {offsets = [0, 24], sizes = [8, 8], strides = [1, 1]} : vector<8x32xf32> to vector<8x8xf32>
    %325 = vector.extract_strided_slice %272 {offsets = [0, 24], sizes = [8, 8], strides = [1, 1]} : vector<8x32xf32> to vector<8x8xf32>
    %cst_111 = arith.constant dense<0.000000e+00> : vector<8x8xf32>
    %326 = tpu.matmul %323, %324, %cst_111 {dimension_numbers = #tpu.dot_dimension_numbers<[1], [1], [0], [0], [0, 0, 1, 0], [], []>} : vector<8x8xf32>, vector<8x8xf32>, vector<8x8xf32> -> vector<8x8xf32>
    %cst_112 = arith.constant dense<0xFF800000> : vector<8xf32>
    %327 = vector.multi_reduction <maximumf>, %326, %cst_112 [1] : vector<8x8xf32> to vector<8xf32>
    %328 = vector.shape_cast %327 : vector<8xf32> to vector<8x1xf32>
    %329 = vector.broadcast %328 : vector<8x1xf32> to vector<8x8xf32>
    %330 = arith.subf %326, %329 : vector<8x8xf32>
    %331 = math.exp %330 : vector<8x8xf32>
    %cst_113 = arith.constant dense<0.000000e+00> : vector<8xf32>
    %332 = vector.multi_reduction <add>, %331, %cst_113 [1] : vector<8x8xf32> to vector<8xf32>
    %333 = vector.shape_cast %332 : vector<8xf32> to vector<8x1xf32>
    %334 = vector.broadcast %333 : vector<8x1xf32> to vector<8x8xf32>
    %335 = arith.divf %331, %334 : vector<8x8xf32>
    %cst_114 = arith.constant dense<0.000000e+00> : vector<8x8xf32>
    %336 = tpu.matmul %335, %325, %cst_114 {dimension_numbers = #tpu.dot_dimension_numbers<[1], [0], [0], [1], [0, 0, 1, 1], [], []>} : vector<8x8xf32>, vector<8x8xf32>, vector<8x8xf32> -> vector<8x8xf32>
    %337 = tpu.concatenate %288, %304, %320, %336 in 1 : vector<8x8xf32>, vector<8x8xf32>, vector<8x8xf32>, vector<8x8xf32> -> vector<8x32xf32>
    %338 = tpu.concatenate %269, %337 in 0 : vector<8x32xf32>, vector<8x32xf32> -> vector<16x32xf32>
    %c0_115 = arith.constant 0 : index
    %c0_116 = arith.constant 0 : index
    %c0_117 = arith.constant 0 : index
    %339 = vector.load %arg9[%c0_115, %c0_116, %c0_117] : memref<1x32x32xf32, #tpu.memory_space<vmem>>, vector<1x32x32xf32>
    %340 = vector.shape_cast %339 : vector<1x32x32xf32> to vector<32x32xf32>
    %cst_118 = arith.constant dense<0.000000e+00> : vector<16x32xf32>
    %341 = tpu.matmul %338, %340, %cst_118 {dimension_numbers = #tpu.dot_dimension_numbers<[1], [0], [0], [1], [0, 0, 1, 1], [], []>} : vector<16x32xf32>, vector<32x32xf32>, vector<16x32xf32> -> vector<16x32xf32>
    %342 = vector.extract_strided_slice %8 {offsets = [4, 0], sizes = [1, 32], strides = [1, 1]} : vector<10x32xf32> to vector<1x32xf32>
    %343 = vector.broadcast %342 : vector<1x32xf32> to vector<16x32xf32>
    %344 = arith.addf %341, %343 : vector<16x32xf32>
    %345 = arith.addf %186, %344 : vector<16x32xf32>
    %346 = vector.extract_strided_slice %8 {offsets = [5, 0], sizes = [1, 32], strides = [1, 1]} : vector<10x32xf32> to vector<1x32xf32>
    %347 = vector.extract_strided_slice %8 {offsets = [6, 0], sizes = [1, 32], strides = [1, 1]} : vector<10x32xf32> to vector<1x32xf32>
    %cst_119 = arith.constant dense<0.000000e+00> : vector<16xf32>
    %348 = vector.multi_reduction <add>, %345, %cst_119 [1] : vector<16x32xf32> to vector<16xf32>
    %349 = vector.shape_cast %348 : vector<16xf32> to vector<16x1xf32>
    %cst_120 = arith.constant 3.200000e+01 : f32
    %350 = vector.broadcast %cst_120 : f32 to vector<16x1xf32>
    %351 = arith.divf %349, %350 : vector<16x1xf32>
    %352 = vector.broadcast %351 : vector<16x1xf32> to vector<16x32xf32>
    %353 = arith.subf %345, %352 : vector<16x32xf32>
    %354 = arith.mulf %353, %353 : vector<16x32xf32>
    %cst_121 = arith.constant dense<0.000000e+00> : vector<16xf32>
    %355 = vector.multi_reduction <add>, %354, %cst_121 [1] : vector<16x32xf32> to vector<16xf32>
    %356 = vector.shape_cast %355 : vector<16xf32> to vector<16x1xf32>
    %cst_122 = arith.constant 3.200000e+01 : f32
    %357 = vector.broadcast %cst_122 : f32 to vector<16x1xf32>
    %358 = arith.divf %356, %357 : vector<16x1xf32>
    %359 = vector.broadcast %351 : vector<16x1xf32> to vector<16x32xf32>
    %360 = arith.subf %345, %359 : vector<16x32xf32>
    %cst_123 = arith.constant 9.99999974E-6 : f32
    %361 = vector.broadcast %cst_123 : f32 to vector<16x1xf32>
    %362 = arith.addf %358, %361 : vector<16x1xf32>
    %363 = math.rsqrt %362 : vector<16x1xf32>
    %364 = vector.broadcast %363 : vector<16x1xf32> to vector<16x32xf32>
    %365 = arith.mulf %360, %364 : vector<16x32xf32>
    %366 = vector.broadcast %346 : vector<1x32xf32> to vector<16x32xf32>
    %367 = arith.mulf %365, %366 : vector<16x32xf32>
    %368 = vector.broadcast %347 : vector<1x32xf32> to vector<16x32xf32>
    %369 = arith.addf %367, %368 : vector<16x32xf32>
    %c0_124 = arith.constant 0 : index
    %c0_125 = arith.constant 0 : index
    %c0_126 = arith.constant 0 : index
    %370 = vector.load %arg10[%c0_124, %c0_125, %c0_126] : memref<1x32x64xf32, #tpu.memory_space<vmem>>, vector<1x32x64xf32>
    %371 = vector.shape_cast %370 : vector<1x32x64xf32> to vector<32x64xf32>
    %cst_127 = arith.constant dense<0.000000e+00> : vector<16x64xf32>
    %372 = tpu.matmul %369, %371, %cst_127 {dimension_numbers = #tpu.dot_dimension_numbers<[1], [0], [0], [1], [0, 0, 1, 1], [], []>} : vector<16x32xf32>, vector<32x64xf32>, vector<16x64xf32> -> vector<16x64xf32>
    %c0_128 = arith.constant 0 : index
    %c0_129 = arith.constant 0 : index
    %c0_130 = arith.constant 0 : index
    %373 = vector.load %arg11[%c0_128, %c0_129, %c0_130] : memref<1x1x64xf32, #tpu.memory_space<vmem>>, vector<1x1x64xf32>
    %374 = vector.shape_cast %373 : vector<1x1x64xf32> to vector<1x64xf32>
    %375 = vector.broadcast %374 : vector<1x64xf32> to vector<16x64xf32>
    %376 = arith.addf %372, %375 : vector<16x64xf32>
    %cst_131 = arith.constant 0.000000e+00 : f32
    %377 = vector.broadcast %cst_131 : f32 to vector<16x64xf32>
    %378 = arith.maximumf %376, %377 : vector<16x64xf32>
    %c0_132 = arith.constant 0 : index
    %c0_133 = arith.constant 0 : index
    %c0_134 = arith.constant 0 : index
    %379 = vector.load %arg12[%c0_132, %c0_133, %c0_134] : memref<1x64x32xf32, #tpu.memory_space<vmem>>, vector<1x64x32xf32>
    %380 = vector.shape_cast %379 : vector<1x64x32xf32> to vector<64x32xf32>
    %cst_135 = arith.constant dense<0.000000e+00> : vector<16x32xf32>
    %381 = tpu.matmul %378, %380, %cst_135 {dimension_numbers = #tpu.dot_dimension_numbers<[1], [0], [0], [1], [0, 0, 1, 1], [], []>} : vector<16x64xf32>, vector<64x32xf32>, vector<16x32xf32> -> vector<16x32xf32>
    %382 = vector.extract_strided_slice %8 {offsets = [7, 0], sizes = [1, 32], strides = [1, 1]} : vector<10x32xf32> to vector<1x32xf32>
    %383 = vector.broadcast %382 : vector<1x32xf32> to vector<16x32xf32>
    %384 = arith.addf %381, %383 : vector<16x32xf32>
    %385 = arith.addf %369, %384 : vector<16x32xf32>
    %386 = vector.extract_strided_slice %8 {offsets = [8, 0], sizes = [1, 32], strides = [1, 1]} : vector<10x32xf32> to vector<1x32xf32>
    %387 = vector.extract_strided_slice %8 {offsets = [9, 0], sizes = [1, 32], strides = [1, 1]} : vector<10x32xf32> to vector<1x32xf32>
    %cst_136 = arith.constant dense<0.000000e+00> : vector<16xf32>
    %388 = vector.multi_reduction <add>, %385, %cst_136 [1] : vector<16x32xf32> to vector<16xf32>
    %389 = vector.shape_cast %388 : vector<16xf32> to vector<16x1xf32>
    %cst_137 = arith.constant 3.200000e+01 : f32
    %390 = vector.broadcast %cst_137 : f32 to vector<16x1xf32>
    %391 = arith.divf %389, %390 : vector<16x1xf32>
    %392 = vector.broadcast %391 : vector<16x1xf32> to vector<16x32xf32>
    %393 = arith.subf %385, %392 : vector<16x32xf32>
    %394 = arith.mulf %393, %393 : vector<16x32xf32>
    %cst_138 = arith.constant dense<0.000000e+00> : vector<16xf32>
    %395 = vector.multi_reduction <add>, %394, %cst_138 [1] : vector<16x32xf32> to vector<16xf32>
    %396 = vector.shape_cast %395 : vector<16xf32> to vector<16x1xf32>
    %cst_139 = arith.constant 3.200000e+01 : f32
    %397 = vector.broadcast %cst_139 : f32 to vector<16x1xf32>
    %398 = arith.divf %396, %397 : vector<16x1xf32>
    %399 = vector.broadcast %391 : vector<16x1xf32> to vector<16x32xf32>
    %400 = arith.subf %385, %399 : vector<16x32xf32>
    %cst_140 = arith.constant 9.99999974E-6 : f32
    %401 = vector.broadcast %cst_140 : f32 to vector<16x1xf32>
    %402 = arith.addf %398, %401 : vector<16x1xf32>
    %403 = math.rsqrt %402 : vector<16x1xf32>
    %404 = vector.broadcast %403 : vector<16x1xf32> to vector<16x32xf32>
    %405 = arith.mulf %400, %404 : vector<16x32xf32>
    %406 = vector.broadcast %386 : vector<1x32xf32> to vector<16x32xf32>
    %407 = arith.mulf %405, %406 : vector<16x32xf32>
    %408 = vector.broadcast %387 : vector<1x32xf32> to vector<16x32xf32>
    %409 = arith.addf %407, %408 : vector<16x32xf32>
    %410 = vector.shape_cast %409 : vector<16x32xf32> to vector<2x8x32xf32>
    %c0_141 = arith.constant 0 : index
    %c0_142 = arith.constant 0 : index
    %c0_143 = arith.constant 0 : index
    %411 = vector.load %arg17[%c0_141, %c0_142, %c0_143] : memref<2x8x32xf32, #tpu.memory_space<vmem>>, vector<2x8x32xf32>
    tpu.vector_store %arg17[%c0_141, %c0_142, %c0_143], %410 {strides = array<i32>} : memref<2x8x32xf32, #tpu.memory_space<vmem>>, vector<2x8x32xf32>,
    %c1_i32 = arith.constant 1 : i32
    %412 = arith.cmpi eq, %arg0, %c1_i32 : i32
    %413 = arith.extui %412 : i1 to i32
    %c0_i32_144 = arith.constant 0 : i32
    %414 = arith.cmpi ne, %413, %c0_i32_144 : i32
    scf.if %414 {
      %c0_145 = arith.constant 0 : index
      %c0_146 = arith.constant 0 : index
      %415 = vector.load %arg14[%c0_145, %c0_146] : memref<2x32xf32, #tpu.memory_space<vmem>>, vector<2x32xf32>
      %416 = vector.extract_strided_slice %415 {offsets = [0, 0], sizes = [1, 32], strides = [1, 1]} : vector<2x32xf32> to vector<1x32xf32>
      %417 = vector.extract_strided_slice %415 {offsets = [1, 0], sizes = [1, 32], strides = [1, 1]} : vector<2x32xf32> to vector<1x32xf32>
      %cst_147 = arith.constant dense<0.000000e+00> : vector<16xf32>
      %418 = vector.multi_reduction <add>, %409, %cst_147 [1] : vector<16x32xf32> to vector<16xf32>
      %419 = vector.shape_cast %418 : vector<16xf32> to vector<16x1xf32>
      %cst_148 = arith.constant 3.200000e+01 : f32
      %420 = vector.broadcast %cst_148 : f32 to vector<16x1xf32>
      %421 = arith.divf %419, %420 : vector<16x1xf32>
      %422 = vector.broadcast %421 : vector<16x1xf32> to vector<16x32xf32>
      %423 = arith.subf %409, %422 : vector<16x32xf32>
      %424 = arith.mulf %423, %423 : vector<16x32xf32>
      %cst_149 = arith.constant dense<0.000000e+00> : vector<16xf32>
      %425 = vector.multi_reduction <add>, %424, %cst_149 [1] : vector<16x32xf32> to vector<16xf32>
      %426 = vector.shape_cast %425 : vector<16xf32> to vector<16x1xf32>
      %cst_150 = arith.constant 3.200000e+01 : f32
      %427 = vector.broadcast %cst_150 : f32 to vector<16x1xf32>
      %428 = arith.divf %426, %427 : vector<16x1xf32>
      %429 = vector.broadcast %421 : vector<16x1xf32> to vector<16x32xf32>
      %430 = arith.subf %409, %429 : vector<16x32xf32>
      %cst_151 = arith.constant 9.99999974E-6 : f32
      %431 = vector.broadcast %cst_151 : f32 to vector<16x1xf32>
      %432 = arith.addf %428, %431 : vector<16x1xf32>
      %433 = math.rsqrt %432 : vector<16x1xf32>
      %434 = vector.broadcast %433 : vector<16x1xf32> to vector<16x32xf32>
      %435 = arith.mulf %430, %434 : vector<16x32xf32>
      %436 = vector.broadcast %416 : vector<1x32xf32> to vector<16x32xf32>
      %437 = arith.mulf %435, %436 : vector<16x32xf32>
      %438 = vector.broadcast %417 : vector<1x32xf32> to vector<16x32xf32>
      %439 = arith.addf %437, %438 : vector<16x32xf32>
      %c0_152 = arith.constant 0 : index
      %c0_153 = arith.constant 0 : index
      %440 = vector.load %arg15[%c0_152, %c0_153] : memref<32x128xf32, #tpu.memory_space<vmem>>, vector<32x128xf32>
      %cst_154 = arith.constant dense<0.000000e+00> : vector<16x128xf32>
      %441 = tpu.matmul %439, %440, %cst_154 {dimension_numbers = #tpu.dot_dimension_numbers<[1], [0], [0], [1], [0, 0, 1, 1], [], []>} : vector<16x32xf32>, vector<32x128xf32>, vector<16x128xf32> -> vector<16x128xf32>
      %c0_155 = arith.constant 0 : index
      %c0_156 = arith.constant 0 : index
      %442 = vector.load %arg16[%c0_155, %c0_156] : memref<1x128xf32, #tpu.memory_space<vmem>>, vector<1x128xf32>
      %443 = vector.broadcast %442 : vector<1x128xf32> to vector<16x128xf32>
      %444 = arith.addf %441, %443 : vector<16x128xf32>
      %445 = vector.shape_cast %444 : vector<16x128xf32> to vector<2x8x128xf32>
      %c0_157 = arith.constant 0 : index
      %c0_158 = arith.constant 0 : index
      %c0_159 = arith.constant 0 : index
      %446 = vector.load %arg18[%c0_157, %c0_158, %c0_159] : memref<2x8x128xf32, #tpu.memory_space<vmem>>, vector<2x8x128xf32>
      tpu.vector_store %arg18[%c0_157, %c0_158, %c0_159], %445 {strides = array<i32>} : memref<2x8x128xf32, #tpu.memory_space<vmem>>, vector<2x8x128xf32>,
    } else {
    }
    return
  }
  func.func @transform_0(%arg0: i32) -> (i32, i32, i32) {
    %c0_i32 = arith.constant 0 : i32
    %c0_i32_0 = arith.constant 0 : i32
    %c0_i32_1 = arith.constant 0 : i32
    %c0_i32_2 = arith.constant 0 : i32
    return %c0_i32, %c0_i32_0, %c0_i32_1 : i32, i32, i32
  }
  func.func @transform_1(%arg0: i32) -> (i32, i32, i32) {
    %c0_i32 = arith.constant 0 : i32
    %c0_i32_0 = arith.constant 0 : i32
    %c0_i32_1 = arith.constant 0 : i32
    %c0_i32_2 = arith.constant 0 : i32
    return %c0_i32, %c0_i32_0, %c0_i32_1 : i32, i32, i32
  }
  func.func @transform_2(%arg0: i32) -> (i32, i32, i32) {
    %c0_i32 = arith.constant 0 : i32
    %c0_i32_0 = arith.constant 0 : i32
    %c0_i32_1 = arith.constant 0 : i32
    return %arg0, %c0_i32, %c0_i32_0 : i32, i32, i32
  }
  func.func @transform_3(%arg0: i32) -> (i32, i32, i32) {
    %c0_i32 = arith.constant 0 : i32
    %c0_i32_0 = arith.constant 0 : i32
    %c0_i32_1 = arith.constant 0 : i32
    return %arg0, %c0_i32, %c0_i32_0 : i32, i32, i32
  }
  func.func @transform_4(%arg0: i32) -> (i32, i32, i32) {
    %c0_i32 = arith.constant 0 : i32
    %c0_i32_0 = arith.constant 0 : i32
    %c0_i32_1 = arith.constant 0 : i32
    return %arg0, %c0_i32, %c0_i32_0 : i32, i32, i32
  }
  func.func @transform_5(%arg0: i32) -> (i32, i32, i32) {
    %c0_i32 = arith.constant 0 : i32
    %c0_i32_0 = arith.constant 0 : i32
    %c0_i32_1 = arith.constant 0 : i32
    return %arg0, %c0_i32, %c0_i32_0 : i32, i32, i32
  }
  func.func @transform_6(%arg0: i32) -> (i32, i32, i32) {
    %c0_i32 = arith.constant 0 : i32
    %c0_i32_0 = arith.constant 0 : i32
    %c0_i32_1 = arith.constant 0 : i32
    return %arg0, %c0_i32, %c0_i32_0 : i32, i32, i32
  }
  func.func @transform_7(%arg0: i32) -> (i32, i32, i32) {
    %c0_i32 = arith.constant 0 : i32
    %c0_i32_0 = arith.constant 0 : i32
    %c0_i32_1 = arith.constant 0 : i32
    return %arg0, %c0_i32, %c0_i32_0 : i32, i32, i32
  }
  func.func @transform_8(%arg0: i32) -> (i32, i32, i32) {
    %c0_i32 = arith.constant 0 : i32
    %c0_i32_0 = arith.constant 0 : i32
    %c0_i32_1 = arith.constant 0 : i32
    return %arg0, %c0_i32, %c0_i32_0 : i32, i32, i32
  }
  func.func @transform_9(%arg0: i32) -> (i32, i32, i32) {
    %c0_i32 = arith.constant 0 : i32
    %c0_i32_0 = arith.constant 0 : i32
    %c0_i32_1 = arith.constant 0 : i32
    return %arg0, %c0_i32, %c0_i32_0 : i32, i32, i32
  }
  func.func @transform_10(%arg0: i32) -> (i32, i32, i32) {
    %c0_i32 = arith.constant 0 : i32
    %c0_i32_0 = arith.constant 0 : i32
    %c0_i32_1 = arith.constant 0 : i32
    return %arg0, %c0_i32, %c0_i32_0 : i32, i32, i32
  }
  func.func @transform_11(%arg0: i32) -> (i32, i32, i32) {
    %c0_i32 = arith.constant 0 : i32
    %c0_i32_0 = arith.constant 0 : i32
    %c0_i32_1 = arith.constant 0 : i32
    return %arg0, %c0_i32, %c0_i32_0 : i32, i32, i32
  }
  func.func @transform_12(%arg0: i32) -> (i32, i32, i32) {
    %c0_i32 = arith.constant 0 : i32
    %c0_i32_0 = arith.constant 0 : i32
    %c0_i32_1 = arith.constant 0 : i32
    return %arg0, %c0_i32, %c0_i32_0 : i32, i32, i32
  }
  func.func @transform_13(%arg0: i32) -> (i32, i32) {
    %c0_i32 = arith.constant 0 : i32
    %c0_i32_0 = arith.constant 0 : i32
    %c0_i32_1 = arith.constant 0 : i32
    return %c0_i32, %c0_i32_0 : i32, i32
  }
  func.func @transform_14(%arg0: i32) -> (i32, i32) {
    %c0_i32 = arith.constant 0 : i32
    %c0_i32_0 = arith.constant 0 : i32
    %c0_i32_1 = arith.constant 0 : i32
    return %c0_i32, %c0_i32_0 : i32, i32
  }
  func.func @transform_15(%arg0: i32) -> (i32, i32) {
    %c0_i32 = arith.constant 0 : i32
    %c0_i32_0 = arith.constant 0 : i32
    %c0_i32_1 = arith.constant 0 : i32
    return %c0_i32, %c0_i32_0 : i32, i32
  }
  func.func @transform_16(%arg0: i32) -> (i32, i32, i32) {
    %c0_i32 = arith.constant 0 : i32
    %c0_i32_0 = arith.constant 0 : i32
    %c0_i32_1 = arith.constant 0 : i32
    %c0_i32_2 = arith.constant 0 : i32
    return %c0_i32, %c0_i32_0, %c0_i32_1 : i32, i32, i32
  }
  func.func @transform_17(%arg0: i32) -> (i32, i32, i32) {
    %c0_i32 = arith.constant 0 : i32
    %c0_i32_0 = arith.constant 0 : i32
    %c0_i32_1 = arith.constant 0 : i32
    %c0_i32_2 = arith.constant 0 : i32
    return %c0_i32, %c0_i32_0, %c0_i32_1 : i32, i32, i32
  }
}

</mosaic_0001>

<bundles_post_ra>
// kernel: automatic_transformer_forward.2
= control target key start
LH: loop header
LB: loop body
LE: loop exit
PB: predicated region body
PF: predicated region fallthrough
CT: control target
= control target key end

     0   :  { %s2816_s30 = smov 0   ;;  %s3123_s0 = inlined_call_operand.vmem [shape: f32[2,8,32], index: 0, kind: input, shape index: {}]   ;;  %s3124_s1 = inlined_call_operand.vmem [shape: f32[2,32,96], index: 1, kind: input, shape index: {}]   ;;  %s3125_s2 = inlined_call_operand.vmem [shape: f32[2,1,96], index: 2, kind: input, shape index: {}]   ;;  %s3126_s3 = inlined_call_operand.vmem [shape: f32[2,32,32], index: 3, kind: input, shape index: {}]   ;;  %s3127_s4 = inlined_call_operand.vmem [shape: f32[2,32,64], index: 4, kind: input, shape index: {}]   ;;  %s3128_s5 = inlined_call_operand.vmem [shape: f32[2,1,64], index: 5, kind: input, shape index: {}]   ;;  %s3129_s6 = inlined_call_operand.vmem [shape: f32[2,64,32], index: 6, kind: input, shape index: {}]   ;;  %s3130_s7 = inlined_call_operand.vmem [shape: f32[2,6,32], index: 7, kind: input, shape index: {}]   ;;  %s3131_s8 = inlined_call_operand.vmem [shape: f32[2,32], index: 8, kind: input, shape index: {}]   ;;  %s3132_s9 = inlined_call_operand.vmem [shape: f32[2,8,32], index: 9, kind: output, shape index: {}]  }
   0x1 LB: > { %s2822_s10 = sadd.s32 4294967295, %s2748_s30   ;;  %p2389_p0 = scmp.ge.s32.totalorder %s2748_s30, 1  ;;  %s2748_s30 = sphi %s2816_s30, %s19_s30  }
   0x2   : > { %p337_p1 = scmp.lt.s32.totalorder %s2748_s30, 3 }
   0x4   : > { %p338_p2 = pnand %p2389_p0, %p337_p1 }
   0x5   : > { %p393_p3 = scmp.lt.s32.totalorder (!%p338_p2), %s2822_s10, 1  ;;  %p2399_p4 = scmp.ne.s32.totalorder (!%p338_p2), %s2822_s10, 0 }
   0x6   : > { %341 = sbr.rel (%p338_p2) target bundleno = 2894 (0xb4e), region = 56 }
   0xd   : > { %s2828_s11 = scalar_select %p393_p3, %s2822_s10, 1 }
   0xe   : > { %426 = sbr.rel (%p2399_p4) target bundleno = 21 (0x15), region = 60  ;;  %v427_v0 = vld [vmem:[%s3123_s0] sm:$0xff] (!%p2399_p4)  ;;  %vm429_vm0 = vcmask (!%p2399_p4), 261120   ;;  %v428_v1 = vld [vmem:[%s3123_s0 + $0x8] sm:$0xff] (!%p2399_p4) }
   0xf   : > { %s2438_s12 = sshll.u32 %s2828_s11, 5  ;;  %s400_s15 = scalar_lea.vmem %s3125_s2, %s2828_s11  ;;  %430 = vst.msk [vmem:[%s3132_s9] sm:$0xff] (!%p2399_p4), %vm429_vm0, %v427_v0  ;;  %431 = vst.msk [vmem:[%s3132_s9 + $0x8] sm:$0xff] (!%p2399_p4), %vm429_vm0, %v428_v1 }
  0x10   : > { %s397_s18 = scalar_lea.vmem %s3124_s1, %s2438_s12  ;;  %s2841_s21 = scalar_lea.vmem %s3126_s3, %s2438_s12 }
  0x11   : > { %s2846_s24 = scalar_lea.vmem %s3127_s4, %s2438_s12  ;;  %s413_s27 = scalar_lea.vmem %s3128_s5, %s2828_s11 }
  0x12   : > { %s2441_s28 = sshll.u32 %s2828_s11, 6  ;;  %s2398_s29 = sshll.u32 %s2828_s11, 3 }
  0x13   : > { %s2857_s16 = scalar_lea.vmem %s3129_s6, %s2441_s28  ;;  %s2862_s20 = scalar_lea.vmem %s3130_s7, %s2398_s29 }
  0x15 PF: > { %v435_v2 = vld [vmem:[%s397_s18] sm:$0xff]  ;;  %v436_v3 = vld [vmem:[%s397_s18 + $0x8] sm:$0xff]  ;;  %v437_v4 = vld [vmem:[%s397_s18 + $0x10] sm:$0xff]  ;;  %vm446_vm1 = vcmask 261120   ;;  %v2750_v10 = vmov 0.0   ;;  %vm2751_vm2 = vmmov 0  }
  0x16   : > { %v2634_v5 = vpack.c.bf16 %v436_v3, %v435_v2  ;;  %v438_v6 = vld [vmem:[%s397_s18 + $0x18] sm:$0xff]  ;;  %v2880_v7 = vld [vmem:[%s3132_s9] sm:$0xff]  ;;  %v2887_v9 = vld [vmem:[%s3132_s9 + $0x8] sm:$0xff]  ;;  %2523 = vmatprep.subr.mxu0 %v2750_v10  ;;  %2525 = vmatprep.mubr.msk.f32.mxu0 %vm2751_vm2, %v2750_v10  ;;  %s2752_s23 = smov 96   ;;  %s2753_s25 = smov 120   ;;  %vm532_vm3 = vcmask 64512  }
  0x17   : > { %v2638_v8 = vpack.c.bf16 %v438_v6, %v437_v4  ;;  %2510 = vmatprep.mubr.msk.f32.mxu1 %vm446_vm1, %v2880_v7  ;;  %v2400_v11 = vld [vmem:[%s400_s15] ss:$0 sm:$0xff]  ;;  %s2754_s26 = smov 88   ;;  %s2755_s28 = smov 80   ;;  %vm1203_vm4 = vcmask 130048   ;;  %vm1205_vm5 = vcmask 195584  }
  0x18   : > { %2635 = vmatprep.subr.bf16.mxu1 %v2634_v5  ;;  %s2756_s13 = smov 112   ;;  %s2757_s15 = smov 72   ;;  %vm2119_vm6 = vcmask 523264  }
  0x19   : > { %2637 = vmatpush3.bf16.msra.mxu1 %v2634_v5  ;;  %s2758_s14 = smov 104   ;;  %s2759_s29 = smov 64  }
  0x1a   : > { %2639 = vmatprep.subr.bf16.mxu1 %v2638_v8  ;;  %s2760_s17 = smov 56   ;;  %s2761_s19 = smov 40  }
  0x1b   : > { %s2762_s12 = smov 48   ;;  %s2763_s18 = smov 8  }
  0x1c   : > { %s2764_s22 = smov 16   ;;  %p2434_p5 = scmp.ge.s32.totalorder %s2822_s10, 1 }
  0x1d   : > { %2641 = vmatpush3.bf16.msra.mxu1 %v2638_v8 }
  0x1e   : > { %2513 = vmatprep.subr.mxu1 %v2750_v10 }
  0x20   : > { %2511 = vmatmul.mubr.msk.f32.vlgmr.msra.gmra.mrb[0].mxu1 %vm446_vm1, %v2887_v9 }
  0x21   : > { %2515 = vmatprep.mubr.msk.f32.mxu1 %vm2751_vm2, %v2750_v10 }
  0xf3   : > { %v2512_v12 = vpop.f32.mrb[0].mxu1 }
  0xf4   : > { %v519_v13 = vpop.f32.mrb[1].mxu1  ;;  %v2909_v16 = vadd.f32 %v2512_v12, %v2400_v11 }
  0xf5   : > { %v2902_v14 = vadd.f32 %v2400_v11, %v519_v13 }
  0xf6   : > { %v1207_v17 = vmul.f32 0.35355338, %v2909_v16 }
  0xf7   : > { %530 = vrot.lane.b32.xlu0 %v2902_v14, %s2752_s23  ;;  %v528_v15 = vmul.f32 0.35355338, %v2902_v14 }
  0xf9   : > { %695 = vrot.lane.b32.xlu1 %v528_v15, %s2753_s25 }
  0xfb   : > { %697 = vrot.lane.b32.xlu0 %v2902_v14, %s2754_s26 }
  0xfd   : > { %862 = vrot.lane.b32.xlu1 %v2902_v14, %s2755_s28 }
  0xff   : > { %860 = vrot.lane.b32.xlu0 %v528_v15, %s2756_s13 }
 0x101   : > { %1027 = vrot.lane.b32.xlu1 %v2902_v14, %s2757_s15 }
 0x103   : > { %1025 = vrot.lane.b32.xlu0 %v528_v15, %s2758_s14 }
 0x105   : > { %1209 = vrot.lane.b32.xlu1 %v2909_v16, %s2752_s23  ;;  %s2765_s23 = smov 24  }
 0x107   : > { %1375 = vrot.lane.b32.xlu0 %v2909_v16, %s2754_s26 }
 0x109   : > { %1373 = vrot.lane.b32.xlu1 %v1207_v17, %s2753_s25 }
 0x10b   : > { %1540 = vrot.lane.b32.xlu0 %v2909_v16, %s2755_s28 }
 0x10d   : > { %1538 = vrot.lane.b32.xlu1 %v1207_v17, %s2756_s13 }
 0x10f   : > { %1705 = vrot.lane.b32.xlu0 %v2909_v16, %s2757_s15 }
 0x111   : > { %1703 = vrot.lane.b32.xlu1 %v1207_v17, %s2758_s14 }
 0x113   : > { %619 = vrot.lane.b32.xlu0 %v2902_v14, %s2759_s29 }
 0x115   : > { %784 = vrot.lane.b32.xlu1 %v2902_v14, %s2760_s17 }
 0x169   : > { %v531_v18 = vpop.permute.xlu0 %530 }
 0x16a   : > { %2514 = vmatpush3.xpose.msk.msra.mxu1 %vm532_vm3, %v531_v18 }
 0x16b   : > { %v696_v19 = vpop.permute.xlu1 %695  ;;  %2518 = vmatprep.subr.mxu1 %v2750_v10 }
 0x16d   : > { %v698_v20 = vpop.permute.xlu0 %697  ;;  %2516 = vmatmul.mubr.msk.f32.vlgmr.msra.gmra.mrb[2].mxu1 %vm532_vm3, %v528_v15 }
 0x16e   : > { %2524 = vmatpush3.xpose.msk.msra.mxu0 %vm532_vm3, %v698_v20  ;;  %2520 = vmatprep.mubr.msk.f32.mxu1 %vm2751_vm2, %v2750_v10 }
 0x16f   : > { %v863_v21 = vpop.permute.xlu1 %862  ;;  %2533 = vmatprep.subr.mxu0 %v2750_v10 }
 0x171   : > { %v861_v22 = vpop.permute.xlu0 %860  ;;  %2526 = vmatmul.mubr.msk.f32.vlgmr.msra.gmra.mrb[0].mxu0 %vm532_vm3, %v696_v19 }
 0x172   : > { %2534 = vmatpush3.xpose.msk.msra.mxu0 %vm532_vm3, %v863_v21  ;;  %2535 = vmatprep.mubr.msk.f32.mxu0 %vm2751_vm2, %v2750_v10 }
 0x173   : > { %v1028_v23 = vpop.permute.xlu1 %1027  ;;  %2543 = vmatprep.subr.mxu0 %v2750_v10 }
 0x175   : > { %v1026_v24 = vpop.permute.xlu0 %1025  ;;  %2536 = vmatmul.mubr.msk.f32.vlgmr.msra.gmra.mrb[2].mxu0 %vm532_vm3, %v861_v22 }
 0x176   : > { %2544 = vmatpush3.xpose.msk.msra.mxu0 %vm532_vm3, %v1028_v23  ;;  %2545 = vmatprep.mubr.msk.f32.mxu0 %vm2751_vm2, %v2750_v10 }
 0x177   : > { %v1210_v25 = vpop.permute.xlu1 %1209  ;;  %2553 = vmatprep.subr.mxu0 %v2750_v10 }
 0x179   : > { %v1376_v26 = vpop.permute.xlu0 %1375  ;;  %2546 = vmatmul.mubr.msk.f32.vlgmr.msra.gmra.mrb[4].mxu0 %vm532_vm3, %v1026_v24 }
 0x17a   : > { %2554 = vmatpush3.xpose.msk.msra.mxu0 %vm532_vm3, %v1210_v25  ;;  %2555 = vmatprep.mubr.msk.f32.mxu0 %vm2751_vm2, %v2750_v10 }
 0x17b   : > { %2563 = vmatprep.subr.mxu0 %v2750_v10  ;;  %v1374_v27 = vpop.permute.xlu1 %1373 }
 0x17d   : > { %v1541_v28 = vpop.permute.xlu0 %1540  ;;  %2556 = vmatmul.mubr.msk.f32.vlgmr.msra.gmra.mrb[6].mxu0 %vm532_vm3, %v1207_v17 }
 0x17e   : > { %2564 = vmatpush3.xpose.msk.msra.mxu0 %vm532_vm3, %v1376_v26  ;;  %2565 = vmatprep.mubr.msk.f32.mxu0 %vm2751_vm2, %v2750_v10 }
 0x17f   : > { %2573 = vmatprep.subr.mxu0 %v2750_v10  ;;  %v1539_v30 = vpop.permute.xlu1 %1538 }
 0x181   : > { %v1706_v29 = vpop.permute.xlu0 %1705  ;;  %2566 = vmatmul.mubr.msk.f32.vlgmr.msra.gmra.mrb[8].mxu0 %vm532_vm3, %v1374_v27 }
 0x182   : > { %2574 = vmatpush3.xpose.msk.msra.mxu0 %vm532_vm3, %v1541_v28  ;;  %2575 = vmatprep.mubr.msk.f32.mxu0 %vm2751_vm2, %v2750_v10 }
 0x183   : > { %2583 = vmatprep.subr.mxu0 %v2750_v10  ;;  %v1704_v32 = vpop.permute.xlu1 %1703 }
 0x185   : > { %v620_v31 = vpop.permute.xlu0 %619  ;;  %2576 = vmatmul.mubr.msk.f32.vlgmr.msra.gmra.mrb[10].mxu0 %vm532_vm3, %v1539_v30 }
 0x186   : > { %2519 = vmatpush3.msra.mxu1 %v620_v31  ;;  %2584 = vmatpush3.xpose.msk.msra.mxu0 %vm532_vm3, %v1706_v29 }
 0x187   : > { %2585 = vmatprep.mubr.msk.f32.mxu0 %vm2751_vm2, %v2750_v10  ;;  %2528 = vmatprep.subr.mxu1 %v2750_v10  ;;  %v2970_v57 = vpop.permute.xlu1 %784 }
 0x189   : > { %2586 = vmatmul.mubr.msk.f32.vlgmr.msra.gmra.mrb[12].mxu0 %vm532_vm3, %v1704_v32 }
 0x240   : > { %v604_v33 = vpop.f32.mrb[2].mxu1 }
 0x241   : > { %v2517_v34 = vpop.f32.mrb[3].mxu1  ;;  %v608_v35 = vsel %vm532_vm3, %v604_v33, -inf }
 0x242   : > { %609 = vmax.xlane.f32.xlu0 %v608_v35 }
 0x244   : > { %v769_v36 = vpop.f32.mrb[0].mxu0 }
 0x245   : > { %v2527_v37 = vpop.f32.mrb[1].mxu0  ;;  %v773_v38 = vsel %vm532_vm3, %v769_v36, -inf }
 0x246   : > { %774 = vmax.xlane.f32.xlu1 %v773_v38 }
 0x248   : > { %v934_v39 = vpop.f32.mrb[2].mxu0 }
 0x249   : > { %v2537_v40 = vpop.f32.mrb[3].mxu0  ;;  %v938_v41 = vsel %vm532_vm3, %v934_v39, -inf }
 0x24a   : > { %939 = vmax.xlane.f32.xlu0 %v938_v41 }
 0x24c   : > { %v1099_v42 = vpop.f32.mrb[4].mxu0 }
 0x24d   : > { %v2547_v43 = vpop.f32.mrb[5].mxu0  ;;  %v1103_v44 = vsel %vm532_vm3, %v1099_v42, -inf }
 0x24e   : > { %1104 = vmax.xlane.f32.xlu0 %v1103_v44 }
 0x250   : > { %v1282_v45 = vpop.f32.mrb[6].mxu0 }
 0x251   : > { %v2557_v46 = vpop.f32.mrb[7].mxu0  ;;  %v1286_v47 = vsel %vm532_vm3, %v1282_v45, -inf }
 0x252   : > { %1287 = vmax.xlane.f32.xlu1 %v1286_v47 }
 0x254   : > { %v1447_v48 = vpop.f32.mrb[8].mxu0 }
 0x255   : > { %v2567_v49 = vpop.f32.mrb[9].mxu0  ;;  %v1451_v50 = vsel %vm532_vm3, %v1447_v48, -inf }
 0x256   : > { %1452 = vmax.xlane.f32.xlu0 %v1451_v50 }
 0x258   : > { %v1612_v51 = vpop.f32.mrb[10].mxu0 }
 0x259   : > { %v2577_v52 = vpop.f32.mrb[11].mxu0  ;;  %v1616_v53 = vsel %vm532_vm3, %v1612_v51, -inf }
 0x25a   : > { %1617 = vmax.xlane.f32.xlu1 %v1616_v53 }
 0x25c   : > { %v1777_v54 = vpop.f32.mrb[12].mxu0 }
 0x25d   : > { %v2587_v55 = vpop.f32.mrb[13].mxu0  ;;  %v1781_v56 = vsel %vm532_vm3, %v1777_v54, -inf }
 0x25e   : > { %1782 = vmax.xlane.f32.xlu0 %v1781_v56 }
 0x26b   : > { %1114 = vrot.lane.b32.xlu1 %v2902_v14, %s2761_s19 }
 0x274   : > { %949 = vrot.lane.b32.xlu0 %v2902_v14, %s2762_s12 }
 0x2cf   : > { %v610_v58 = vpop.xlane.xlu0 %609 }
 0x2d0   : > { %v611_v59 = vsub.f32 %v604_v33, %v610_v58 }
 0x2d2   : > { %v612_v60 = vmul.f32 1.442695, %v611_v59 }
 0x2d3   : > { %v775_v61 = vpop.xlane.xlu1 %774 }
 0x2d4   : > { %2698 = vpow2.f32 %v612_v60  ;;  %v776_v62 = vsub.f32 %v769_v36, %v775_v61 }
 0x2d6   : > { %v777_v63 = vmul.f32 1.442695, %v776_v62 }
 0x2d7   : > { %v940_v0 = vpop.xlane.xlu0 %939 }
 0x2d8   : > { %2700 = vpow2.f32 %v777_v63  ;;  %v941_v1 = vsub.f32 %v934_v39, %v940_v0 }
 0x2da   : > { %v942_v2 = vmul.f32 1.442695, %v941_v1 }
 0x2db   : > { %v1105_v3 = vpop.xlane.xlu0 %1104 }
 0x2dc   : > { %2702 = vpow2.f32 %v942_v2  ;;  %v1106_v4 = vsub.f32 %v1099_v42, %v1105_v3 }
 0x2de   : > { %v2699_v5 = vpop.eup %2698  ;;  %v1107_v6 = vmul.f32 1.442695, %v1106_v4 }
 0x2df   : > { %v614_v8 = vsel %vm532_vm3, %v2699_v5, 0.0  ;;  %v1288_v18 = vpop.xlane.xlu1 %1287 }
 0x2e0   : > { %2704 = vpow2.f32 %v1107_v6  ;;  %615 = vadd.xlane.f32.xlu1 %v614_v8  ;;  %v1289_v19 = vsub.f32 %v1282_v45, %v1288_v18  ;;  %v1886_v18 = vld [vmem:[%s2841_s21 + $0x18] sm:$0xff] }
 0x2e2   : > { %v2701_v11 = vpop.eup %2700  ;;  %v1290_v23 = vmul.f32 1.442695, %v1289_v19 }
 0x2e3   : > { %v779_v12 = vsel %vm532_vm3, %v2701_v11, 0.0  ;;  %v1453_v20 = vpop.xlane.xlu0 %1452 }
 0x2e4   : > { %780 = vadd.xlane.f32.xlu0 %v779_v12  ;;  %v1454_v22 = vsub.f32 %v1447_v48, %v1453_v20  ;;  %2706 = vpow2.f32 %v1290_v23 }
 0x2e6   : > { %v2703_v13 = vpop.eup %2702  ;;  %v1455_v26 = vmul.f32 1.442695, %v1454_v22 }
 0x2e7   : > { %v944_v14 = vsel %vm532_vm3, %v2703_v13, 0.0  ;;  %v1618_v21 = vpop.xlane.xlu1 %1617 }
 0x2e8   : > { %945 = vadd.xlane.f32.xlu1 %v944_v14  ;;  %v1619_v24 = vsub.f32 %v1612_v51, %v1618_v21  ;;  %2708 = vpow2.f32 %v1455_v26  ;;  %v1884_v14 = vld [vmem:[%s2841_s21 + $0x8] sm:$0xff] }
 0x2ea   : > { %v2975_v15 = vpop.eup %2704  ;;  %v1620_v27 = vmul.f32 1.442695, %v1619_v24 }
 0x2eb   : > { %v1109_v17 = vsel %vm532_vm3, %v2975_v15, 0.0  ;;  %v1783_v25 = vpop.xlane.xlu0 %1782  ;;  %v1115_v38 = vpop.permute.xlu1 %1114 }
 0x2ec   : > { %1110 = vadd.xlane.f32.xlu0 %v1109_v17  ;;  %v1784_v28 = vsub.f32 %v1777_v54, %v1783_v25  ;;  %2710 = vpow2.f32 %v1620_v27  ;;  %v1885_v17 = vld [vmem:[%s2841_s21 + $0x10] sm:$0xff] }
 0x2ed   : > { %v2646_v19 = vpack.c.bf16 %v1886_v18, %v1885_v17 }
 0x2ee   : > { %v1785_v29 = vmul.f32 1.442695, %v1784_v28  ;;  %v2707_v30 = vpop.eup %2706 }
 0x2ef   : > { %v1292_v32 = vsel %vm532_vm3, %v2707_v30, 0.0  ;;  %v950_v39 = vpop.permute.xlu0 %949 }
 0x2f0   : > { %2712 = vpow2.f32 %v1785_v29 }
 0x2f2   : > { %v2983_v31 = vpop.eup %2708 }
 0x2f3   : > { %v1457_v35 = vsel %vm532_vm3, %v2983_v31, 0.0 }
 0x2f6   : > { %v2986_v33 = vpop.eup %2710 }
 0x2f7   : > { %v1622_v34 = vsel %vm532_vm3, %v2986_v33, 0.0 }
 0x2f9   : > { %1462 = vrot.lane.b32.xlu1 %v2909_v16, %s2760_s17 }
 0x2fa   : > { %v2992_v36 = vpop.eup %2712 }
 0x2fb   : > { %v1787_v37 = vsel %vm532_vm3, %v2992_v36, 0.0 }
 0x302   : > { %1297 = vrot.lane.b32.xlu0 %v2909_v16, %s2759_s29 }
 0x31d   : > { %1293 = vadd.xlane.f32.xlu1 %v1292_v32 }
 0x321   : > { %1623 = vadd.xlane.f32.xlu1 %v1622_v34  ;;  %1458 = vadd.xlane.f32.xlu0 %v1457_v35 }
 0x325   : > { %1788 = vadd.xlane.f32.xlu1 %v1787_v37 }
 0x336   : > { %1792 = vrot.lane.b32.xlu1 %v2909_v16, %s2761_s19 }
 0x337   : > { %1627 = vrot.lane.b32.xlu0 %v2909_v16, %s2762_s12 }
 0x36d   : > { %v616_v40 = vpop.xlane.xlu1 %615 }
 0x36e   : > { %2714 = vrcp.f32 %v616_v40  ;;  %v1887_v40 = vlaneseq }
 0x371   : > { %v781_v41 = vpop.xlane.xlu0 %780 }
 0x372   : > { %2716 = vrcp.f32 %v781_v41  ;;  %v3041_v41 = vshrl.u32 %v1887_v40, 7 }
 0x375   : > { %v946_v42 = vpop.xlane.xlu1 %945 }
 0x376   : > { %2718 = vrcp.f32 %v946_v42  ;;  %v1889_v42 = vsub.s32 0, %v3041_v41 }
 0x378   : > { %v2715_v43 = vpop.eup %2714 }
 0x379   : > { %v618_v44 = vmul.f32 %v2715_v43, %v2699_v5  ;;  %v1111_v45 = vpop.xlane.xlu0 %1110  ;;  %v1463_v52 = vpop.permute.xlu1 %1462  ;;  %v3045_v43 = vld [vmem:[%s2862_s20] sm:$0x3f] }
 0x37a   : > { %2720 = vrcp.f32 %v1111_v45 }
 0x37b   : > { %2521 = vmatmul.mubr.msk.f32.vlgmr.msra.gmra.mrb[4].mxu1 %vm532_vm3, %v618_v44  ;;  %v1890_v44 = vrot.slane %v3045_v43, %v1889_v42 }
 0x37c   : > { %v2717_v46 = vpop.eup %2716  ;;  %2529 = vmatpush3.msra.mxu1 %v2970_v57  ;;  %2530 = vmatprep.mubr.msk.f32.mxu1 %vm2751_vm2, %v2750_v10 }
 0x37d   : > { %v783_v16 = vmul.f32 %v2717_v46, %v2701_v11  ;;  %2538 = vmatprep.subr.mxu1 %v2750_v10  ;;  %v1298_v51 = vpop.permute.xlu0 %1297 }
 0x37f   : > { %2531 = vmatmul.mubr.msk.f32.vlgmr.msra.gmra.mrb[6].mxu1 %vm532_vm3, %v783_v16 }
 0x380   : > { %v2719_v47 = vpop.eup %2718  ;;  %2539 = vmatpush3.msra.mxu1 %v950_v39  ;;  %2540 = vmatprep.mubr.msk.f32.mxu1 %vm2751_vm2, %v2750_v10 }
 0x381   : > { %v948_v48 = vmul.f32 %v2719_v47, %v2703_v13  ;;  %2548 = vmatprep.subr.mxu1 %v2750_v10  ;;  %v1883_v13 = vld [vmem:[%s2841_s21] sm:$0xff] }
 0x383   : > { %2541 = vmatmul.mubr.msk.f32.vlgmr.msra.gmra.mrb[8].mxu1 %vm532_vm3, %v948_v48 }
 0x384   : > { %v2721_v49 = vpop.eup %2720  ;;  %2549 = vmatpush3.msra.mxu1 %v1115_v38  ;;  %2550 = vmatprep.mubr.msk.f32.mxu1 %vm2751_vm2, %v2750_v10 }
 0x385   : > { %v1113_v50 = vmul.f32 %v2721_v49, %v2975_v15  ;;  %2558 = vmatprep.subr.mxu1 %v2750_v10  ;;  %v2642_v15 = vpack.c.bf16 %v1884_v14, %v1883_v13 }
 0x387   : > { %2551 = vmatmul.mubr.msk.f32.vlgmr.msra.gmra.mrb[10].mxu1 %vm532_vm3, %v1113_v50  ;;  %2643 = vmatprep.subr.bf16.mxu0 %v2642_v15 }
 0x388   : > { %2559 = vmatpush3.msra.mxu1 %v1298_v51  ;;  %2560 = vmatprep.mubr.msk.f32.mxu1 %vm2751_vm2, %v2750_v10 }
 0x389   : > { %2568 = vmatprep.subr.mxu1 %v2750_v10  ;;  %2645 = vmatpush3.bf16.msra.mxu0 %v2642_v15 }
 0x38a   : > { %2647 = vmatprep.subr.bf16.mxu0 %v2646_v19 }
 0x38d   : > { %2649 = vmatpush3.bf16.msra.mxu0 %v2646_v19 }
 0x3aa   : > { %v1294_v53 = vpop.xlane.xlu1 %1293 }
 0x3ab   : > { %2722 = vrcp.f32 %v1294_v53 }
 0x3ae   : > { %v1624_v54 = vpop.xlane.xlu1 %1623  ;;  %v1459_v55 = vpop.xlane.xlu0 %1458 }
 0x3af   : > { %2724 = vrcp.f32 %v1459_v55 }
 0x3b0   : > { %2726 = vrcp.f32 %v1624_v54 }
 0x3b2   : > { %v1789_v56 = vpop.xlane.xlu1 %1788  ;;  %v1628_v62 = vpop.permute.xlu0 %1627 }
 0x3b3   : > { %2728 = vrcp.f32 %v1789_v56 }
 0x3b5   : > { %v2723_v57 = vpop.eup %2722 }
 0x3b6   : > { %v1296_v58 = vmul.f32 %v2723_v57, %v2707_v30  ;;  %v1793_v1 = vpop.permute.xlu1 %1792 }
 0x3b8   : > { %2561 = vmatmul.mubr.msk.f32.vlgmr.msra.gmra.mrb[12].mxu1 %vm532_vm3, %v1296_v58 }
 0x3b9   : > { %2569 = vmatpush3.msra.mxu1 %v1463_v52  ;;  %2570 = vmatprep.mubr.msk.f32.mxu1 %vm2751_vm2, %v2750_v10  ;;  %v2725_v59 = vpop.eup %2724 }
 0x3ba   : > { %2578 = vmatprep.subr.mxu1 %v2750_v10  ;;  %v1461_v60 = vmul.f32 %v2725_v59, %v2983_v31  ;;  %v2727_v61 = vpop.eup %2726 }
 0x3bb   : > { %v1626_v63 = vmul.f32 %v2727_v61, %v2986_v33  ;;  %v2014_v61 = vld [vmem:[%s2846_s24 + $0x8] sm:$0xff] }
 0x3bc   : > { %2571 = vmatmul.mubr.msk.f32.vlgmr.msra.gmra.mrb[14].mxu1 %vm532_vm3, %v1461_v60  ;;  %v2013_v60 = vld [vmem:[%s2846_s24] sm:$0xff] }
 0x3bd   : > { %2579 = vmatpush3.msra.mxu1 %v1628_v62  ;;  %2580 = vmatprep.mubr.msk.f32.mxu1 %vm2751_vm2, %v2750_v10  ;;  %v2729_v0 = vpop.eup %2728  ;;  %v2650_v62 = vpack.c.bf16 %v2014_v61, %v2013_v60 }
 0x3be   : > { %2588 = vmatprep.subr.mxu1 %v2750_v10  ;;  %v1791_v2 = vmul.f32 %v2729_v0, %v2992_v36  ;;  %v2016_v0 = vld [vmem:[%s2846_s24 + $0x18] sm:$0xff] }
 0x3c0   : > { %2581 = vmatmul.mubr.msk.f32.vlgmr.msra.gmra.mrb[16].mxu1 %vm532_vm3, %v1626_v63  ;;  %v2015_v63 = vld [vmem:[%s2846_s24 + $0x10] sm:$0xff] }
 0x3c1   : > { %2589 = vmatpush3.msra.mxu1 %v1793_v1  ;;  %2590 = vmatprep.mubr.msk.f32.mxu1 %vm2751_vm2, %v2750_v10  ;;  %v2654_v1 = vpack.c.bf16 %v2016_v0, %v2015_v63 }
 0x3c2   : > { %2651 = vmatprep.subr.bf16.mxu1 %v2650_v62 }
 0x3c4   : > { %2591 = vmatmul.mubr.msk.f32.vlgmr.msra.gmra.mrb[18].mxu1 %vm532_vm3, %v1791_v2  ;;  %v2107_v2 = vld [vmem:[%s2857_s16] sm:$0xff] }
 0x3c5   : > { %2653 = vmatpush3.bf16.msra.mxu1 %v2650_v62 }
 0x3c6   : > { %2655 = vmatprep.subr.bf16.mxu1 %v2654_v1 }
 0x3c9   : > { %2657 = vmatpush3.bf16.msra.mxu1 %v2654_v1 }
 0x44e   : > { %v691_v3 = vpop.f32.mrb[4].mxu1 }
 0x44f   : > { %v2522_v4 = vpop.f32.mrb[5].mxu1 }
 0x450   : > { %v2109_v4 = vld [vmem:[%s2857_s16 + $0x10] sm:$0xff] }
 0x452   : > { %v856_v5 = vpop.f32.mrb[6].mxu1 }
 0x453   : > { %1191 = vrot.lane.b32.xlu0 %v856_v5, %s2763_s18  ;;  %v2532_v6 = vpop.f32.mrb[7].mxu1 }
 0x454   : > { %v2110_v6 = vld [vmem:[%s2857_s16 + $0x18] sm:$0xff] }
 0x456   : > { %v1021_v8 = vpop.f32.mrb[8].mxu1 }
 0x457   : > { %1195 = vrot.lane.b32.xlu1 %v1021_v8, %s2764_s22  ;;  %v2542_v11 = vpop.f32.mrb[9].mxu1  ;;  %v2662_v8 = vpack.c.bf16 %v2110_v6, %v2109_v4  ;;  %v2231_v4 = vsub.s32 4, %v3041_v41 }
 0x458   : > { %v2111_v11 = vld [vmem:[%s2857_s16 + $0x20] sm:$0xff] }
 0x459   : > { %v2232_v6 = vrot.slane %v3045_v43, %v2231_v4 }
 0x45a   : > { %v1186_v12 = vpop.f32.mrb[10].mxu1 }
 0x45b   : > { %1199 = vrot.lane.b32.xlu1 %v1186_v12, %s2765_s23  ;;  %v2552_v10 = vpop.f32.mrb[11].mxu1  ;;  %v2112_v12 = vld [vmem:[%s2857_s16 + $0x28] sm:$0xff] }
 0x45c   : > { %v2666_v10 = vpack.c.bf16 %v2112_v12, %v2111_v11 }
 0x48b   : > { %v1369_v20 = vpop.f32.mrb[12].mxu1 }
 0x48c   : > { %v2562_v21 = vpop.f32.mrb[13].mxu1 }
 0x48d   : > { %v2009_v21 = vsub.s32 2, %v3041_v41 }
 0x48f   : > { %v1534_v22 = vpop.f32.mrb[14].mxu1 }
 0x490   : > { %1869 = vrot.lane.b32.xlu0 %v1534_v22, %s2763_s18  ;;  %v2572_v23 = vpop.f32.mrb[15].mxu1 }
 0x493   : > { %v1699_v24 = vpop.f32.mrb[16].mxu1 }
 0x494   : > { %1873 = vrot.lane.b32.xlu0 %v1699_v24, %s2764_s22  ;;  %v2582_v25 = vpop.f32.mrb[17].mxu1 }
 0x495   : > { %v2010_v25 = vrot.slane %v3045_v43, %v2009_v21 }
 0x497   : > { %v1864_v26 = vpop.f32.mrb[18].mxu1 }
 0x498   : > { %1877 = vrot.lane.b32.xlu1 %v1864_v26, %s2765_s23  ;;  %v2592_v27 = vpop.f32.mrb[19].mxu1 }
 0x4c5   : > { %v1192_v28 = vpop.permute.xlu0 %1191 }
 0x4c6   : > { %v1202_v30 = vsel %vm532_vm3, %v691_v3, %v1192_v28  ;;  %v2108_v3 = vld [vmem:[%s2857_s16 + $0x8] sm:$0xff] }
 0x4c7   : > { %v2658_v5 = vpack.c.bf16 %v2108_v3, %v2107_v2 }
 0x4c9   : > { %v1196_v29 = vpop.permute.xlu1 %1195  ;;  %2659 = vmatprep.subr.bf16.mxu0 %v2658_v5 }
 0x4ca   : > { %v1204_v31 = vsel %vm1203_vm4, %v1202_v30, %v1196_v29 }
 0x4cd   : > { %v1200_v32 = vpop.permute.xlu1 %1199 }
 0x4ce   : > { %v1206_v33 = vsel %vm1205_vm5, %v1204_v31, %v1200_v32  ;;  %v2113_v32 = vld [vmem:[%s2857_s16 + $0x30] sm:$0xff] }
 0x4cf   : > { %2601 = vmatprep.mubr.msk.f32.mxu0 %vm446_vm1, %v1206_v33  ;;  %v2114_v33 = vld [vmem:[%s2857_s16 + $0x38] sm:$0xff] }
 0x502   : > { %v1870_v34 = vpop.permute.xlu0 %1869 }
 0x503   : > { %v1880_v36 = vsel %vm532_vm3, %v1369_v20, %v1870_v34  ;;  %v2003_v20 = vsub.s32 1, %v3041_v41  ;;  %v2670_v34 = vpack.c.bf16 %v2114_v33, %v2113_v32 }
 0x505   : > { %v2004_v22 = vrot.slane %v3045_v43, %v2003_v20 }
 0x506   : > { %v1874_v35 = vpop.permute.xlu0 %1873 }
 0x507   : > { %v1881_v37 = vsel %vm1203_vm4, %v1880_v36, %v1874_v35  ;;  %v2429_v35 = vld [vmem:[%s413_s27] ss:$0 sm:$0xff] }
 0x50a   : > { %v1878_v38 = vpop.permute.xlu1 %1877 }
 0x50b   : > { %v1882_v39 = vsel %vm1205_vm5, %v1881_v37, %v1878_v38 }
 0x50c   : > { %2602 = vmatmul.mubr.msk.f32.vlgmr.msra.gmra.mrb[14].mxu0 %vm446_vm1, %v1882_v39 }
 0x50d   : > { %2661 = vmatpush3.bf16.msra.mxu0 %v2658_v5  ;;  %v2237_v5 = vsub.s32 5, %v3041_v41 }
 0x50e   : > { %2663 = vmatprep.subr.bf16.mxu0 %v2662_v8 }
 0x50f   : > { %v2238_v12 = vrot.slane %v3045_v43, %v2237_v5 }
 0x511   : > { %2665 = vmatpush3.bf16.msra.mxu0 %v2662_v8 }
 0x512   : > { %2667 = vmatprep.subr.bf16.mxu0 %v2666_v10 }
 0x515   : > { %2669 = vmatpush3.bf16.msra.mxu0 %v2666_v10 }
 0x516   : > { %2671 = vmatprep.subr.bf16.mxu0 %v2670_v34 }
 0x519   : > { %2673 = vmatpush3.bf16.msra.mxu0 %v2670_v34 }
 0x5df   : > { %v2603_v45 = vpop.f32.mrb[14].mxu0 }
 0x5e0   : > { %v1969_v46 = vadd.f32 %v2603_v45, %v1890_v44  ;;  %v1963_v16 = vpop.f32.mrb[15].mxu0  ;;  %v2117_v45 = vsub.s32 3, %v3041_v41 }
 0x5e1   : > { %v1964_v47 = vadd.f32 %v1963_v16, %v1890_v44 }
 0x5e2   : > { %v1973_v48 = vadd.f32 %v1969_v46, %v2887_v9  ;;  %v2118_v46 = vrot.slane %v3045_v43, %v2117_v45 }
 0x5e3   : > { %v1972_v49 = vadd.f32 %v1964_v47, %v2880_v7 }
 0x5e4   : > { %v1977_v50 = vsel %vm446_vm1, %v1973_v48, 0.0 }
 0x5e5   : > { %1978 = vadd.xlane.f32.xlu1 %v1977_v50  ;;  %v1974_v51 = vsel %vm446_vm1, %v1972_v49, 0.0 }
 0x5e6   : > { %1975 = vadd.xlane.f32.xlu0 %v1974_v51 }
 0x672   : > { %v1979_v52 = vpop.xlane.xlu1 %1978 }
 0x673   : > { %v1982_v53 = vmul.f32 0.03125, %v1979_v52  ;;  %v1976_v54 = vpop.xlane.xlu0 %1975 }
 0x674   : > { %v1981_v55 = vmul.f32 0.03125, %v1976_v54 }
 0x675   : > { %v1984_v56 = vsub.f32 %v1973_v48, %v1982_v53 }
 0x676   : > { %v1983_v57 = vsub.f32 %v1972_v49, %v1981_v55 }
 0x677   : > { %v1986_v9 = vmul.f32 %v1984_v56, %v1984_v56 }
 0x678   : > { %v1985_v58 = vmul.f32 %v1983_v57, %v1983_v57 }
 0x679   : > { %v1990_v59 = vsel %vm446_vm1, %v1986_v9, 0.0 }
 0x67a   : > { %v1987_v7 = vsel %vm446_vm1, %v1985_v58, 0.0 }
 0x67b   : > { %1988 = vadd.xlane.f32.xlu0 %v1987_v7 }
 0x67f   : > { %1991 = vadd.xlane.f32.xlu0 %v1990_v59 }
 0x708   : > { %v1989_v13 = vpop.xlane.xlu0 %1988 }
 0x709   : > { %v1993_v14 = vmul.f32 0.03125, %v1989_v13 }
 0x70b   : > { %v1995_v15 = vadd.f32 1e-05, %v1993_v14 }
 0x70c   : > { %v1992_v17 = vpop.xlane.xlu0 %1991 }
 0x70d   : > { %2730 = vrsqrt.f32 %v1995_v15  ;;  %v1994_v18 = vmul.f32 0.03125, %v1992_v17 }
 0x70f   : > { %v1996_v19 = vadd.f32 1e-05, %v1994_v18 }
 0x711   : > { %2732 = vrsqrt.f32 %v1996_v19 }
 0x717   : > { %v2731_v23 = vpop.eup %2730 }
 0x718   : > { %v1999_v24 = vmul.f32 %v2731_v23, %v1983_v57 }
 0x71a   : > { %v2005_v26 = vmul.f32 %v2004_v22, %v1999_v24 }
 0x71b   : > { %v2733_v27 = vpop.eup %2732 }
 0x71c   : > { %v2000_v28 = vmul.f32 %v2733_v27, %v1984_v56  ;;  %v2011_v29 = vadd.f32 %v2010_v25, %v2005_v26 }
 0x71e   : > { %v2006_v30 = vmul.f32 %v2004_v22, %v2000_v28  ;;  %2612 = vmatprep.mubr.msk.f32.mxu1 %vm446_vm1, %v2011_v29 }
 0x720   : > { %v2012_v31 = vadd.f32 %v2010_v25, %v2006_v30 }
 0x722   : > { %2613 = vmatmul.mubr.msk.f32.vlgmr.msra.gmra.mrb[20].mxu1 %vm446_vm1, %v2012_v31 }
 0x7f5   : > { %v2614_v36 = vpop.f32.mrb[20].mxu1 }
 0x7f6   : > { %v2102_v37 = vadd.f32 %v2614_v36, %v2429_v35  ;;  %v2096_v38 = vpop.f32.mrb[21].mxu1 }
 0x7f7   : > { %v2097_v39 = vadd.f32 %v2429_v35, %v2096_v38 }
 0x7f8   : > { %v2106_v44 = vmax.f32 %v2102_v37, 0.0 }
 0x7f9   : > { %v2105_v40 = vmax.f32 %v2097_v39, 0.0 }
 0x7fb   : > { %2631 = vmatprep.mubr.msk.f32.mxu0 %vm2119_vm6, %v2105_v40 }
 0x7fc   : > { %2632 = vmatmul.mubr.msk.f32.vlgmr.msra.gmra.mrb[16].mxu0 %vm2119_vm6, %v2106_v44 }
 0x8cf   : > { %v2633_v16 = vpop.f32.mrb[16].mxu0 }
 0x8d0   : > { %v2198_v47 = vadd.f32 %v2633_v16, %v2118_v46  ;;  %v2192_v48 = vpop.f32.mrb[17].mxu0 }
 0x8d1   : > { %v2193_v49 = vadd.f32 %v2192_v48, %v2118_v46 }
 0x8d2   : > { %v2202_v50 = vadd.f32 %v2198_v47, %v2012_v31 }
 0x8d3   : > { %v2201_v51 = vadd.f32 %v2193_v49, %v2011_v29 }
 0x8d4   : > { %v2206_v52 = vsel %vm446_vm1, %v2202_v50, 0.0 }
 0x8d5   : > { %2207 = vadd.xlane.f32.xlu0 %v2206_v52  ;;  %v2203_v53 = vsel %vm446_vm1, %v2201_v51, 0.0 }
 0x8d6   : > { %2204 = vadd.xlane.f32.xlu1 %v2203_v53 }
 0x962   : > { %v2208_v54 = vpop.xlane.xlu0 %2207 }
 0x963   : > { %v2210_v55 = vmul.f32 0.03125, %v2208_v54  ;;  %v2205_v56 = vpop.xlane.xlu1 %2204 }
 0x964   : > { %v2209_v57 = vmul.f32 0.03125, %v2205_v56 }
 0x965   : > { %v2212_v58 = vsub.f32 %v2202_v50, %v2210_v55 }
 0x966   : > { %v2211_v7 = vsub.f32 %v2201_v51, %v2209_v57 }
 0x967   : > { %v2214_v9 = vmul.f32 %v2212_v58, %v2212_v58 }
 0x968   : > { %v2213_v59 = vmul.f32 %v2211_v7, %v2211_v7 }
 0x969   : > { %v2218_v60 = vsel %vm446_vm1, %v2214_v9, 0.0 }
 0x96a   : > { %2219 = vadd.xlane.f32.xlu0 %v2218_v60  ;;  %v2215_v61 = vsel %vm446_vm1, %v2213_v59, 0.0 }
 0x96b   : > { %2216 = vadd.xlane.f32.xlu1 %v2215_v61 }
 0x9f7   : > { %v2220_v62 = vpop.xlane.xlu0 %2219 }
 0x9f8   : > { %v2222_v63 = vmul.f32 0.03125, %v2220_v62  ;;  %v2217_v0 = vpop.xlane.xlu1 %2216 }
 0x9f9   : > { %v2221_v1 = vmul.f32 0.03125, %v2217_v0 }
 0x9fa   : > { %v2224_v2 = vadd.f32 1e-05, %v2222_v63 }
 0x9fb   : > { %v2223_v3 = vadd.f32 1e-05, %v2221_v1 }
 0x9fc   : > { %2734 = vrsqrt.f32 %v2224_v2 }
 0x9fd   : > { %2736 = vrsqrt.f32 %v2223_v3 }
 0xa06   : > { %v2735_v8 = vpop.eup %2734  ;;  %2244 = sbr.rel (%p2434_p5) target bundleno = 2575 (0xa0f), region = 64 }
 0xa07   : > { %v2737_v11 = vpop.eup %2736  ;;  %v2228_v10 = vmul.f32 %v2735_v8, %v2212_v58 }
 0xa08   : > { %v2227_v13 = vmul.f32 %v2737_v11, %v2211_v7 }
 0xa09   : > { %v2234_v14 = vmul.f32 %v2232_v6, %v2228_v10 }
 0xa0a   : > { %v2233_v15 = vmul.f32 %v2232_v6, %v2227_v13 }
 0xa0b   : > { %v2240_v17 = vadd.f32 %v2238_v12, %v2234_v14 }
 0xa0c   : > { %v2239_v18 = vadd.f32 %v2238_v12, %v2233_v15 }
 0xa0d   : > { %2246 = vst.msk [vmem:[%s3132_s9 + $0x8] sm:$0xff] %vm446_vm1, %v2240_v17 }
 0xa0e   : > { %2245 = vst.msk [vmem:[%s3132_s9] sm:$0xff] %vm446_vm1, %v2239_v18 }
 0xa0f PF: > { %p2435_p6 = scmp.ne.s32.totalorder %s2822_s10, 1 }
 0xa10   : > { %v2252_v43 = vsel (!%p2435_p6), %vm446_vm1, %v2239_v18, 0.0  ;;  %v2255_v19 = vsel (!%p2435_p6), %vm446_vm1, %v2240_v17, 0.0  ;;  %v2251_v37 = vld [vmem:[%s3131_s8] sm:$0x3] (!%p2435_p6) }
 0xa11   : > { %2250 = sbr.rel (%p2435_p6) target bundleno = 2894 (0xb4e), region = 68  ;;  %2253 = vadd.xlane.f32.xlu0 (!%p2435_p6), %v2252_v43  ;;  %v2281_v38 = vrot.slane (!%p2435_p6), %v2251_v37, %v1889_v42  ;;  %v2287_v44 = vrot.slane (!%p2435_p6), %v2251_v37, %v2003_v20 }
 0xa15   : > { %2256 = vadd.xlane.f32.xlu0 (!%p2435_p6), %v2255_v19 }
 0xa9e   : > { %v2254_v21 = vpop.xlane.xlu0 %2253 }
 0xa9f   : > { %v2258_v22 = vmul.f32 0.03125, %v2254_v21 }
 0xaa1   : > { %v2260_v23 = vsub.f32 %v2239_v18, %v2258_v22 }
 0xaa2   : > { %v2257_v24 = vpop.xlane.xlu0 %2256 }
 0xaa3   : > { %v2259_v25 = vmul.f32 0.03125, %v2257_v24  ;;  %v2262_v26 = vmul.f32 %v2260_v23, %v2260_v23 }
 0xaa5   : > { %v2261_v27 = vsub.f32 %v2240_v17, %v2259_v25  ;;  %v2264_v28 = vsel %vm446_vm1, %v2262_v26, 0.0 }
 0xaa6   : > { %2265 = vadd.xlane.f32.xlu1 %v2264_v28 }
 0xaa7   : > { %v2263_v29 = vmul.f32 %v2261_v27, %v2261_v27 }
 0xaa9   : > { %v2267_v30 = vsel %vm446_vm1, %v2263_v29, 0.0 }
 0xaaa   : > { %2268 = vadd.xlane.f32.xlu1 %v2267_v30 }
 0xb33   : > { %v2266_v31 = vpop.xlane.xlu1 %2265 }
 0xb34   : > { %v2270_v32 = vmul.f32 0.03125, %v2266_v31 }
 0xb36   : > { %v2272_v33 = vadd.f32 1e-05, %v2270_v32 }
 0xb37   : > { %v2269_v34 = vpop.xlane.xlu1 %2268 }
 0xb38   : > { %2738 = vrsqrt.f32 %v2272_v33  ;;  %v2271_v35 = vmul.f32 0.03125, %v2269_v34 }
 0xb3a   : > { %v2273_v36 = vadd.f32 1e-05, %v2271_v35 }
 0xb3c   : > { %2740 = vrsqrt.f32 %v2273_v36 }
 0xb42   : > { %v2739_v39 = vpop.eup %2738 }
 0xb43   : > { %v2276_v40 = vmul.f32 %v2739_v39, %v2260_v23 }
 0xb45   : > { %v2282_v45 = vmul.f32 %v2281_v38, %v2276_v40 }
 0xb46   : > { %v2741_v46 = vpop.eup %2740 }
 0xb47   : > { %v2288_v16 = vadd.f32 %v2287_v44, %v2282_v45  ;;  %v2277_v47 = vmul.f32 %v2741_v46, %v2261_v27 }
 0xb49   : > { %2290 = vst.msk [vmem:[%s3132_s9] sm:$0xff] %vm446_vm1, %v2288_v16  ;;  %v2283_v48 = vmul.f32 %v2281_v38, %v2277_v47 }
 0xb4b   : > { %v2289_v49 = vadd.f32 %v2287_v44, %v2283_v48 }
 0xb4d   : > { %2291 = vst.msk [vmem:[%s3132_s9 + $0x8] sm:$0xff] %vm446_vm1, %v2289_v49 }
 0xb4e PF: > { %s19_s30 = sadd.s32 1, %s2748_s30  }
 0xb4f   : > { %p16_p7 = scmp.ge.s32.totalorder %s19_s30, 4  }
 0xb51   :  { %18 = sbr.rel (!%p16_p7) target bundleno = 1 (0x1), region = 112 }

// kernel: automatic_transformer_forward.3
= control target key start
LH: loop header
LB: loop body
LE: loop exit
PB: predicated region body
PF: predicated region fallthrough
CT: control target
= control target key end

     0   :  { %s5876_s0 = inlined_call_operand.vmem [shape: f32[2,8,32], index: 0, kind: input, shape index: {}]   ;;  %s5877_s1 = inlined_call_operand.vmem [shape: f32[2,8,32], index: 1, kind: input, shape index: {}]   ;;  %s5878_s2 = inlined_call_operand.vmem [shape: f32[2,32,96], index: 2, kind: input, shape index: {}]   ;;  %s5879_s3 = inlined_call_operand.vmem [shape: f32[2,1,96], index: 3, kind: input, shape index: {}]   ;;  %s5880_s4 = inlined_call_operand.vmem [shape: f32[2,32,32], index: 4, kind: input, shape index: {}]   ;;  %s5881_s5 = inlined_call_operand.vmem [shape: f32[2,32,32], index: 5, kind: input, shape index: {}]   ;;  %s5882_s6 = inlined_call_operand.vmem [shape: f32[2,32,64], index: 6, kind: input, shape index: {}]   ;;  %s5883_s7 = inlined_call_operand.vmem [shape: f32[2,1,64], index: 7, kind: input, shape index: {}]   ;;  %s5884_s8 = inlined_call_operand.vmem [shape: f32[2,32,32], index: 8, kind: input, shape index: {}]   ;;  %s5885_s9 = inlined_call_operand.vmem [shape: f32[2,32,64], index: 9, kind: input, shape index: {}]   ;;  %s5886_s10 = inlined_call_operand.vmem [shape: f32[2,1,64], index: 10, kind: input, shape index: {}]   ;;  %s5887_s11 = inlined_call_operand.vmem [shape: f32[2,64,32], index: 11, kind: input, shape index: {}]   ;;  %s5888_s12 = inlined_call_operand.vmem [shape: f32[2,10,32], index: 12, kind: input, shape index: {}]   ;;  %s5889_s13 = inlined_call_operand.vmem [shape: f32[2,32], index: 13, kind: input, shape index: {}]   ;;  %s5890_s14 = inlined_call_operand.vmem [shape: f32[32,128], index: 14, kind: input, shape index: {}]   ;;  %s5891_s15 = inlined_call_operand.vmem [shape: f32[1,128], index: 15, kind: input, shape index: {}]   ;;  %s5892_s16 = inlined_call_operand.hbm [shape: f32[2,8,32], index: 16, kind: output, shape index: {0}]   ;;  %s5893_s17 = inlined_call_operand.vmem [shape: f32[2,8,128], index: 17, kind: output, shape index: {1}]  }
   0x1   :  { %5903 = sst [smem:[#allocation6_spill]] %s5876_s0 }
   0x2   :  { %5904 = sst [smem:[#allocation7_spill]] %s5877_s1 }
   0x3   :  { %5905 = sst [smem:[#allocation8_spill]] %s5878_s2 }
   0x4   :  { %5906 = sst [smem:[#allocation9_spill]] %s5880_s4 }
   0x5   :  { %5907 = sst [smem:[#allocation10_spill]] %s5881_s5 }
   0x6   :  { %5908 = sst [smem:[#allocation11_spill]] %s5882_s6 }
   0x7   :  { %5909 = sst [smem:[#allocation12_spill]] %s5889_s13 }
   0x8   :  { %5910 = sst [smem:[#allocation13_spill]] %s5891_s15 }
   0x9   :  { %5911 = sst [smem:[#allocation14_spill]] %s5892_s16 }
   0xa   :  { %5912 = sst [smem:[#allocation15_spill]] %s5893_s17 }
   0xb   :  { %23 = vsyncpa [#allocation3], 0  ;;  %s5302_s24 = smov 0  }
   0xc LB: > { %5913 = sst [smem:[#allocation5_spill]] %s5192_s24  ;;  %s5308_s25 = sadd.s32 4294967295, %s5192_s24   ;;  %s5192_s24 = sphi %s5302_s24, %s29_s24  }
   0xd   : > { %p4501_p0 = scmp.ge.s32.totalorder %s5192_s24, 1  ;;  %p575_p1 = scmp.lt.s32.totalorder %s5192_s24, 3 }
   0xf   : > { %p576_p2 = pnand %p4501_p0, %p575_p1 }
  0x10   : > { %p666_p3 = scmp.lt.s32.totalorder (!%p576_p2), %s5308_s25, 1  ;;  %s5914_s2 = sld [smem:[#allocation8_spill]] (!%p576_p2) }
  0x11   : > { %579 = sbr.rel (%p576_p2) target bundleno = 4940 (0x134c), region = 84  ;;  %s5915_s4 = sld [smem:[#allocation9_spill]] (!%p576_p2) }
  0x12   : > { %s5916_s5 = sld [smem:[#allocation10_spill]] (!%p576_p2)  ;;  %s5917_s6 = sld [smem:[#allocation11_spill]] (!%p576_p2) }
  0x13   : > { %p4518_p4 = scmp.ne.s32.totalorder (!%p576_p2), %s5308_s25, 0 }
  0x18   : > { %s5314_s26 = scalar_select %p666_p3, %s5308_s25, 1 }
  0x19   : > { %718 = sbr.rel (%p4518_p4) target bundleno = 33 (0x21), region = 88  ;;  %s5918_s20 = sld [smem:[#allocation6_spill]] (!%p4518_p4)  ;;  %vm721_vm0 = vcmask (!%p4518_p4), 261120  }
  0x1a   : > { %s4592_s27 = sshll.u32 %s5314_s26, 5  ;;  %s691_s30 = scalar_lea.vmem %s5883_s7, %s5314_s26 }
  0x1b   : > { %s670_s19 = scalar_lea.vmem %s5914_s2, %s4592_s27  ;;  %s5327_s21 = scalar_lea.vmem %s5915_s4, %s4592_s27 }
  0x1c   : > { %s5332_s24 = scalar_lea.vmem %s5916_s5, %s4592_s27  ;;  %s5337_s15 = scalar_lea.vmem %s5917_s6, %s4592_s27 }
  0x1d   : > { %s5346_s1 = scalar_lea.vmem %s5884_s8, %s4592_s27  ;;  %s5351_s22 = scalar_lea.vmem %s5885_s9, %s4592_s27 }
  0x1e   : > { %s4598_s17 = sshll.u32 %s5314_s26, 6  ;;  %s4599_s5 = sshll.u32 %s5314_s26, 4 }
  0x1f   : > { %s5362_s28 = scalar_lea.vmem %s5887_s11, %s4598_s17  ;;  %s5367_s18 = scalar_lea.vmem %s5888_s12, %s4599_s5  ;;  %v719_v0 = vld [vmem:[%s5918_s20] sm:$0xff] (!%p4518_p4)  ;;  %v720_v1 = vld [vmem:[%s5918_s20 + $0x8] sm:$0xff] (!%p4518_p4) }
  0x20   : > { %722 = vst.msk [vmem:[#allocation2] sm:$0xff] %vm721_vm0, %v719_v0  ;;  %723 = vst.msk [vmem:[#allocation2 + $0x8] sm:$0xff] %vm721_vm0, %v720_v1 }
  0x21 PF: > { %v730_v2 = vld [vmem:[%s670_s19] sm:$0xff]  ;;  %v731_v3 = vld [vmem:[%s670_s19 + $0x8] sm:$0xff]  ;;  %v732_v4 = vld [vmem:[%s670_s19 + $0x10] sm:$0xff]  ;;  %vm741_vm1 = vcmask 261120   ;;  %v5194_v10 = vmov 0.0   ;;  %vm5195_vm2 = vmmov 0   ;;  %s5919_s13 = scalar_lea.vmem %s5879_s3, %s5314_s26 }
  0x22   : > { %v4972_v5 = vpack.c.bf16 %v731_v3, %v730_v2  ;;  %v733_v6 = vld [vmem:[%s670_s19 + $0x18] sm:$0xff]  ;;  %4737 = vmatprep.subr.mxu0 %v5194_v10  ;;  %4739 = vmatprep.mubr.msk.f32.mxu0 %vm5195_vm2, %v5194_v10  ;;  %v4519_v11 = vld [vmem:[%s5919_s13] ss:$0 sm:$0xff]  ;;  %s5196_s19 = smov 96   ;;  %s5197_s17 = smov 120   ;;  %vm827_vm3 = vcmask 64512  }
  0x23   : > { %v4976_v8 = vpack.c.bf16 %v733_v6, %v732_v4  ;;  %s5198_s29 = smov 88   ;;  %s5199_s0 = smov 80   ;;  %vm1498_vm4 = vcmask 130048   ;;  %vm1500_vm5 = vcmask 195584   ;;  %vm4072_vm6 = vcmask 523264  }
  0x24   : > { %4973 = vmatprep.subr.bf16.mxu1 %v4972_v5  ;;  %s5200_s2 = smov 112   ;;  %s5201_s27 = smov 72  }
  0x25   : > { %4975 = vmatpush3.bf16.msra.mxu1 %v4972_v5  ;;  %s5202_s4 = smov 104   ;;  %s5203_s23 = smov 64  }
  0x26   : > { %4977 = vmatprep.subr.bf16.mxu1 %v4976_v8  ;;  %s5204_s5 = smov 56   ;;  %s5205_s6 = smov 40  }
  0x27   : > { %v5376_v7 = vld [vmem:[#allocation2] sm:$0xff]  ;;  %v5380_v9 = vld [vmem:[#allocation2 + $0x8] sm:$0xff]  ;;  %s5206_s13 = smov 48   ;;  %s5920_s16 = sld [smem:[#allocation7_spill]] }
  0x28   : > { %4724 = vmatprep.mubr.msk.f32.mxu1 %vm741_vm1, %v5376_v7  ;;  %p4584_p5 = scmp.ne.s32.totalorder %s5308_s25, 1 }
  0x29   : > { %4979 = vmatpush3.bf16.msra.mxu1 %v4976_v8 }
  0x2a   : > { %4727 = vmatprep.subr.mxu1 %v5194_v10 }
  0x2c   : > { %4725 = vmatmul.mubr.msk.f32.vlgmr.msra.gmra.mrb[0].mxu1 %vm741_vm1, %v5380_v9 }
  0x2d   : > { %4729 = vmatprep.mubr.msk.f32.mxu1 %vm5195_vm2, %v5194_v10 }
  0xff   : > { %v4726_v12 = vpop.f32.mrb[0].mxu1 }
 0x100   : > { %v814_v13 = vpop.f32.mrb[1].mxu1  ;;  %v5408_v16 = vadd.f32 %v4726_v12, %v4519_v11 }
 0x101   : > { %v5395_v14 = vadd.f32 %v4519_v11, %v814_v13 }
 0x102   : > { %v1502_v17 = vmul.f32 0.35355338, %v5408_v16 }
 0x103   : > { %825 = vrot.lane.b32.xlu0 %v5395_v14, %s5196_s19  ;;  %v823_v15 = vmul.f32 0.35355338, %v5395_v14 }
 0x105   : > { %990 = vrot.lane.b32.xlu1 %v823_v15, %s5197_s17 }
 0x107   : > { %992 = vrot.lane.b32.xlu0 %v5395_v14, %s5198_s29 }
 0x109   : > { %1157 = vrot.lane.b32.xlu1 %v5395_v14, %s5199_s0 }
 0x10b   : > { %1155 = vrot.lane.b32.xlu0 %v823_v15, %s5200_s2 }
 0x10d   : > { %1322 = vrot.lane.b32.xlu1 %v5395_v14, %s5201_s27 }
 0x10f   : > { %1320 = vrot.lane.b32.xlu0 %v823_v15, %s5202_s4 }
 0x111   : > { %1504 = vrot.lane.b32.xlu1 %v5408_v16, %s5196_s19 }
 0x113   : > { %1670 = vrot.lane.b32.xlu0 %v5408_v16, %s5198_s29 }
 0x115   : > { %1668 = vrot.lane.b32.xlu1 %v1502_v17, %s5197_s17 }
 0x117   : > { %1835 = vrot.lane.b32.xlu0 %v5408_v16, %s5199_s0 }
 0x119   : > { %1833 = vrot.lane.b32.xlu1 %v1502_v17, %s5200_s2 }
 0x11b   : > { %2000 = vrot.lane.b32.xlu0 %v5408_v16, %s5201_s27 }
 0x11d   : > { %1998 = vrot.lane.b32.xlu1 %v1502_v17, %s5202_s4 }
 0x11f   : > { %914 = vrot.lane.b32.xlu0 %v5395_v14, %s5203_s23 }
 0x121   : > { %1079 = vrot.lane.b32.xlu1 %v5395_v14, %s5204_s5 }
 0x175   : > { %v826_v18 = vpop.permute.xlu0 %825 }
 0x176   : > { %4728 = vmatpush3.xpose.msk.msra.mxu1 %vm827_vm3, %v826_v18 }
 0x177   : > { %v991_v19 = vpop.permute.xlu1 %990  ;;  %4732 = vmatprep.subr.mxu1 %v5194_v10 }
 0x179   : > { %v993_v20 = vpop.permute.xlu0 %992  ;;  %4730 = vmatmul.mubr.msk.f32.vlgmr.msra.gmra.mrb[2].mxu1 %vm827_vm3, %v823_v15 }
 0x17a   : > { %4738 = vmatpush3.xpose.msk.msra.mxu0 %vm827_vm3, %v993_v20  ;;  %4734 = vmatprep.mubr.msk.f32.mxu1 %vm5195_vm2, %v5194_v10 }
 0x17b   : > { %v1158_v21 = vpop.permute.xlu1 %1157  ;;  %4747 = vmatprep.subr.mxu0 %v5194_v10 }
 0x17d   : > { %v1156_v22 = vpop.permute.xlu0 %1155  ;;  %4740 = vmatmul.mubr.msk.f32.vlgmr.msra.gmra.mrb[0].mxu0 %vm827_vm3, %v991_v19 }
 0x17e   : > { %4748 = vmatpush3.xpose.msk.msra.mxu0 %vm827_vm3, %v1158_v21  ;;  %4749 = vmatprep.mubr.msk.f32.mxu0 %vm5195_vm2, %v5194_v10 }
 0x17f   : > { %v1323_v23 = vpop.permute.xlu1 %1322  ;;  %4757 = vmatprep.subr.mxu0 %v5194_v10 }
 0x181   : > { %v1321_v24 = vpop.permute.xlu0 %1320  ;;  %4750 = vmatmul.mubr.msk.f32.vlgmr.msra.gmra.mrb[2].mxu0 %vm827_vm3, %v1156_v22 }
 0x182   : > { %4758 = vmatpush3.xpose.msk.msra.mxu0 %vm827_vm3, %v1323_v23  ;;  %4759 = vmatprep.mubr.msk.f32.mxu0 %vm5195_vm2, %v5194_v10 }
 0x183   : > { %v1505_v25 = vpop.permute.xlu1 %1504  ;;  %4767 = vmatprep.subr.mxu0 %v5194_v10 }
 0x185   : > { %v1671_v26 = vpop.permute.xlu0 %1670  ;;  %4760 = vmatmul.mubr.msk.f32.vlgmr.msra.gmra.mrb[4].mxu0 %vm827_vm3, %v1321_v24 }
 0x186   : > { %4768 = vmatpush3.xpose.msk.msra.mxu0 %vm827_vm3, %v1505_v25  ;;  %4769 = vmatprep.mubr.msk.f32.mxu0 %vm5195_vm2, %v5194_v10 }
 0x187   : > { %4777 = vmatprep.subr.mxu0 %v5194_v10  ;;  %v1669_v27 = vpop.permute.xlu1 %1668 }
 0x189   : > { %v1836_v28 = vpop.permute.xlu0 %1835  ;;  %4770 = vmatmul.mubr.msk.f32.vlgmr.msra.gmra.mrb[6].mxu0 %vm827_vm3, %v1502_v17 }
 0x18a   : > { %4778 = vmatpush3.xpose.msk.msra.mxu0 %vm827_vm3, %v1671_v26  ;;  %4779 = vmatprep.mubr.msk.f32.mxu0 %vm5195_vm2, %v5194_v10 }
 0x18b   : > { %4787 = vmatprep.subr.mxu0 %v5194_v10  ;;  %v1834_v30 = vpop.permute.xlu1 %1833 }
 0x18d   : > { %v2001_v29 = vpop.permute.xlu0 %2000  ;;  %4780 = vmatmul.mubr.msk.f32.vlgmr.msra.gmra.mrb[8].mxu0 %vm827_vm3, %v1669_v27 }
 0x18e   : > { %4788 = vmatpush3.xpose.msk.msra.mxu0 %vm827_vm3, %v1836_v28  ;;  %4789 = vmatprep.mubr.msk.f32.mxu0 %vm5195_vm2, %v5194_v10 }
 0x18f   : > { %4797 = vmatprep.subr.mxu0 %v5194_v10  ;;  %v1999_v32 = vpop.permute.xlu1 %1998 }
 0x191   : > { %v915_v31 = vpop.permute.xlu0 %914  ;;  %4790 = vmatmul.mubr.msk.f32.vlgmr.msra.gmra.mrb[10].mxu0 %vm827_vm3, %v1834_v30 }
 0x192   : > { %4733 = vmatpush3.msra.mxu1 %v915_v31  ;;  %4798 = vmatpush3.xpose.msk.msra.mxu0 %vm827_vm3, %v2001_v29 }
 0x193   : > { %4799 = vmatprep.mubr.msk.f32.mxu0 %vm5195_vm2, %v5194_v10  ;;  %4742 = vmatprep.subr.mxu1 %v5194_v10  ;;  %v5477_v57 = vpop.permute.xlu1 %1079 }
 0x195   : > { %4800 = vmatmul.mubr.msk.f32.vlgmr.msra.gmra.mrb[12].mxu0 %vm827_vm3, %v1999_v32 }
 0x24c   : > { %v899_v33 = vpop.f32.mrb[2].mxu1 }
 0x24d   : > { %v4731_v34 = vpop.f32.mrb[3].mxu1  ;;  %v903_v35 = vsel %vm827_vm3, %v899_v33, -inf }
 0x24e   : > { %904 = vmax.xlane.f32.xlu0 %v903_v35 }
 0x250   : > { %v1064_v36 = vpop.f32.mrb[0].mxu0 }
 0x251   : > { %v4741_v37 = vpop.f32.mrb[1].mxu0  ;;  %v1068_v38 = vsel %vm827_vm3, %v1064_v36, -inf }
 0x252   : > { %1069 = vmax.xlane.f32.xlu1 %v1068_v38 }
 0x254   : > { %v1229_v39 = vpop.f32.mrb[2].mxu0 }
 0x255   : > { %v4751_v40 = vpop.f32.mrb[3].mxu0  ;;  %v1233_v41 = vsel %vm827_vm3, %v1229_v39, -inf }
 0x256   : > { %1234 = vmax.xlane.f32.xlu0 %v1233_v41 }
 0x258   : > { %v1394_v42 = vpop.f32.mrb[4].mxu0 }
 0x259   : > { %v4761_v43 = vpop.f32.mrb[5].mxu0  ;;  %v1398_v44 = vsel %vm827_vm3, %v1394_v42, -inf }
 0x25a   : > { %1399 = vmax.xlane.f32.xlu0 %v1398_v44 }
 0x25c   : > { %v1577_v45 = vpop.f32.mrb[6].mxu0 }
 0x25d   : > { %v4771_v46 = vpop.f32.mrb[7].mxu0  ;;  %v1581_v47 = vsel %vm827_vm3, %v1577_v45, -inf }
 0x25e   : > { %1582 = vmax.xlane.f32.xlu1 %v1581_v47 }
 0x260   : > { %v1742_v48 = vpop.f32.mrb[8].mxu0 }
 0x261   : > { %v4781_v49 = vpop.f32.mrb[9].mxu0  ;;  %v1746_v50 = vsel %vm827_vm3, %v1742_v48, -inf }
 0x262   : > { %1747 = vmax.xlane.f32.xlu0 %v1746_v50 }
 0x264   : > { %v1907_v51 = vpop.f32.mrb[10].mxu0 }
 0x265   : > { %v4791_v52 = vpop.f32.mrb[11].mxu0  ;;  %v1911_v53 = vsel %vm827_vm3, %v1907_v51, -inf }
 0x266   : > { %1912 = vmax.xlane.f32.xlu1 %v1911_v53 }
 0x268   : > { %v2072_v54 = vpop.f32.mrb[12].mxu0 }
 0x269   : > { %v4801_v55 = vpop.f32.mrb[13].mxu0  ;;  %v2076_v56 = vsel %vm827_vm3, %v2072_v54, -inf }
 0x26a   : > { %2077 = vmax.xlane.f32.xlu0 %v2076_v56 }
 0x277   : > { %1409 = vrot.lane.b32.xlu1 %v5395_v14, %s5205_s6 }
 0x280   : > { %1244 = vrot.lane.b32.xlu0 %v5395_v14, %s5206_s13 }
 0x2db   : > { %v905_v58 = vpop.xlane.xlu0 %904 }
 0x2dc   : > { %v906_v59 = vsub.f32 %v899_v33, %v905_v58 }
 0x2de   : > { %v907_v60 = vmul.f32 1.442695, %v906_v59 }
 0x2df   : > { %v1070_v61 = vpop.xlane.xlu1 %1069 }
 0x2e0   : > { %5076 = vpow2.f32 %v907_v60  ;;  %v1071_v62 = vsub.f32 %v1064_v36, %v1070_v61 }
 0x2e2   : > { %v1072_v63 = vmul.f32 1.442695, %v1071_v62 }
 0x2e3   : > { %v1235_v0 = vpop.xlane.xlu0 %1234 }
 0x2e4   : > { %5078 = vpow2.f32 %v1072_v63  ;;  %v1236_v1 = vsub.f32 %v1229_v39, %v1235_v0 }
 0x2e6   : > { %v1237_v2 = vmul.f32 1.442695, %v1236_v1 }
 0x2e7   : > { %v1400_v3 = vpop.xlane.xlu0 %1399 }
 0x2e8   : > { %5080 = vpow2.f32 %v1237_v2  ;;  %v1401_v4 = vsub.f32 %v1394_v42, %v1400_v3 }
 0x2ea   : > { %v5077_v5 = vpop.eup %5076  ;;  %v1402_v6 = vmul.f32 1.442695, %v1401_v4 }
 0x2eb   : > { %v909_v8 = vsel %vm827_vm3, %v5077_v5, 0.0  ;;  %v1583_v18 = vpop.xlane.xlu1 %1582 }
 0x2ec   : > { %5082 = vpow2.f32 %v1402_v6  ;;  %910 = vadd.xlane.f32.xlu1 %v909_v8  ;;  %v1584_v19 = vsub.f32 %v1577_v45, %v1583_v18  ;;  %v2180_v18 = vld [vmem:[%s5327_s21 + $0x10] sm:$0xff] }
 0x2ee   : > { %v5079_v11 = vpop.eup %5078  ;;  %v1585_v23 = vmul.f32 1.442695, %v1584_v19  ;;  %v2181_v19 = vld [vmem:[%s5327_s21 + $0x18] sm:$0xff] }
 0x2ef   : > { %v1074_v12 = vsel %vm827_vm3, %v5079_v11, 0.0  ;;  %v1748_v20 = vpop.xlane.xlu0 %1747 }
 0x2f0   : > { %1075 = vadd.xlane.f32.xlu0 %v1074_v12  ;;  %v1749_v22 = vsub.f32 %v1742_v48, %v1748_v20  ;;  %5084 = vpow2.f32 %v1585_v23  ;;  %v4984_v20 = vpack.c.bf16 %v2181_v19, %v2180_v18 }
 0x2f2   : > { %v5081_v13 = vpop.eup %5080  ;;  %v1750_v26 = vmul.f32 1.442695, %v1749_v22 }
 0x2f3   : > { %v1239_v14 = vsel %vm827_vm3, %v5081_v13, 0.0  ;;  %v1913_v21 = vpop.xlane.xlu1 %1912 }
 0x2f4   : > { %1240 = vadd.xlane.f32.xlu1 %v1239_v14  ;;  %v1914_v24 = vsub.f32 %v1907_v51, %v1913_v21  ;;  %5086 = vpow2.f32 %v1750_v26  ;;  %v2178_v14 = vld [vmem:[%s5327_s21] sm:$0xff] }
 0x2f6   : > { %v5482_v15 = vpop.eup %5082  ;;  %v1915_v27 = vmul.f32 1.442695, %v1914_v24 }
 0x2f7   : > { %v1404_v17 = vsel %vm827_vm3, %v5482_v15, 0.0  ;;  %v2078_v25 = vpop.xlane.xlu0 %2077  ;;  %v1410_v38 = vpop.permute.xlu1 %1409 }
 0x2f8   : > { %1405 = vadd.xlane.f32.xlu0 %v1404_v17  ;;  %v2079_v28 = vsub.f32 %v2072_v54, %v2078_v25  ;;  %5088 = vpow2.f32 %v1915_v27 }
 0x2fa   : > { %v2080_v29 = vmul.f32 1.442695, %v2079_v28  ;;  %v5085_v30 = vpop.eup %5084 }
 0x2fb   : > { %v1587_v32 = vsel %vm827_vm3, %v5085_v30, 0.0  ;;  %v1245_v39 = vpop.permute.xlu0 %1244 }
 0x2fc   : > { %5090 = vpow2.f32 %v2080_v29 }
 0x2fe   : > { %v5490_v31 = vpop.eup %5086 }
 0x2ff   : > { %v1752_v35 = vsel %vm827_vm3, %v5490_v31, 0.0 }
 0x302   : > { %v5493_v33 = vpop.eup %5088 }
 0x303   : > { %v1917_v34 = vsel %vm827_vm3, %v5493_v33, 0.0 }
 0x305   : > { %1757 = vrot.lane.b32.xlu1 %v5408_v16, %s5204_s5  ;;  %s5901_s5 = smov 16  }
 0x306   : > { %v5499_v36 = vpop.eup %5090 }
 0x307   : > { %v2082_v37 = vsel %vm827_vm3, %v5499_v36, 0.0 }
 0x30e   : > { %1592 = vrot.lane.b32.xlu0 %v5408_v16, %s5203_s23  ;;  %s5207_s23 = smov 8  }
 0x329   : > { %1588 = vadd.xlane.f32.xlu1 %v1587_v32 }
 0x32d   : > { %1918 = vadd.xlane.f32.xlu1 %v1917_v34  ;;  %1753 = vadd.xlane.f32.xlu0 %v1752_v35 }
 0x331   : > { %2083 = vadd.xlane.f32.xlu1 %v2082_v37 }
 0x342   : > { %2087 = vrot.lane.b32.xlu1 %v5408_v16, %s5205_s6  ;;  %s5899_s6 = smov 24  }
 0x343   : > { %1922 = vrot.lane.b32.xlu0 %v5408_v16, %s5206_s13 }
 0x379   : > { %v911_v40 = vpop.xlane.xlu1 %910 }
 0x37a   : > { %5092 = vrcp.f32 %v911_v40 }
 0x37d   : > { %v1076_v41 = vpop.xlane.xlu0 %1075 }
 0x37e   : > { %5094 = vrcp.f32 %v1076_v41  ;;  %v2182_v41 = vlaneseq }
 0x381   : > { %v1241_v42 = vpop.xlane.xlu1 %1240 }
 0x382   : > { %5096 = vrcp.f32 %v1241_v42  ;;  %v5558_v42 = vshrl.u32 %v2182_v41, 7 }
 0x384   : > { %v5093_v43 = vpop.eup %5092 }
 0x385   : > { %v913_v44 = vmul.f32 %v5093_v43, %v5077_v5  ;;  %v1406_v45 = vpop.xlane.xlu0 %1405  ;;  %v1758_v52 = vpop.permute.xlu1 %1757  ;;  %v5561_v43 = vsub.s32 0, %v5558_v42 }
 0x386   : > { %5098 = vrcp.f32 %v1406_v45 }
 0x387   : > { %4735 = vmatmul.mubr.msk.f32.vlgmr.msra.gmra.mrb[4].mxu1 %vm827_vm3, %v913_v44  ;;  %v5564_v44 = vld [vmem:[%s5367_s18] sm:$0xff] }
 0x388   : > { %v5095_v46 = vpop.eup %5094  ;;  %4743 = vmatpush3.msra.mxu1 %v5477_v57  ;;  %4744 = vmatprep.mubr.msk.f32.mxu1 %vm5195_vm2, %v5194_v10  ;;  %v2185_v45 = vrot.slane %v5564_v44, %v5561_v43 }
 0x389   : > { %v1078_v16 = vmul.f32 %v5095_v46, %v5079_v11  ;;  %4752 = vmatprep.subr.mxu1 %v5194_v10  ;;  %v1593_v51 = vpop.permute.xlu0 %1592 }
 0x38b   : > { %4745 = vmatmul.mubr.msk.f32.vlgmr.msra.gmra.mrb[6].mxu1 %vm827_vm3, %v1078_v16 }
 0x38c   : > { %v5097_v47 = vpop.eup %5096  ;;  %4753 = vmatpush3.msra.mxu1 %v1245_v39  ;;  %4754 = vmatprep.mubr.msk.f32.mxu1 %vm5195_vm2, %v5194_v10 }
 0x38d   : > { %v1243_v48 = vmul.f32 %v5097_v47, %v5081_v13  ;;  %4762 = vmatprep.subr.mxu1 %v5194_v10 }
 0x38f   : > { %4755 = vmatmul.mubr.msk.f32.vlgmr.msra.gmra.mrb[8].mxu1 %vm827_vm3, %v1243_v48 }
 0x390   : > { %v5099_v49 = vpop.eup %5098  ;;  %4763 = vmatpush3.msra.mxu1 %v1410_v38  ;;  %4764 = vmatprep.mubr.msk.f32.mxu1 %vm5195_vm2, %v5194_v10 }
 0x391   : > { %v1408_v50 = vmul.f32 %v5099_v49, %v5482_v15  ;;  %4772 = vmatprep.subr.mxu1 %v5194_v10  ;;  %v2179_v15 = vld [vmem:[%s5327_s21 + $0x8] sm:$0xff]  ;;  %s5924_s21 = sld [smem:[#allocation12_spill]] (!%p4584_p5) }
 0x392   : > { %v4980_v17 = vpack.c.bf16 %v2179_v15, %v2178_v14 }
 0x393   : > { %4765 = vmatmul.mubr.msk.f32.vlgmr.msra.gmra.mrb[10].mxu1 %vm827_vm3, %v1408_v50 }
 0x394   : > { %4773 = vmatpush3.msra.mxu1 %v1593_v51  ;;  %4774 = vmatprep.mubr.msk.f32.mxu1 %vm5195_vm2, %v5194_v10 }
 0x395   : > { %4782 = vmatprep.subr.mxu1 %v5194_v10  ;;  %4981 = vmatprep.subr.bf16.mxu0 %v4980_v17 }
 0x396   : > { %4983 = vmatpush3.bf16.msra.mxu0 %v4980_v17 }
 0x397   : > { %4985 = vmatprep.subr.bf16.mxu0 %v4984_v20 }
 0x39a   : > { %4987 = vmatpush3.bf16.msra.mxu0 %v4984_v20 }
 0x3b6   : > { %v1589_v53 = vpop.xlane.xlu1 %1588 }
 0x3b7   : > { %5100 = vrcp.f32 %v1589_v53 }
 0x3ba   : > { %v1919_v54 = vpop.xlane.xlu1 %1918  ;;  %v1754_v55 = vpop.xlane.xlu0 %1753 }
 0x3bb   : > { %5102 = vrcp.f32 %v1754_v55 }
 0x3bc   : > { %5104 = vrcp.f32 %v1919_v54 }
 0x3be   : > { %v2084_v56 = vpop.xlane.xlu1 %2083  ;;  %v1923_v62 = vpop.permute.xlu0 %1922 }
 0x3bf   : > { %5106 = vrcp.f32 %v2084_v56 }
 0x3c1   : > { %v5101_v57 = vpop.eup %5100 }
 0x3c2   : > { %v1591_v58 = vmul.f32 %v5101_v57, %v5085_v30  ;;  %v2088_v1 = vpop.permute.xlu1 %2087 }
 0x3c4   : > { %4775 = vmatmul.mubr.msk.f32.vlgmr.msra.gmra.mrb[12].mxu1 %vm827_vm3, %v1591_v58 }
 0x3c5   : > { %4783 = vmatpush3.msra.mxu1 %v1758_v52  ;;  %4784 = vmatprep.mubr.msk.f32.mxu1 %vm5195_vm2, %v5194_v10  ;;  %v5103_v59 = vpop.eup %5102 }
 0x3c6   : > { %4792 = vmatprep.subr.mxu1 %v5194_v10  ;;  %v1756_v60 = vmul.f32 %v5103_v59, %v5490_v31  ;;  %v5105_v61 = vpop.eup %5104 }
 0x3c7   : > { %v1921_v63 = vmul.f32 %v5105_v61, %v5493_v33  ;;  %v2397_v61 = vld [vmem:[%s5337_s15] sm:$0xff] }
 0x3c8   : > { %4785 = vmatmul.mubr.msk.f32.vlgmr.msra.gmra.mrb[14].mxu1 %vm827_vm3, %v1756_v60 }
 0x3c9   : > { %4793 = vmatpush3.msra.mxu1 %v1923_v62  ;;  %4794 = vmatprep.mubr.msk.f32.mxu1 %vm5195_vm2, %v5194_v10  ;;  %v5107_v0 = vpop.eup %5106  ;;  %v2398_v62 = vld [vmem:[%s5337_s15 + $0x8] sm:$0xff] }
 0x3ca   : > { %4802 = vmatprep.subr.mxu1 %v5194_v10  ;;  %v2086_v2 = vmul.f32 %v5107_v0, %v5499_v36  ;;  %v2399_v0 = vld [vmem:[%s5337_s15 + $0x10] sm:$0xff] }
 0x3cc   : > { %4795 = vmatmul.mubr.msk.f32.vlgmr.msra.gmra.mrb[16].mxu1 %vm827_vm3, %v1921_v63  ;;  %v4996_v63 = vpack.c.bf16 %v2398_v62, %v2397_v61 }
 0x3cd   : > { %4803 = vmatpush3.msra.mxu1 %v2088_v1  ;;  %4804 = vmatprep.mubr.msk.f32.mxu1 %vm5195_vm2, %v5194_v10  ;;  %v2400_v1 = vld [vmem:[%s5337_s15 + $0x18] sm:$0xff] }
 0x3ce   : > { %4997 = vmatprep.subr.bf16.mxu0 %v4996_v63 }
 0x3d0   : > { %4805 = vmatmul.mubr.msk.f32.vlgmr.msra.gmra.mrb[18].mxu1 %vm827_vm3, %v2086_v2  ;;  %v5000_v2 = vpack.c.bf16 %v2400_v1, %v2399_v0 }
 0x45a   : > { %v986_v3 = vpop.f32.mrb[4].mxu1 }
 0x45b   : > { %v4736_v4 = vpop.f32.mrb[5].mxu1 }
 0x45c   : > { %v2309_v4 = vld [vmem:[%s5332_s24 + $0x8] sm:$0xff] }
 0x45e   : > { %v1151_v5 = vpop.f32.mrb[6].mxu1 }
 0x45f   : > { %1486 = vrot.lane.b32.xlu0 %v1151_v5, %s5207_s23  ;;  %v4746_v6 = vpop.f32.mrb[7].mxu1 }
 0x460   : > { %v726_v6 = vld [vmem:[%s5920_s16] sm:$0xff] }
 0x462   : > { %v1316_v8 = vpop.f32.mrb[8].mxu1 }
 0x463   : > { %1490 = vrot.lane.b32.xlu1 %v1316_v8, %s5901_s5  ;;  %v4756_v11 = vpop.f32.mrb[9].mxu1  ;;  %v727_v8 = vld [vmem:[%s5920_s16 + $0x8] sm:$0xff] }
 0x464   : > { %v2310_v11 = vld [vmem:[%s5332_s24 + $0x10] sm:$0xff] }
 0x466   : > { %v1481_v12 = vpop.f32.mrb[10].mxu1 }
 0x467   : > { %1494 = vrot.lane.b32.xlu1 %v1481_v12, %s5899_s6  ;;  %v4766_v13 = vpop.f32.mrb[11].mxu1  ;;  %v2311_v12 = vld [vmem:[%s5332_s24 + $0x18] sm:$0xff] }
 0x468   : > { %v4992_v13 = vpack.c.bf16 %v2311_v12, %v2310_v11 }
 0x497   : > { %v1664_v21 = vpop.f32.mrb[12].mxu1 }
 0x498   : > { %v4776_v22 = vpop.f32.mrb[13].mxu1 }
 0x499   : > { %v2304_v22 = vsub.s32 2, %v5558_v42 }
 0x49b   : > { %v1829_v23 = vpop.f32.mrb[14].mxu1 }
 0x49c   : > { %2164 = vrot.lane.b32.xlu0 %v1829_v23, %s5207_s23  ;;  %v4786_v24 = vpop.f32.mrb[15].mxu1 }
 0x49f   : > { %v1994_v25 = vpop.f32.mrb[16].mxu1 }
 0x4a0   : > { %2168 = vrot.lane.b32.xlu0 %v1994_v25, %s5901_s5  ;;  %v4796_v26 = vpop.f32.mrb[17].mxu1 }
 0x4a1   : > { %v2305_v26 = vrot.slane %v5564_v44, %v2304_v22 }
 0x4a3   : > { %v2159_v27 = vpop.f32.mrb[18].mxu1 }
 0x4a4   : > { %2172 = vrot.lane.b32.xlu1 %v2159_v27, %s5899_s6  ;;  %v4806_v28 = vpop.f32.mrb[19].mxu1 }
 0x4d1   : > { %v1487_v29 = vpop.permute.xlu0 %1486 }
 0x4d2   : > { %v1497_v31 = vsel %vm827_vm3, %v986_v3, %v1487_v29  ;;  %v2308_v3 = vld [vmem:[%s5332_s24] sm:$0xff]  ;;  %s5925_s24 = sld [smem:[#allocation13_spill]] (!%p4584_p5) }
 0x4d3   : > { %v4988_v5 = vpack.c.bf16 %v2309_v4, %v2308_v3 }
 0x4d5   : > { %v1491_v30 = vpop.permute.xlu1 %1490  ;;  %4989 = vmatprep.subr.bf16.mxu1 %v4988_v5 }
 0x4d6   : > { %v1499_v32 = vsel %vm1498_vm4, %v1497_v31, %v1491_v30  ;;  %4991 = vmatpush3.bf16.msra.mxu1 %v4988_v5 }
 0x4d7   : > { %4993 = vmatprep.subr.bf16.mxu1 %v4992_v13 }
 0x4d9   : > { %v1495_v33 = vpop.permute.xlu1 %1494 }
 0x4da   : > { %v1501_v34 = vsel %vm1500_vm5, %v1499_v32, %v1495_v33  ;;  %4995 = vmatpush3.bf16.msra.mxu1 %v4992_v13  ;;  %v4550_v33 = vld [vmem:[%s691_s30] ss:$0 sm:$0xff]  ;;  %s5921_s30 = smov 16  }
 0x4db   : > { %4815 = vmatprep.mubr.msk.f32.mxu0 %vm741_vm1, %v1501_v34  ;;  %4840 = vmatprep.subr.mxu1 %v5194_v10 }
 0x50e   : > { %v2165_v35 = vpop.permute.xlu0 %2164 }
 0x50f   : > { %v2175_v37 = vsel %vm827_vm3, %v1664_v21, %v2165_v35  ;;  %v5595_v21 = vsub.s32 1, %v5558_v42 }
 0x511   : > { %v2299_v23 = vrot.slane %v5564_v44, %v5595_v21 }
 0x512   : > { %v2169_v36 = vpop.permute.xlu0 %2168 }
 0x513   : > { %v2176_v38 = vsel %vm1498_vm4, %v2175_v37, %v2169_v36 }
 0x516   : > { %v2173_v39 = vpop.permute.xlu1 %2172 }
 0x517   : > { %v2177_v40 = vsel %vm1500_vm5, %v2176_v38, %v2173_v39  ;;  %v2314_v39 = vsub.s32 3, %v5558_v42 }
 0x518   : > { %4816 = vmatmul.mubr.msk.f32.vlgmr.msra.gmra.mrb[14].mxu0 %vm741_vm1, %v2177_v40 }
 0x519   : > { %4999 = vmatpush3.bf16.msra.mxu0 %v4996_v63  ;;  %4837 = vmatprep.mubr.msk.f32.mxu0 %vm741_vm1, %v726_v6  ;;  %v2315_v40 = vrot.slane %v5564_v44, %v2314_v39 }
 0x51a   : > { %5001 = vmatprep.subr.bf16.mxu0 %v5000_v2 }
 0x51d   : > { %5003 = vmatpush3.bf16.msra.mxu0 %v5000_v2 }
 0x51e   : > { %4850 = vmatprep.subr.mxu0 %v5194_v10 }
 0x520   : > { %4838 = vmatmul.mubr.msk.f32.vlgmr.msra.gmra.mrb[16].mxu0 %vm741_vm1, %v727_v8 }
 0x521   : > { %4852 = vmatprep.mubr.msk.f32.mxu0 %vm5195_vm2, %v5194_v10 }
 0x5eb   : > { %v4817_v46 = vpop.f32.mrb[14].mxu0 }
 0x5ec   : > { %v2264_v16 = vadd.f32 %v4817_v46, %v2185_v45  ;;  %v2258_v47 = vpop.f32.mrb[15].mxu0 }
 0x5ed   : > { %v2259_v48 = vadd.f32 %v2258_v47, %v2185_v45 }
 0x5ee   : > { %v2268_v49 = vadd.f32 %v2264_v16, %v5380_v9 }
 0x5ef   : > { %v2267_v50 = vadd.f32 %v2259_v48, %v5376_v7 }
 0x5f0   : > { %v2272_v51 = vsel %vm741_vm1, %v2268_v49, 0.0 }
 0x5f1   : > { %2273 = vadd.xlane.f32.xlu1 %v2272_v51  ;;  %v2269_v52 = vsel %vm741_vm1, %v2267_v50, 0.0 }
 0x5f2   : > { %2270 = vadd.xlane.f32.xlu0 %v2269_v52 }
 0x5f3   : > { %v4839_v34 = vpop.f32.mrb[16].mxu0 }
 0x5f4   : > { %v5616_v35 = vadd.f32 %v4839_v34, %v4550_v33  ;;  %v2480_v36 = vpop.f32.mrb[17].mxu0 }
 0x5f5   : > { %v5618_v37 = vadd.f32 %v4550_v33, %v2480_v36 }
 0x602   : > { %2655 = vrot.lane.b32.xlu1 %v5618_v37, %s5197_s17 }
 0x606   : > { %2820 = vrot.lane.b32.xlu1 %v5618_v37, %s5200_s2 }
 0x67e   : > { %v2274_v53 = vpop.xlane.xlu1 %2273 }
 0x67f   : > { %v2277_v54 = vmul.f32 0.03125, %v2274_v53  ;;  %v2271_v55 = vpop.xlane.xlu0 %2270 }
 0x680   : > { %v2276_v56 = vmul.f32 0.03125, %v2271_v55 }
 0x681   : > { %v2279_v57 = vsub.f32 %v2268_v49, %v2277_v54 }
 0x682   : > { %v2278_v58 = vsub.f32 %v2267_v50, %v2276_v56  ;;  %v2656_v38 = vpop.permute.xlu1 %2655 }
 0x683   : > { %v2281_v59 = vmul.f32 %v2279_v57, %v2279_v57  ;;  %4851 = vmatpush3.xpose.msk.msra.mxu0 %vm827_vm3, %v2656_v38 }
 0x684   : > { %v2280_v9 = vmul.f32 %v2278_v58, %v2278_v58  ;;  %4860 = vmatprep.subr.mxu0 %v5194_v10 }
 0x685   : > { %v2285_v60 = vsel %vm741_vm1, %v2281_v59, 0.0 }
 0x686   : > { %v2282_v7 = vsel %vm741_vm1, %v2280_v9, 0.0  ;;  %v2821_v49 = vpop.permute.xlu1 %2820 }
 0x687   : > { %2283 = vadd.xlane.f32.xlu0 %v2282_v7 }
 0x68b   : > { %2286 = vadd.xlane.f32.xlu0 %v2285_v60 }
 0x714   : > { %v2284_v14 = vpop.xlane.xlu0 %2283 }
 0x715   : > { %v2288_v15 = vmul.f32 0.03125, %v2284_v14 }
 0x717   : > { %v2290_v17 = vadd.f32 1e-05, %v2288_v15 }
 0x718   : > { %v2287_v18 = vpop.xlane.xlu0 %2286 }
 0x719   : > { %5108 = vrsqrt.f32 %v2290_v17  ;;  %v2289_v19 = vmul.f32 0.03125, %v2287_v18 }
 0x71b   : > { %v2291_v20 = vadd.f32 1e-05, %v2289_v19 }
 0x71d   : > { %5110 = vrsqrt.f32 %v2291_v20 }
 0x723   : > { %v5109_v24 = vpop.eup %5108 }
 0x724   : > { %v2294_v25 = vmul.f32 %v5109_v24, %v2278_v58 }
 0x726   : > { %v2300_v27 = vmul.f32 %v2299_v23, %v2294_v25 }
 0x727   : > { %v5111_v28 = vpop.eup %5110 }
 0x728   : > { %v2295_v29 = vmul.f32 %v5111_v28, %v2279_v57  ;;  %v5601_v30 = vadd.f32 %v2305_v26, %v2300_v27 }
 0x72a   : > { %v2301_v31 = vmul.f32 %v2299_v23, %v2295_v29  ;;  %4826 = vmatprep.mubr.msk.f32.mxu1 %vm741_vm1, %v5601_v30 }
 0x72c   : > { %v5605_v32 = vadd.f32 %v2305_v26, %v2301_v31 }
 0x72e   : > { %4827 = vmatmul.mubr.msk.f32.vlgmr.msra.gmra.mrb[20].mxu1 %vm741_vm1, %v5605_v32 }
 0x72f   : > { %4842 = vmatprep.mubr.msk.f32.mxu1 %vm5195_vm2, %v5194_v10  ;;  %4841 = vmatpush3.xpose.msk.msra.mxu1 %vm827_vm3, %v5618_v37 }
 0x730   : > { %4845 = vmatprep.subr.mxu1 %v5194_v10 }
 0x801   : > { %v4828_v41 = vpop.f32.mrb[20].mxu1 }
 0x802   : > { %v2388_v45 = vpop.f32.mrb[21].mxu1  ;;  %v2394_v47 = vadd.f32 %v4828_v41, %v2315_v40 }
 0x803   : > { %v2389_v46 = vadd.f32 %v2388_v45, %v2315_v40 }
 0x804   : > { %v3163_v48 = vmul.f32 0.35355338, %v2394_v47 }
 0x805   : > { %v2489_v16 = vmul.f32 0.35355338, %v2389_v46 }
 0x807   : > { %2818 = vrot.lane.b32.xlu1 %v2489_v16, %s5200_s2  ;;  %2653 = vrot.lane.b32.xlu0 %v2489_v16, %s5197_s17 }
 0x808   : > { %4843 = vmatmul.mubr.msk.f32.vlgmr.msra.gmra.mrb[22].mxu1 %vm827_vm3, %v2489_v16 }
 0x809   : > { %4847 = vmatprep.mubr.msk.f32.mxu1 %vm5195_vm2, %v5194_v10 }
 0x80b   : > { %2983 = vrot.lane.b32.xlu1 %v2489_v16, %s5202_s4  ;;  %2985 = vrot.lane.b32.xlu0 %v5618_v37, %s5202_s4 }
 0x80f   : > { %3327 = vrot.lane.b32.xlu1 %v3163_v48, %s5197_s17  ;;  %3329 = vrot.lane.b32.xlu0 %v5616_v35, %s5197_s17  ;;  %s5923_s17 = scalar_lea.vmem %s5886_s10, %s5314_s26 }
 0x813   : > { %3492 = vrot.lane.b32.xlu1 %v3163_v48, %s5200_s2  ;;  %3494 = vrot.lane.b32.xlu0 %v5616_v35, %s5200_s2 }
 0x817   : > { %3657 = vrot.lane.b32.xlu1 %v3163_v48, %s5202_s4  ;;  %3659 = vrot.lane.b32.xlu0 %v5616_v35, %s5202_s4 }
 0x81b   : > { %2742 = vrot.lane.b32.xlu1 %v5618_v37, %s5198_s29  ;;  %2577 = vrot.lane.b32.xlu0 %v5618_v37, %s5196_s19 }
 0x879   : > { %v2819_v50 = vpop.permute.xlu1 %2818  ;;  %v2654_v51 = vpop.permute.xlu0 %2653 }
 0x87a   : > { %4853 = vmatmul.mubr.msk.f32.vlgmr.msra.gmra.mrb[18].mxu0 %vm827_vm3, %v2654_v51 }
 0x87b   : > { %4861 = vmatpush3.xpose.msk.msra.mxu0 %vm827_vm3, %v2821_v49  ;;  %4862 = vmatprep.mubr.msk.f32.mxu0 %vm5195_vm2, %v5194_v10 }
 0x87c   : > { %4870 = vmatprep.subr.mxu0 %v5194_v10 }
 0x87d   : > { %v2986_v52 = vpop.permute.xlu0 %2985  ;;  %v2984_v53 = vpop.permute.xlu1 %2983 }
 0x87e   : > { %4863 = vmatmul.mubr.msk.f32.vlgmr.msra.gmra.mrb[20].mxu0 %vm827_vm3, %v2819_v50 }
 0x87f   : > { %4871 = vmatpush3.xpose.msk.msra.mxu0 %vm827_vm3, %v2986_v52  ;;  %4872 = vmatprep.mubr.msk.f32.mxu0 %vm5195_vm2, %v5194_v10 }
 0x880   : > { %4880 = vmatprep.subr.mxu0 %v5194_v10 }
 0x881   : > { %v3330_v54 = vpop.permute.xlu0 %3329  ;;  %v3328_v55 = vpop.permute.xlu1 %3327 }
 0x882   : > { %4873 = vmatmul.mubr.msk.f32.vlgmr.msra.gmra.mrb[22].mxu0 %vm827_vm3, %v2984_v53 }
 0x883   : > { %4881 = vmatpush3.xpose.msk.msra.mxu0 %vm827_vm3, %v5616_v35  ;;  %4882 = vmatprep.mubr.msk.f32.mxu0 %vm5195_vm2, %v5194_v10 }
 0x884   : > { %4890 = vmatprep.subr.mxu0 %v5194_v10 }
 0x885   : > { %v3495_v56 = vpop.permute.xlu0 %3494  ;;  %v3493_v58 = vpop.permute.xlu1 %3492 }
 0x886   : > { %4883 = vmatmul.mubr.msk.f32.vlgmr.msra.gmra.mrb[24].mxu0 %vm827_vm3, %v3163_v48 }
 0x887   : > { %4891 = vmatpush3.xpose.msk.msra.mxu0 %vm827_vm3, %v3330_v54  ;;  %4892 = vmatprep.mubr.msk.f32.mxu0 %vm5195_vm2, %v5194_v10 }
 0x888   : > { %4900 = vmatprep.subr.mxu0 %v5194_v10 }
 0x889   : > { %v3660_v57 = vpop.permute.xlu0 %3659  ;;  %v3658_v7 = vpop.permute.xlu1 %3657 }
 0x88a   : > { %4893 = vmatmul.mubr.msk.f32.vlgmr.msra.gmra.mrb[26].mxu0 %vm827_vm3, %v3328_v55 }
 0x88b   : > { %4901 = vmatpush3.xpose.msk.msra.mxu0 %vm827_vm3, %v3495_v56  ;;  %4902 = vmatprep.mubr.msk.f32.mxu0 %vm5195_vm2, %v5194_v10 }
 0x88c   : > { %4910 = vmatprep.subr.mxu0 %v5194_v10 }
 0x88d   : > { %v2578_v9 = vpop.permute.xlu0 %2577  ;;  %v2743_v29 = vpop.permute.xlu1 %2742 }
 0x88e   : > { %4846 = vmatpush3.msra.mxu1 %v2578_v9  ;;  %4903 = vmatmul.mubr.msk.f32.vlgmr.msra.gmra.mrb[28].mxu0 %vm827_vm3, %v3493_v58 }
 0x88f   : > { %4911 = vmatpush3.xpose.msk.msra.mxu0 %vm827_vm3, %v3660_v57  ;;  %4912 = vmatprep.mubr.msk.f32.mxu0 %vm5195_vm2, %v5194_v10 }
 0x890   : > { %4855 = vmatprep.subr.mxu1 %v5194_v10 }
 0x892   : > { %4913 = vmatmul.mubr.msk.f32.vlgmr.msra.gmra.mrb[30].mxu0 %vm827_vm3, %v3658_v7 }
 0x8db   : > { %v2562_v59 = vpop.f32.mrb[22].mxu1 }
 0x8dc   : > { %v4844_v60 = vpop.f32.mrb[23].mxu1  ;;  %v2566_v61 = vsel %vm827_vm3, %v2562_v59, -inf }
 0x8dd   : > { %2567 = vmax.xlane.f32.xlu0 %v2566_v61 }
 0x94d   : > { %v2727_v62 = vpop.f32.mrb[18].mxu0 }
 0x94e   : > { %v4854_v63 = vpop.f32.mrb[19].mxu0  ;;  %v2731_v0 = vsel %vm827_vm3, %v2727_v62, -inf }
 0x94f   : > { %2732 = vmax.xlane.f32.xlu1 %v2731_v0 }
 0x951   : > { %v2892_v1 = vpop.f32.mrb[20].mxu0 }
 0x952   : > { %v4864_v2 = vpop.f32.mrb[21].mxu0  ;;  %v2896_v3 = vsel %vm827_vm3, %v2892_v1, -inf }
 0x953   : > { %2897 = vmax.xlane.f32.xlu0 %v2896_v3 }
 0x955   : > { %v3057_v4 = vpop.f32.mrb[22].mxu0 }
 0x956   : > { %v4874_v5 = vpop.f32.mrb[23].mxu0  ;;  %v3061_v6 = vsel %vm827_vm3, %v3057_v4, -inf }
 0x957   : > { %3062 = vmax.xlane.f32.xlu0 %v3061_v6 }
 0x959   : > { %v3236_v8 = vpop.f32.mrb[24].mxu0 }
 0x95a   : > { %v4884_v11 = vpop.f32.mrb[25].mxu0  ;;  %v3240_v12 = vsel %vm827_vm3, %v3236_v8, -inf }
 0x95b   : > { %3241 = vmax.xlane.f32.xlu1 %v3240_v12 }
 0x95d   : > { %v3401_v13 = vpop.f32.mrb[26].mxu0 }
 0x95e   : > { %v4894_v14 = vpop.f32.mrb[27].mxu0  ;;  %v3405_v15 = vsel %vm827_vm3, %v3401_v13, -inf }
 0x95f   : > { %3406 = vmax.xlane.f32.xlu0 %v3405_v15 }
 0x961   : > { %v3566_v17 = vpop.f32.mrb[28].mxu0 }
 0x962   : > { %v4904_v18 = vpop.f32.mrb[29].mxu0  ;;  %v3570_v19 = vsel %vm827_vm3, %v3566_v17, -inf }
 0x963   : > { %3571 = vmax.xlane.f32.xlu1 %v3570_v19 }
 0x965   : > { %v3731_v20 = vpop.f32.mrb[30].mxu0 }
 0x966   : > { %v4914_v22 = vpop.f32.mrb[31].mxu0  ;;  %v3735_v23 = vsel %vm827_vm3, %v3731_v20, -inf }
 0x967   : > { %3736 = vmax.xlane.f32.xlu0 %v3735_v23 }
 0x96a   : > { %v2568_v24 = vpop.xlane.xlu0 %2567 }
 0x96b   : > { %v2569_v25 = vsub.f32 %v2562_v59, %v2568_v24 }
 0x96d   : > { %v2570_v26 = vmul.f32 1.442695, %v2569_v25 }
 0x96f   : > { %5112 = vpow2.f32 %v2570_v26 }
 0x974   : > { %3072 = vrot.lane.b32.xlu1 %v5618_v37, %s5201_s27 }
 0x979   : > { %v5113_v27 = vpop.eup %5112 }
 0x97a   : > { %v2572_v28 = vsel %vm827_vm3, %v5113_v27, 0.0 }
 0x97d   : > { %2907 = vrot.lane.b32.xlu0 %v5618_v37, %s5199_s0 }
 0x998   : > { %2573 = vadd.xlane.f32.xlu1 %v2572_v28 }
 0x9dc   : > { %v2733_v31 = vpop.xlane.xlu1 %2732 }
 0x9dd   : > { %v2734_v33 = vsub.f32 %v2727_v62, %v2733_v31 }
 0x9df   : > { %v2735_v34 = vmul.f32 1.442695, %v2734_v33 }
 0x9e0   : > { %v2898_v36 = vpop.xlane.xlu0 %2897 }
 0x9e1   : > { %5114 = vpow2.f32 %v2735_v34  ;;  %v2899_v38 = vsub.f32 %v2892_v1, %v2898_v36 }
 0x9e3   : > { %v2900_v39 = vmul.f32 1.442695, %v2899_v38 }
 0x9e4   : > { %v3063_v40 = vpop.xlane.xlu0 %3062 }
 0x9e5   : > { %5116 = vpow2.f32 %v2900_v39  ;;  %v3064_v41 = vsub.f32 %v3057_v4, %v3063_v40 }
 0x9e7   : > { %v3065_v37 = vmul.f32 1.442695, %v3064_v41 }
 0x9e8   : > { %v3242_v50 = vpop.xlane.xlu1 %3241 }
 0x9e9   : > { %5118 = vpow2.f32 %v3065_v37  ;;  %v3243_v51 = vsub.f32 %v3236_v8, %v3242_v50  ;;  %v3837_v50 = vld [vmem:[%s5346_s1] sm:$0xff] }
 0x9eb   : > { %v5115_v45 = vpop.eup %5114  ;;  %v3244_v55 = vmul.f32 1.442695, %v3243_v51  ;;  %v3838_v51 = vld [vmem:[%s5346_s1 + $0x8] sm:$0xff] }
 0x9ec   : > { %v2737_v46 = vsel %vm827_vm3, %v5115_v45, 0.0  ;;  %v3407_v52 = vpop.xlane.xlu0 %3406 }
 0x9ed   : > { %2738 = vadd.xlane.f32.xlu0 %v2737_v46  ;;  %v3408_v54 = vsub.f32 %v3401_v13, %v3407_v52  ;;  %5120 = vpow2.f32 %v3244_v55  ;;  %v5004_v52 = vpack.c.bf16 %v3838_v51, %v3837_v50 }
 0x9ef   : > { %v5117_v16 = vpop.eup %5116  ;;  %v3409_v58 = vmul.f32 1.442695, %v3408_v54  ;;  %5005 = vmatprep.subr.bf16.mxu0 %v5004_v52  ;;  %v3840_v54 = vld [vmem:[%s5346_s1 + $0x18] sm:$0xff] }
 0x9f0   : > { %v2902_v47 = vsel %vm827_vm3, %v5117_v16, 0.0  ;;  %v3572_v53 = vpop.xlane.xlu1 %3571  ;;  %5007 = vmatpush3.bf16.msra.mxu0 %v5004_v52 }
 0x9f1   : > { %2903 = vadd.xlane.f32.xlu1 %v2902_v47  ;;  %v3573_v56 = vsub.f32 %v3566_v17, %v3572_v53  ;;  %5122 = vpow2.f32 %v3409_v58  ;;  %v3839_v53 = vld [vmem:[%s5346_s1 + $0x10] sm:$0xff]  ;;  %s5926_s1 = sld [smem:[#allocation15_spill]] (!%p4584_p5) }
 0x9f2   : > { %v5008_v55 = vpack.c.bf16 %v3840_v54, %v3839_v53 }
 0x9f3   : > { %v5699_v48 = vpop.eup %5118  ;;  %v3574_v9 = vmul.f32 1.442695, %v3573_v56 }
 0x9f4   : > { %v3067_v49 = vsel %vm827_vm3, %v5699_v48, 0.0  ;;  %v3737_v57 = vpop.xlane.xlu0 %3736  ;;  %v3073_v60 = vpop.permute.xlu1 %3072  ;;  %5009 = vmatprep.subr.bf16.mxu0 %v5008_v55 }
 0x9f5   : > { %3068 = vadd.xlane.f32.xlu0 %v3067_v49  ;;  %v3738_v7 = vsub.f32 %v3731_v20, %v3737_v57  ;;  %5124 = vpow2.f32 %v3574_v9  ;;  %5011 = vmatpush3.bf16.msra.mxu0 %v5008_v55 }
 0x9f7   : > { %v3739_v59 = vmul.f32 1.442695, %v3738_v7  ;;  %v5121_v61 = vpop.eup %5120 }
 0x9f8   : > { %v3246_v0 = vsel %vm827_vm3, %v5121_v61, 0.0  ;;  %v2908_v11 = vpop.permute.xlu0 %2907 }
 0x9f9   : > { %5126 = vpow2.f32 %v3739_v59 }
 0x9fb   : > { %v5707_v62 = vpop.eup %5122 }
 0x9fc   : > { %v3411_v3 = vsel %vm827_vm3, %v5707_v62, 0.0 }
 0x9ff   : > { %v5710_v1 = vpop.eup %5124 }
 0xa00   : > { %v3576_v2 = vsel %vm827_vm3, %v5710_v1, 0.0 }
 0xa02   : > { %3416 = vrot.lane.b32.xlu1 %v5616_v35, %s5198_s29 }
 0xa03   : > { %v5716_v4 = vpop.eup %5126 }
 0xa04   : > { %v3741_v5 = vsel %vm827_vm3, %v5716_v4, 0.0 }
 0xa0b   : > { %3251 = vrot.lane.b32.xlu0 %v5616_v35, %s5196_s19  ;;  %s5922_s19 = smov 24  }
 0xa25   : > { %v2574_v63 = vpop.xlane.xlu1 %2573 }
 0xa26   : > { %5128 = vrcp.f32 %v2574_v63  ;;  %3247 = vadd.xlane.f32.xlu1 %v3246_v0 }
 0xa2a   : > { %3577 = vadd.xlane.f32.xlu1 %v3576_v2  ;;  %3412 = vadd.xlane.f32.xlu0 %v3411_v3 }
 0xa2e   : > { %3742 = vadd.xlane.f32.xlu1 %v3741_v5 }
 0xa30   : > { %v5129_v6 = vpop.eup %5128 }
 0xa31   : > { %v2576_v8 = vmul.f32 %v5129_v6, %v5113_v27 }
 0xa33   : > { %4848 = vmatmul.mubr.msk.f32.vlgmr.msra.gmra.mrb[24].mxu1 %vm827_vm3, %v2576_v8 }
 0xa34   : > { %4856 = vmatpush3.msra.mxu1 %v2743_v29  ;;  %4857 = vmatprep.mubr.msk.f32.mxu1 %vm5195_vm2, %v5194_v10 }
 0xa35   : > { %4865 = vmatprep.subr.mxu1 %v5194_v10 }
 0xa3f   : > { %3746 = vrot.lane.b32.xlu1 %v5616_v35, %s5201_s27 }
 0xa40   : > { %3581 = vrot.lane.b32.xlu0 %v5616_v35, %s5199_s0 }
 0xa7a   : > { %v2739_v12 = vpop.xlane.xlu0 %2738 }
 0xa7b   : > { %5130 = vrcp.f32 %v2739_v12 }
 0xa7e   : > { %v2904_v13 = vpop.xlane.xlu1 %2903 }
 0xa7f   : > { %5132 = vrcp.f32 %v2904_v13  ;;  %v3843_v13 = vsub.s32 4, %v5558_v42 }
 0xa82   : > { %v3069_v14 = vpop.xlane.xlu0 %3068  ;;  %v3417_v23 = vpop.permute.xlu1 %3416 }
 0xa83   : > { %5134 = vrcp.f32 %v3069_v14  ;;  %v3844_v14 = vrot.slane %v5564_v44, %v3843_v13 }
 0xa85   : > { %v5131_v15 = vpop.eup %5130 }
 0xa86   : > { %v2741_v17 = vmul.f32 %v5131_v15, %v5115_v45  ;;  %v3252_v22 = vpop.permute.xlu0 %3251 }
 0xa88   : > { %4858 = vmatmul.mubr.msk.f32.vlgmr.msra.gmra.mrb[26].mxu1 %vm827_vm3, %v2741_v17 }
 0xa89   : > { %v5133_v18 = vpop.eup %5132  ;;  %4866 = vmatpush3.msra.mxu1 %v2908_v11  ;;  %4867 = vmatprep.mubr.msk.f32.mxu1 %vm5195_vm2, %v5194_v10 }
 0xa8a   : > { %v2906_v19 = vmul.f32 %v5133_v18, %v5117_v16  ;;  %4875 = vmatprep.subr.mxu1 %v5194_v10 }
 0xa8c   : > { %4868 = vmatmul.mubr.msk.f32.vlgmr.msra.gmra.mrb[28].mxu1 %vm827_vm3, %v2906_v19 }
 0xa8d   : > { %v5135_v35 = vpop.eup %5134  ;;  %4876 = vmatpush3.msra.mxu1 %v3073_v60  ;;  %4877 = vmatprep.mubr.msk.f32.mxu1 %vm5195_vm2, %v5194_v10 }
 0xa8e   : > { %v3071_v20 = vmul.f32 %v5135_v35, %v5699_v48  ;;  %4885 = vmatprep.subr.mxu1 %v5194_v10 }
 0xa90   : > { %4878 = vmatmul.mubr.msk.f32.vlgmr.msra.gmra.mrb[30].mxu1 %vm827_vm3, %v3071_v20 }
 0xa91   : > { %4886 = vmatpush3.msra.mxu1 %v3252_v22  ;;  %4887 = vmatprep.mubr.msk.f32.mxu1 %vm5195_vm2, %v5194_v10 }
 0xa92   : > { %4895 = vmatprep.subr.mxu1 %v5194_v10 }
 0xab3   : > { %v3248_v24 = vpop.xlane.xlu1 %3247 }
 0xab4   : > { %5136 = vrcp.f32 %v3248_v24 }
 0xab7   : > { %v3578_v25 = vpop.xlane.xlu1 %3577  ;;  %v3413_v26 = vpop.xlane.xlu0 %3412 }
 0xab8   : > { %5138 = vrcp.f32 %v3413_v26 }
 0xab9   : > { %5140 = vrcp.f32 %v3578_v25 }
 0xabb   : > { %v3743_v27 = vpop.xlane.xlu1 %3742  ;;  %v3582_v36 = vpop.permute.xlu0 %3581 }
 0xabc   : > { %5142 = vrcp.f32 %v3743_v27 }
 0xabe   : > { %v5137_v28 = vpop.eup %5136 }
 0xabf   : > { %v3250_v29 = vmul.f32 %v5137_v28, %v5121_v61  ;;  %v3747_v40 = vpop.permute.xlu1 %3746 }
 0xac1   : > { %4888 = vmatmul.mubr.msk.f32.vlgmr.msra.gmra.mrb[32].mxu1 %vm827_vm3, %v3250_v29 }
 0xac2   : > { %4896 = vmatpush3.msra.mxu1 %v3417_v23  ;;  %4897 = vmatprep.mubr.msk.f32.mxu1 %vm5195_vm2, %v5194_v10  ;;  %v5139_v31 = vpop.eup %5138 }
 0xac3   : > { %4905 = vmatprep.subr.mxu1 %v5194_v10  ;;  %v3415_v33 = vmul.f32 %v5139_v31, %v5707_v62  ;;  %v5141_v34 = vpop.eup %5140 }
 0xac4   : > { %v3580_v38 = vmul.f32 %v5141_v34, %v5710_v1  ;;  %v3966_v34 = vld [vmem:[%s5351_s22] sm:$0xff] }
 0xac5   : > { %4898 = vmatmul.mubr.msk.f32.vlgmr.msra.gmra.mrb[34].mxu1 %vm827_vm3, %v3415_v33 }
 0xac6   : > { %4906 = vmatpush3.msra.mxu1 %v3582_v36  ;;  %4907 = vmatprep.mubr.msk.f32.mxu1 %vm5195_vm2, %v5194_v10  ;;  %v5143_v39 = vpop.eup %5142  ;;  %v3967_v36 = vld [vmem:[%s5351_s22 + $0x8] sm:$0xff] }
 0xac7   : > { %4915 = vmatprep.subr.mxu1 %v5194_v10  ;;  %v3745_v41 = vmul.f32 %v5143_v39, %v5716_v4  ;;  %v3968_v39 = vld [vmem:[%s5351_s22 + $0x10] sm:$0xff] }
 0xac9   : > { %4908 = vmatmul.mubr.msk.f32.vlgmr.msra.gmra.mrb[36].mxu1 %vm827_vm3, %v3580_v38  ;;  %v5012_v38 = vpack.c.bf16 %v3967_v36, %v3966_v34 }
 0xaca   : > { %4916 = vmatpush3.msra.mxu1 %v3747_v40  ;;  %4917 = vmatprep.mubr.msk.f32.mxu1 %vm5195_vm2, %v5194_v10  ;;  %v3969_v40 = vld [vmem:[%s5351_s22 + $0x18] sm:$0xff] }
 0xacb   : > { %5013 = vmatprep.subr.bf16.mxu1 %v5012_v38 }
 0xacd   : > { %4918 = vmatmul.mubr.msk.f32.vlgmr.msra.gmra.mrb[38].mxu1 %vm827_vm3, %v3745_v41  ;;  %v5016_v41 = vpack.c.bf16 %v3969_v40, %v3968_v39 }
 0xace   : > { %5015 = vmatpush3.bf16.msra.mxu1 %v5012_v38 }
 0xacf   : > { %5017 = vmatprep.subr.bf16.mxu1 %v5016_v41 }
 0xad2   : > { %5019 = vmatpush3.bf16.msra.mxu1 %v5016_v41 }
 0xb06   : > { %v2649_v37 = vpop.f32.mrb[24].mxu1 }
 0xb07   : > { %v4849_v45 = vpop.f32.mrb[25].mxu1 }
 0xb08   : > { %v4061_v45 = vld [vmem:[%s5362_s28 + $0x8] sm:$0xff] }
 0xb5b   : > { %v2814_v46 = vpop.f32.mrb[26].mxu1 }
 0xb5c   : > { %3149 = vrot.lane.b32.xlu0 %v2814_v46, %s5207_s23  ;;  %v4859_v16 = vpop.f32.mrb[27].mxu1  ;;  %v4062_v46 = vld [vmem:[%s5362_s28 + $0x10] sm:$0xff] }
 0xb5f   : > { %v2979_v47 = vpop.f32.mrb[28].mxu1 }
 0xb60   : > { %3153 = vrot.lane.b32.xlu1 %v2979_v47, %s5921_s30  ;;  %v4869_v48 = vpop.f32.mrb[29].mxu1  ;;  %v4063_v47 = vld [vmem:[%s5362_s28 + $0x18] sm:$0xff] }
 0xb61   : > { %v5024_v48 = vpack.c.bf16 %v4063_v47, %v4062_v46 }
 0xb63   : > { %v3144_v49 = vpop.f32.mrb[30].mxu1 }
 0xb64   : > { %3157 = vrot.lane.b32.xlu1 %v3144_v49, %s5922_s19  ;;  %v4879_v10 = vpop.f32.mrb[31].mxu1  ;;  %v4064_v49 = vld [vmem:[%s5362_s28 + $0x20] sm:$0xff] }
 0xb65   : > { %v4065_v10 = vld [vmem:[%s5362_s28 + $0x28] sm:$0xff] }
 0xb66   : > { %v5028_v50 = vpack.c.bf16 %v4065_v10, %v4064_v49 }
 0xb94   : > { %v3323_v56 = vpop.f32.mrb[32].mxu1 }
 0xb95   : > { %v4889_v57 = vpop.f32.mrb[33].mxu1 }
 0xb96   : > { %v3956_v57 = vsub.s32 5, %v5558_v42 }
 0xb98   : > { %v3488_v58 = vpop.f32.mrb[34].mxu1 }
 0xb99   : > { %3823 = vrot.lane.b32.xlu0 %v3488_v58, %s5207_s23  ;;  %v4899_v9 = vpop.f32.mrb[35].mxu1  ;;  %v3962_v58 = vsub.s32 6, %v5558_v42 }
 0xb9a   : > { %v3957_v9 = vrot.slane %v5564_v44, %v3956_v57 }
 0xb9c   : > { %v3653_v7 = vpop.f32.mrb[36].mxu1 }
 0xb9d   : > { %3827 = vrot.lane.b32.xlu0 %v3653_v7, %s5921_s30  ;;  %v4909_v59 = vpop.f32.mrb[37].mxu1 }
 0xba0   : > { %v3818_v60 = vpop.f32.mrb[38].mxu1 }
 0xba1   : > { %3831 = vrot.lane.b32.xlu1 %v3818_v60, %s5922_s19  ;;  %v4919_v61 = vpop.f32.mrb[39].mxu1  ;;  %v3963_v60 = vrot.slane %v5564_v44, %v3962_v58 }
 0xbce   : > { %v3150_v62 = vpop.permute.xlu0 %3149 }
 0xbcf   : > { %v3160_v0 = vsel %vm827_vm3, %v2649_v37, %v3150_v62  ;;  %v4060_v37 = vld [vmem:[%s5362_s28] sm:$0xff] }
 0xbd0   : > { %v5020_v16 = vpack.c.bf16 %v4061_v45, %v4060_v37  ;;  %v729_v45 = vld [vmem:[%s5367_s18 + $0x8] sm:$0x3] }
 0xbd1   : > { %v4185_v46 = vrot.slane %v729_v45, %v5561_v43 }
 0xbd2   : > { %v3154_v63 = vpop.permute.xlu1 %3153  ;;  %5021 = vmatprep.subr.bf16.mxu0 %v5020_v16 }
 0xbd3   : > { %v3161_v1 = vsel %vm1498_vm4, %v3160_v0, %v3154_v63 }
 0xbd6   : > { %v3158_v2 = vpop.permute.xlu1 %3157 }
 0xbd7   : > { %v3162_v3 = vsel %vm1500_vm5, %v3161_v1, %v3158_v2 }
 0xbd8   : > { %4928 = vmatprep.mubr.msk.f32.mxu0 %vm741_vm1, %v3162_v3  ;;  %v4066_v3 = vld [vmem:[%s5362_s28 + $0x30] sm:$0xff] }
 0xc0b   : > { %v3824_v4 = vpop.permute.xlu0 %3823 }
 0xc0c   : > { %v3834_v6 = vsel %vm827_vm3, %v3323_v56, %v3824_v4  ;;  %v4067_v4 = vld [vmem:[%s5362_s28 + $0x38] sm:$0xff] }
 0xc0f   : > { %v3828_v5 = vpop.permute.xlu0 %3827 }
 0xc10   : > { %v3835_v8 = vsel %vm1498_vm4, %v3834_v6, %v3828_v5  ;;  %v5032_v5 = vpack.c.bf16 %v4067_v4, %v4066_v3  ;;  %v4579_v6 = vld [vmem:[%s5923_s17] ss:$0 sm:$0xff]  ;;  %v4242_v4 = vld [vmem:[%s5890_s14 + $0x18] sm:$0xff] (!%p4584_p5) }
 0xc13   : > { %v3832_v11 = vpop.permute.xlu1 %3831 }
 0xc14   : > { %v3836_v12 = vsel %vm1500_vm5, %v3835_v8, %v3832_v11 }
 0xc15   : > { %4929 = vmatmul.mubr.msk.f32.vlgmr.msra.gmra.mrb[32].mxu0 %vm741_vm1, %v3836_v12 }
 0xc16   : > { %5023 = vmatpush3.bf16.msra.mxu0 %v5020_v16 }
 0xc17   : > { %5025 = vmatprep.subr.bf16.mxu0 %v5024_v48 }
 0xc1a   : > { %5027 = vmatpush3.bf16.msra.mxu0 %v5024_v48  ;;  %v4191_v48 = vrot.slane %v729_v45, %v5595_v21 }
 0xc1b   : > { %5029 = vmatprep.subr.bf16.mxu0 %v5028_v50 }
 0xc1e   : > { %5031 = vmatpush3.bf16.msra.mxu0 %v5028_v50 }
 0xc1f   : > { %5033 = vmatprep.subr.bf16.mxu0 %v5032_v5 }
 0xc22   : > { %5035 = vmatpush3.bf16.msra.mxu0 %v5032_v5 }
 0xce8   : > { %v4930_v15 = vpop.f32.mrb[32].mxu0 }
 0xce9   : > { %v3923_v17 = vadd.f32 %v4930_v15, %v3844_v14  ;;  %v3917_v18 = vpop.f32.mrb[33].mxu0 }
 0xcea   : > { %v3918_v19 = vadd.f32 %v3917_v18, %v3844_v14 }
 0xceb   : > { %v3927_v35 = vadd.f32 %v3923_v17, %v5605_v32  ;;  %v4070_v17 = vsub.s32 7, %v5558_v42 }
 0xcec   : > { %v3926_v20 = vadd.f32 %v3918_v19, %v5601_v30 }
 0xced   : > { %v3931_v22 = vsel %vm741_vm1, %v3927_v35, 0.0  ;;  %v4071_v18 = vrot.slane %v5564_v44, %v4070_v17 }
 0xcee   : > { %3932 = vadd.xlane.f32.xlu1 %v3931_v22  ;;  %v3928_v23 = vsel %vm741_vm1, %v3926_v20, 0.0 }
 0xcef   : > { %3929 = vadd.xlane.f32.xlu0 %v3928_v23 }
 0xd7b   : > { %v3933_v24 = vpop.xlane.xlu1 %3932 }
 0xd7c   : > { %v3935_v25 = vmul.f32 0.03125, %v3933_v24  ;;  %v3930_v26 = vpop.xlane.xlu0 %3929 }
 0xd7d   : > { %v3934_v27 = vmul.f32 0.03125, %v3930_v26 }
 0xd7e   : > { %v3937_v28 = vsub.f32 %v3927_v35, %v3935_v25 }
 0xd7f   : > { %v3936_v29 = vsub.f32 %v3926_v20, %v3934_v27 }
 0xd80   : > { %v3939_v32 = vmul.f32 %v3937_v28, %v3937_v28 }
 0xd81   : > { %v3938_v31 = vmul.f32 %v3936_v29, %v3936_v29 }
 0xd82   : > { %v3943_v33 = vsel %vm741_vm1, %v3939_v32, 0.0 }
 0xd83   : > { %v3940_v30 = vsel %vm741_vm1, %v3938_v31, 0.0 }
 0xd84   : > { %3941 = vadd.xlane.f32.xlu0 %v3940_v30 }
 0xd88   : > { %3944 = vadd.xlane.f32.xlu0 %v3943_v33 }
 0xe11   : > { %v3942_v51 = vpop.xlane.xlu0 %3941 }
 0xe12   : > { %v3946_v52 = vmul.f32 0.03125, %v3942_v51 }
 0xe14   : > { %v3948_v53 = vadd.f32 1e-05, %v3946_v52 }
 0xe15   : > { %v3945_v54 = vpop.xlane.xlu0 %3944 }
 0xe16   : > { %5144 = vrsqrt.f32 %v3948_v53  ;;  %v3947_v55 = vmul.f32 0.03125, %v3945_v54 }
 0xe18   : > { %v3949_v56 = vadd.f32 1e-05, %v3947_v55 }
 0xe1a   : > { %5146 = vrsqrt.f32 %v3949_v56 }
 0xe20   : > { %v5145_v7 = vpop.eup %5144 }
 0xe21   : > { %v3952_v59 = vmul.f32 %v5145_v7, %v3936_v29 }
 0xe23   : > { %v3958_v61 = vmul.f32 %v3957_v9, %v3952_v59 }
 0xe24   : > { %v5147_v62 = vpop.eup %5146 }
 0xe25   : > { %v3953_v63 = vmul.f32 %v5147_v62, %v3937_v28  ;;  %v3964_v0 = vadd.f32 %v3963_v60, %v3958_v61 }
 0xe27   : > { %v3959_v1 = vmul.f32 %v3957_v9, %v3953_v63  ;;  %4939 = vmatprep.mubr.msk.f32.mxu1 %vm741_vm1, %v3964_v0 }
 0xe29   : > { %v3965_v2 = vadd.f32 %v3963_v60, %v3959_v1  ;;  %v4240_v1 = vld [vmem:[%s5890_s14 + $0x8] sm:$0xff] (!%p4584_p5) }
 0xe2b   : > { %4940 = vmatmul.mubr.msk.f32.vlgmr.msra.gmra.mrb[40].mxu1 %vm741_vm1, %v3965_v2 }
 0xefe   : > { %v4941_v8 = vpop.f32.mrb[40].mxu1 }
 0xeff   : > { %v4055_v11 = vadd.f32 %v4941_v8, %v4579_v6  ;;  %v4049_v12 = vpop.f32.mrb[41].mxu1 }
 0xf00   : > { %v4050_v13 = vadd.f32 %v4579_v6, %v4049_v12 }
 0xf01   : > { %v4059_v15 = vmax.f32 %v4055_v11, 0.0 }
 0xf02   : > { %v4058_v14 = vmax.f32 %v4050_v13, 0.0 }
 0xf04   : > { %4958 = vmatprep.mubr.msk.f32.mxu0 %vm4072_vm6, %v4058_v14 }
 0xf05   : > { %4959 = vmatmul.mubr.msk.f32.vlgmr.msra.gmra.mrb[34].mxu0 %vm4072_vm6, %v4059_v15  ;;  %v4200_v15 = vld [vmem:[%s5924_s21] sm:$0x3] (!%p4584_p5) }
 0xf06   : > { %v4230_v17 = vrot.slane (!%p4584_p5), %v4200_v15, %v5561_v43 }
 0xfd8   : > { %v4960_v19 = vpop.f32.mrb[34].mxu0 }
 0xfd9   : > { %v4151_v35 = vadd.f32 %v4960_v19, %v4071_v18  ;;  %v4145_v20 = vpop.f32.mrb[35].mxu0 }
 0xfda   : > { %v4146_v22 = vadd.f32 %v4145_v20, %v4071_v18 }
 0xfdb   : > { %v4155_v23 = vadd.f32 %v4151_v35, %v3965_v2  ;;  %v4241_v2 = vld [vmem:[%s5890_s14 + $0x10] sm:$0xff] (!%p4584_p5)  ;;  %v4236_v35 = vrot.slane (!%p4584_p5), %v4200_v15, %v5595_v21 }
 0xfdc   : > { %v4154_v24 = vadd.f32 %v4146_v22, %v3964_v0  ;;  %v4239_v0 = vld [vmem:[%s5890_s14] sm:$0xff] (!%p4584_p5)  ;;  %v5040_v5 = vpack.c.bf16 (!%p4584_p5), %v4242_v4, %v4241_v2 }
 0xfdd   : > { %v4159_v25 = vsel %vm741_vm1, %v4155_v23, 0.0  ;;  %v5036_v3 = vpack.c.bf16 (!%p4584_p5), %v4240_v1, %v4239_v0 }
 0xfde   : > { %4160 = vadd.xlane.f32.xlu0 %v4159_v25  ;;  %v4156_v26 = vsel %vm741_vm1, %v4154_v24, 0.0 }
 0xfdf   : > { %4157 = vadd.xlane.f32.xlu1 %v4156_v26  ;;  %5037 = vmatprep.subr.bf16.mxu0 (!%p4584_p5), %v5036_v3 }
 0xfe0   : > { %5039 = vmatpush3.bf16.msra.mxu0 (!%p4584_p5), %v5036_v3 }
 0xfe1   : > { %5041 = vmatprep.subr.bf16.mxu0 (!%p4584_p5), %v5040_v5 }
 0xfe4   : > { %5043 = vmatpush3.bf16.msra.mxu0 (!%p4584_p5), %v5040_v5 }
0x106b   : > { %v4161_v27 = vpop.xlane.xlu0 %4160 }
0x106c   : > { %v4163_v28 = vmul.f32 0.03125, %v4161_v27  ;;  %v4158_v29 = vpop.xlane.xlu1 %4157  ;;  %v4585_v27 = vld [vmem:[%s5925_s24] ss:$0 sm:$0xff] (!%p4584_p5) }
0x106d   : > { %v4162_v31 = vmul.f32 0.03125, %v4158_v29 }
0x106e   : > { %v4165_v30 = vsub.f32 %v4155_v23, %v4163_v28 }
0x106f   : > { %v4164_v42 = vsub.f32 %v4154_v24, %v4162_v31 }
0x1070   : > { %v4167_v44 = vmul.f32 %v4165_v30, %v4165_v30 }
0x1071   : > { %v4166_v32 = vmul.f32 %v4164_v42, %v4164_v42 }
0x1072   : > { %v4171_v33 = vsel %vm741_vm1, %v4167_v44, 0.0 }
0x1073   : > { %4172 = vadd.xlane.f32.xlu0 %v4171_v33  ;;  %v4168_v34 = vsel %vm741_vm1, %v4166_v32, 0.0 }
0x1074   : > { %4169 = vadd.xlane.f32.xlu1 %v4168_v34 }
0x1100   : > { %v4173_v36 = vpop.xlane.xlu0 %4172 }
0x1101   : > { %v4175_v38 = vmul.f32 0.03125, %v4173_v36  ;;  %v4170_v39 = vpop.xlane.xlu1 %4169 }
0x1102   : > { %v4174_v40 = vmul.f32 0.03125, %v4170_v39 }
0x1103   : > { %v4177_v41 = vadd.f32 1e-05, %v4175_v38 }
0x1104   : > { %v4176_v37 = vadd.f32 1e-05, %v4174_v40 }
0x1105   : > { %5148 = vrsqrt.f32 %v4177_v41 }
0x1106   : > { %5150 = vrsqrt.f32 %v4176_v37 }
0x110f   : > { %v5149_v16 = vpop.eup %5148 }
0x1110   : > { %v5151_v47 = vpop.eup %5150  ;;  %v4181_v49 = vmul.f32 %v5149_v16, %v4165_v30 }
0x1111   : > { %v4180_v10 = vmul.f32 %v5151_v47, %v4164_v42  ;;  %4199 = sbr.rel (%p4584_p5) target bundleno = 4908 (0x132c), region = 92 }
0x1112   : > { %v4187_v50 = vmul.f32 %v4185_v46, %v4181_v49 }
0x1113   : > { %v4186_v51 = vmul.f32 %v4185_v46, %v4180_v10 }
0x1114   : > { %v4193_v52 = vadd.f32 %v4191_v48, %v4187_v50 }
0x1115   : > { %v4192_v53 = vadd.f32 %v4191_v48, %v4186_v51 }
0x1116   : > { %4195 = vst.msk [vmem:[#allocation2 + $0x8] sm:$0xff] %vm741_vm1, %v4193_v52  ;;  %v4204_v55 = vsel (!%p4584_p5), %vm741_vm1, %v4193_v52, 0.0 }
0x1117   : > { %4194 = vst.msk [vmem:[#allocation2] sm:$0xff] %vm741_vm1, %v4192_v53  ;;  %v4201_v54 = vsel (!%p4584_p5), %vm741_vm1, %v4192_v53, 0.0 }
0x1118   : > { %4202 = vadd.xlane.f32.xlu0 %v4201_v54 }
0x111c   : > { %4205 = vadd.xlane.f32.xlu0 %v4204_v55 }
0x11a5   : > { %v4203_v56 = vpop.xlane.xlu0 %4202 }
0x11a6   : > { %v4207_v57 = vmul.f32 0.03125, %v4203_v56 }
0x11a8   : > { %v4209_v58 = vsub.f32 %v4192_v53, %v4207_v57 }
0x11a9   : > { %v4206_v9 = vpop.xlane.xlu0 %4205 }
0x11aa   : > { %v4208_v7 = vmul.f32 0.03125, %v4206_v9  ;;  %v4211_v59 = vmul.f32 %v4209_v58, %v4209_v58 }
0x11ac   : > { %v4210_v60 = vsub.f32 %v4193_v52, %v4208_v7  ;;  %v4213_v61 = vsel %vm741_vm1, %v4211_v59, 0.0 }
0x11ad   : > { %4214 = vadd.xlane.f32.xlu1 %v4213_v61 }
0x11ae   : > { %v4212_v62 = vmul.f32 %v4210_v60, %v4210_v60 }
0x11b0   : > { %v4216_v63 = vsel %vm741_vm1, %v4212_v62, 0.0 }
0x11b1   : > { %4217 = vadd.xlane.f32.xlu1 %v4216_v63 }
0x123a   : > { %v4215_v6 = vpop.xlane.xlu1 %4214 }
0x123b   : > { %v4219_v8 = vmul.f32 0.03125, %v4215_v6 }
0x123d   : > { %v4221_v11 = vadd.f32 1e-05, %v4219_v8 }
0x123e   : > { %v4218_v12 = vpop.xlane.xlu1 %4217 }
0x123f   : > { %5152 = vrsqrt.f32 %v4221_v11  ;;  %v4220_v13 = vmul.f32 0.03125, %v4218_v12 }
0x1241   : > { %v4222_v14 = vadd.f32 1e-05, %v4220_v13 }
0x1243   : > { %5154 = vrsqrt.f32 %v4222_v14 }
0x1249   : > { %v5153_v18 = vpop.eup %5152 }
0x124a   : > { %v4225_v19 = vmul.f32 %v5153_v18, %v4209_v58 }
0x124c   : > { %v4231_v20 = vmul.f32 %v4230_v17, %v4225_v19 }
0x124d   : > { %v5155_v22 = vpop.eup %5154 }
0x124e   : > { %v4237_v23 = vadd.f32 %v4236_v35, %v4231_v20  ;;  %v4226_v24 = vmul.f32 %v5155_v22, %v4210_v60 }
0x1250   : > { %4969 = vmatprep.mubr.msk.f32.mxu0 %vm741_vm1, %v4237_v23  ;;  %v4232_v25 = vmul.f32 %v4230_v17, %v4226_v24 }
0x1252   : > { %v4238_v26 = vadd.f32 %v4236_v35, %v4232_v25 }
0x1254   : > { %4970 = vmatmul.mubr.msk.f32.vlgmr.msra.gmra.mrb[0].mxu0 %vm741_vm1, %v4238_v26 }
0x1327   : > { %v4971_v28 = vpop.f32.mrb[0].mxu0 }
0x1328   : > { %v4328_v43 = vadd.f32 %v4971_v28, %v4585_v27  ;;  %v4322_v29 = vpop.f32.mrb[1].mxu0 }
0x1329   : > { %v4323_v31 = vadd.f32 %v4585_v27, %v4322_v29 }
0x132a   : > { %4332 = vst [vmem:[%s5926_s1 + $0x8] sm:$0xff] %v4328_v43 }
0x132b   : > { %4331 = vst [vmem:[%s5926_s1] sm:$0xff] %v4323_v31 }
0x132c PF: > { %p5048_p6 = scmp.eq.s32.totalorder %s5308_s25, 1  ;;  %s5210_s26 = smov [#allocation2]  }
0x132d   : > { %s4339_s28 = sshll.u32 %s5210_s26, 4  ;;  %s4340_s28 = int_to_ptr.vmem [resolvable:$true] %s4339_s28 }
0x132e   : > { %s5156_s18 = scalar_lea.vmem %s4340_s28, 256  ;;  %p5163_p10 = scmp.lt.s32.totalorder %s4340_s28, %s4340_s28 }
0x132f   : > { %p5157_p7 = scmp.ne.s32.totalorder %s4340_s28, %s5156_s18  ;;  %p5164_p11 = scmp.lt.s32.totalorder %s5156_s18, %s5156_s18 }
0x1331   : > { %p5158_p8 = pnand %p5157_p7, %p5048_p6  ;;  %p5165_p12 = por %p5164_p11, %p5163_p10 }
0x1333   : > { %p5159_p9 = pneg %p5158_p8 }
0x1335   : > { %p5166_p13 = pnand %p5165_p12, %p5159_p9 }
0x1337   : > { %5169 = shalt.err (!%p5166_p13)
}
0x1338   : > { %s5927_s2 = sld [smem:[#allocation14_spill]] }
0x133e   : > { %s5170_s27 = scalar_lea.hbm %s5927_s2, 256 }
0x133f   : > { %p5171_p0 = scmp.ne.s32.totalorder %s5927_s2, %s5170_s27  ;;  %p5176_p3 = scmp.lt.u32.totalorder %s5170_s27, %s5927_s2 }
0x1341   : > { %p5172_p1 = pnand %p5171_p0, %p5048_p6 }
0x1343   : > { %p5173_p2 = pneg %p5172_p1 }
0x1345   : > { %p5178_p4 = pnand %p5176_p3, %p5173_p2 }
0x1347   : > { %5181 = shalt.err (!%p5178_p4)
}
0x1348   : > { %s5211_s13 = smov 128  }
0x1349   : > { %5045 = dma.vmem_to_hbm [thread:$0]  (%p5048_p6), %s4340_s28, 256, %s5927_s2, [#allocation3], %s5211_s13, %s5211_s13, %s5207_s23  }
0x134a   : > { %5187 = dma.done.wait (%p5048_p6), [#allocation3], 256  }
0x134b   : > { %5189 = vsyncadd (%p5048_p6), [#allocation3], 4294967040 }
0x134c PF: > { %s5928_s30 = sld [smem:[#allocation5_spill]] }
0x1352   : > { %s29_s24 = sadd.s32 1, %s5928_s30  }
0x1353   : > { %p26_p5 = scmp.ge.s32.totalorder %s29_s24, 4  }
0x1355   :  { %28 = sbr.rel (!%p26_p5) target bundleno = 12 (0xc), region = 157 }
0x135c   :  { %4361 = vsyncpa [#allocation3], 1 }
0x135d   :  { %4363 = vsyncpa [#allocation3 + $0x1], 1 }

</bundles_post_ra>
